<compile_context>
chip_gen: v5e
topology: v5e:2x2
jax: 0.10.0
libtpu: 0.0.40
codegen_flags: <defaults>
</compile_context>

<pallas_src>
import functools

import jax
import jax.numpy as jnp
from jax import lax
from jax.experimental import pallas as pl
from jax.experimental.pallas import tpu as pltpu


def _conv_relu_kernel(x_ref, w_ref, b_ref, o_ref, xpad_ref, col_ref, *,
                      kh, kw, stride, dilation, padding, h_out, w_out, nb):
    """Conv2d(bias=True) + ReLU for a tile of `nb` batch images.

    x_ref    : (nb, H, W, Cin)          unpadded NHWC input tile
    w_ref    : (Cout, kh*kw*Cin)        im2col-ordered weights
    b_ref    : (Cout, 1)                bias
    o_ref    : (nb, Cout, Hout*Wout)    NCHW-flattened, lane-dense output
    xpad_ref : (Hp, Wp, Cin)            VMEM scratch: zero-padded image
    col_ref  : (Hout*Wout, kh*kw*Cin)   VMEM scratch: im2col patch matrix
    """
    h = x_ref.shape[1]
    w = x_ref.shape[2]
    cin = x_ref.shape[3]
    hw = h_out * w_out

    w2 = w_ref[...]            # (Cout, K)   hoisted out of the batch loop
    b2 = b_ref[...]            # (Cout, 1)

    # Zero the padded-image scratch once per grid step (the zero border is
    # shared by all images in the tile; the interior is overwritten per image).
    if padding > 0:
        xpad_ref[...] = jnp.zeros(xpad_ref.shape, xpad_ref.dtype)

    for b in range(nb):
        # Padding in VMEM (no extra padded HBM copy of the input).
        xpad_ref[padding:padding + h, padding:padding + w, :] = x_ref[b]
        xp = xpad_ref[...]                        # (Hp, Wp, Cin)

        # Build the im2col patch matrix (Hout*Wout, kh*kw*Cin).
        for ih in range(kh):
            for iw in range(kw):
                h0 = ih * dilation
                w0 = iw * dilation
                if stride == 1:
                    p = xp[h0:h0 + h_out, w0:w0 + w_out, :]
                else:
                    p = lax.slice(
                        xp, (h0, w0, 0),
                        (h0 + (h_out - 1) * stride + 1,
                         w0 + (w_out - 1) * stride + 1, cin),
                        (stride, stride, 1))
                t = ih * kw + iw
                col_ref[:, t * cin:(t + 1) * cin] = p.reshape(hw, cin)

        # Single fused matmul with f32 accumulation.  Result is (Cout, HW):
        # the large spatial dim sits on lanes, so bias/ReLU/store are dense.
        acc = jnp.dot(w2, col_ref[...].T, preferred_element_type=jnp.float32)
        acc = acc + b2                             # one lane-dense VPU pass
        o_ref[b] = jnp.maximum(acc, 0.0).astype(o_ref.dtype)


def conv_relu(x_nchw, weight_oihw, bias, *, stride=1, padding=0, dilation=1):
    """Equivalent of conv_relu.forward(x_input) for NCHW input."""
    n, cin, h, w = x_nchw.shape
    cout, cin_w, kh, kw = weight_oihw.shape
    assert cin == cin_w

    h_out = (h + 2 * padding - dilation * (kh - 1) - 1) // stride + 1
    w_out = (w + 2 * padding - dilation * (kw - 1) - 1) // stride + 1
    hw = h_out * w_out
    k_dim = kh * kw * cin
    hp = h + 2 * padding
    wp = w + 2 * padding

    # One cheap layout op (NCHW -> NHWC); zero-padding is done inside the
    # kernel's VMEM scratch, so no padded HBM copy is materialized.
    x = jnp.transpose(x_nchw, (0, 2, 3, 1))
    # im2col-ordered weights: (Cout, kh*kw*Cin), tap-major then channel.
    w2 = jnp.transpose(weight_oihw, (0, 2, 3, 1)).reshape(cout, k_dim)
    b2 = bias.reshape(cout, 1)

    # Batch tile: put the whole (tiny) problem in a single grid step when it
    # fits comfortably in VMEM, otherwise one image per step.
    itemsize = jnp.dtype(x.dtype).itemsize
    per_image = (h * w * cin + cout * hw) * itemsize
    nb = n if (n <= 8 and n * per_image <= 4 * 1024 * 1024) else 1
    grid = (n // nb,)

    kernel = functools.partial(
        _conv_relu_kernel, kh=kh, kw=kw, stride=stride, dilation=dilation,
        padding=padding, h_out=h_out, w_out=w_out, nb=nb)

    out_flat = pl.pallas_call(
        kernel,
        out_shape=jax.ShapeDtypeStruct((n, cout, hw), x.dtype),
        grid_spec=pltpu.PrefetchScalarGridSpec(
            num_scalar_prefetch=0,
            grid=grid,
            in_specs=[
                pl.BlockSpec((nb, h, w, cin), lambda i: (i, 0, 0, 0)),
                pl.BlockSpec((cout, k_dim), lambda i: (0, 0)),
                pl.BlockSpec((cout, 1), lambda i: (0, 0)),
            ],
            out_specs=pl.BlockSpec((nb, cout, hw), lambda i: (i, 0, 0)),
            scratch_shapes=[
                pltpu.VMEM((hp, wp, cin), x.dtype),   # padded image
                pltpu.VMEM((hw, k_dim), x.dtype),     # im2col patches
            ],
        ),
        compiler_params=pltpu.CompilerParams(
            dimension_semantics=("parallel",)),
    )(x, w2, b2)

    # NCHW output directly: free contiguous reshape, no transpose HBM pass.
    return out_flat.reshape(n, cout, h_out, w_out)


if __name__ == "__main__":
    # Small shapes consistent with the module: conv_relu(in=4, out=8, k=3, pad=1)
    batch, in_ch, out_ch, spatial, ksz, pad = 2, 4, 8, 16, 3, 1

    key = jax.random.PRNGKey(0)
    kx, kw_, kb = jax.random.split(key, 3)
    x = jax.random.normal(kx, (batch, in_ch, spatial, spatial), dtype=jnp.float32)
    weight = (jax.random.normal(kw_, (out_ch, in_ch, ksz, ksz),
                                dtype=jnp.float32) * 0.1)
    bias = jax.random.normal(kb, (out_ch,), dtype=jnp.float32) * 0.1

    out = conv_relu(x, weight, bias, stride=1, padding=pad, dilation=1)
    out = jax.block_until_ready(out)

    # Pure-JAX reference (same math as torch.nn.Conv2d + ReLU).
    ref = lax.conv_general_dilated(
        x, weight, window_strides=(1, 1), padding=((pad, pad), (pad, pad)),
        rhs_dilation=(1, 1), dimension_numbers=("NCHW", "OIHW", "NCHW"))
    ref = jnp.maximum(ref + bias.reshape(1, -1, 1, 1), 0.0)

    assert out.shape == ref.shape
    assert jnp.allclose(out, ref, atol=1e-4, rtol=1e-4)
    print("KERNEL_OK")
</pallas_src>

<mosaic_0001>
module attributes {stable_mosaic.version = 11 : i64} {
  func.func @_conv_relu_kernel(%arg0: i32, %arg1: memref<2x16x16x4xf32, #tpu.memory_space<vmem>>, %arg2: memref<8x36xf32, #tpu.memory_space<vmem>>, %arg3: memref<8x1xf32, #tpu.memory_space<vmem>>, %arg4: memref<2x8x256xf32, #tpu.memory_space<vmem>>, %arg5: memref<18x18x4xf32, #tpu.memory_space<vmem>>, %arg6: memref<256x36xf32, #tpu.memory_space<vmem>>) attributes {dimension_semantics = [#tpu.dimension_semantics<parallel>], iteration_bounds = array<i64: 1>, scalar_prefetch = 0 : i64, scratch_operands = 2 : i64, tpu.core_type = #tpu.core_type<tc>, window_params = [{transform_indices = @transform_0, window_bounds = array<i64: 2, 16, 16, 4>}, {pipeline_mode = #tpu.pipeline_mode<synchronous>, transform_indices = @transform_1, window_bounds = array<i64: 8, 36>}, {pipeline_mode = #tpu.pipeline_mode<synchronous>, transform_indices = @transform_2, window_bounds = array<i64: 8, 1>}, {transform_indices = @transform_3, window_bounds = array<i64: 2, 8, 256>}]} {
    %c0 = arith.constant 0 : index
    %c0_0 = arith.constant 0 : index
    %0 = vector.load %arg2[%c0, %c0_0] : memref<8x36xf32, #tpu.memory_space<vmem>>, vector<8x36xf32>
    %c0_1 = arith.constant 0 : index
    %c0_2 = arith.constant 0 : index
    %1 = vector.load %arg3[%c0_1, %c0_2] : memref<8x1xf32, #tpu.memory_space<vmem>>, vector<8x1xf32>
    %cst = arith.constant 0.000000e+00 : f32
    %2 = vector.broadcast %cst : f32 to vector<18x18x4xf32>
    %c0_3 = arith.constant 0 : index
    %c0_4 = arith.constant 0 : index
    %c0_5 = arith.constant 0 : index
    %3 = vector.load %arg5[%c0_3, %c0_4, %c0_5] : memref<18x18x4xf32, #tpu.memory_space<vmem>>, vector<18x18x4xf32>
    tpu.vector_store %arg5[%c0_3, %c0_4, %c0_5], %2 {strides = array<i32>} : memref<18x18x4xf32, #tpu.memory_space<vmem>>, vector<18x18x4xf32>,
    %c0_6 = arith.constant 0 : index
    %c0_7 = arith.constant 0 : index
    %c0_8 = arith.constant 0 : index
    %c0_9 = arith.constant 0 : index
    %4 = vector.load %arg1[%c0_6, %c0_7, %c0_8, %c0_9] : memref<2x16x16x4xf32, #tpu.memory_space<vmem>>, vector<1x16x16x4xf32>
    %5 = vector.shape_cast %4 : vector<1x16x16x4xf32> to vector<16x16x4xf32>
    %c1 = arith.constant 1 : index
    %c1_10 = arith.constant 1 : index
    %c0_11 = arith.constant 0 : index
    %6 = vector.load %arg5[%c1, %c1_10, %c0_11] : memref<18x18x4xf32, #tpu.memory_space<vmem>>, vector<16x16x4xf32>
    tpu.vector_store %arg5[%c1, %c1_10, %c0_11], %5 {strides = array<i32>} : memref<18x18x4xf32, #tpu.memory_space<vmem>>, vector<16x16x4xf32>,
    %c0_12 = arith.constant 0 : index
    %c0_13 = arith.constant 0 : index
    %c0_14 = arith.constant 0 : index
    %7 = vector.load %arg5[%c0_12, %c0_13, %c0_14] : memref<18x18x4xf32, #tpu.memory_space<vmem>>, vector<18x18x4xf32>
    %8 = vector.extract_strided_slice %7 {offsets = [0, 0, 0], sizes = [16, 16, 4], strides = [1, 1, 1]} : vector<18x18x4xf32> to vector<16x16x4xf32>
    %9 = vector.shape_cast %8 : vector<16x16x4xf32> to vector<256x4xf32>
    %c0_15 = arith.constant 0 : index
    %c0_16 = arith.constant 0 : index
    %10 = vector.load %arg6[%c0_15, %c0_16] : memref<256x36xf32, #tpu.memory_space<vmem>>, vector<256x4xf32>
    tpu.vector_store %arg6[%c0_15, %c0_16], %9 {strides = array<i32>} : memref<256x36xf32, #tpu.memory_space<vmem>>, vector<256x4xf32>,
    %11 = vector.extract_strided_slice %7 {offsets = [0, 1, 0], sizes = [16, 16, 4], strides = [1, 1, 1]} : vector<18x18x4xf32> to vector<16x16x4xf32>
    %12 = vector.shape_cast %11 : vector<16x16x4xf32> to vector<256x4xf32>
    %c0_17 = arith.constant 0 : index
    %c4 = arith.constant 4 : index
    %13 = vector.load %arg6[%c0_17, %c4] : memref<256x36xf32, #tpu.memory_space<vmem>>, vector<256x4xf32>
    tpu.vector_store %arg6[%c0_17, %c4], %12 {strides = array<i32>} : memref<256x36xf32, #tpu.memory_space<vmem>>, vector<256x4xf32>,
    %14 = vector.extract_strided_slice %7 {offsets = [0, 2, 0], sizes = [16, 16, 4], strides = [1, 1, 1]} : vector<18x18x4xf32> to vector<16x16x4xf32>
    %15 = vector.shape_cast %14 : vector<16x16x4xf32> to vector<256x4xf32>
    %c0_18 = arith.constant 0 : index
    %c8 = arith.constant 8 : index
    %16 = vector.load %arg6[%c0_18, %c8] : memref<256x36xf32, #tpu.memory_space<vmem>>, vector<256x4xf32>
    tpu.vector_store %arg6[%c0_18, %c8], %15 {strides = array<i32>} : memref<256x36xf32, #tpu.memory_space<vmem>>, vector<256x4xf32>,
    %17 = vector.extract_strided_slice %7 {offsets = [1, 0, 0], sizes = [16, 16, 4], strides = [1, 1, 1]} : vector<18x18x4xf32> to vector<16x16x4xf32>
    %18 = vector.shape_cast %17 : vector<16x16x4xf32> to vector<256x4xf32>
    %c0_19 = arith.constant 0 : index
    %c12 = arith.constant 12 : index
    %19 = vector.load %arg6[%c0_19, %c12] : memref<256x36xf32, #tpu.memory_space<vmem>>, vector<256x4xf32>
    tpu.vector_store %arg6[%c0_19, %c12], %18 {strides = array<i32>} : memref<256x36xf32, #tpu.memory_space<vmem>>, vector<256x4xf32>,
    %20 = vector.extract_strided_slice %7 {offsets = [1, 1, 0], sizes = [16, 16, 4], strides = [1, 1, 1]} : vector<18x18x4xf32> to vector<16x16x4xf32>
    %21 = vector.shape_cast %20 : vector<16x16x4xf32> to vector<256x4xf32>
    %c0_20 = arith.constant 0 : index
    %c16 = arith.constant 16 : index
    %22 = vector.load %arg6[%c0_20, %c16] : memref<256x36xf32, #tpu.memory_space<vmem>>, vector<256x4xf32>
    tpu.vector_store %arg6[%c0_20, %c16], %21 {strides = array<i32>} : memref<256x36xf32, #tpu.memory_space<vmem>>, vector<256x4xf32>,
    %23 = vector.extract_strided_slice %7 {offsets = [1, 2, 0], sizes = [16, 16, 4], strides = [1, 1, 1]} : vector<18x18x4xf32> to vector<16x16x4xf32>
    %24 = vector.shape_cast %23 : vector<16x16x4xf32> to vector<256x4xf32>
    %c0_21 = arith.constant 0 : index
    %c20 = arith.constant 20 : index
    %25 = vector.load %arg6[%c0_21, %c20] : memref<256x36xf32, #tpu.memory_space<vmem>>, vector<256x4xf32>
    tpu.vector_store %arg6[%c0_21, %c20], %24 {strides = array<i32>} : memref<256x36xf32, #tpu.memory_space<vmem>>, vector<256x4xf32>,
    %26 = vector.extract_strided_slice %7 {offsets = [2, 0, 0], sizes = [16, 16, 4], strides = [1, 1, 1]} : vector<18x18x4xf32> to vector<16x16x4xf32>
    %27 = vector.shape_cast %26 : vector<16x16x4xf32> to vector<256x4xf32>
    %c0_22 = arith.constant 0 : index
    %c24 = arith.constant 24 : index
    %28 = vector.load %arg6[%c0_22, %c24] : memref<256x36xf32, #tpu.memory_space<vmem>>, vector<256x4xf32>
    tpu.vector_store %arg6[%c0_22, %c24], %27 {strides = array<i32>} : memref<256x36xf32, #tpu.memory_space<vmem>>, vector<256x4xf32>,
    %29 = vector.extract_strided_slice %7 {offsets = [2, 1, 0], sizes = [16, 16, 4], strides = [1, 1, 1]} : vector<18x18x4xf32> to vector<16x16x4xf32>
    %30 = vector.shape_cast %29 : vector<16x16x4xf32> to vector<256x4xf32>
    %c0_23 = arith.constant 0 : index
    %c28 = arith.constant 28 : index
    %31 = vector.load %arg6[%c0_23, %c28] : memref<256x36xf32, #tpu.memory_space<vmem>>, vector<256x4xf32>
    tpu.vector_store %arg6[%c0_23, %c28], %30 {strides = array<i32>} : memref<256x36xf32, #tpu.memory_space<vmem>>, vector<256x4xf32>,
    %32 = vector.extract_strided_slice %7 {offsets = [2, 2, 0], sizes = [16, 16, 4], strides = [1, 1, 1]} : vector<18x18x4xf32> to vector<16x16x4xf32>
    %33 = vector.shape_cast %32 : vector<16x16x4xf32> to vector<256x4xf32>
    %c0_24 = arith.constant 0 : index
    %c32 = arith.constant 32 : index
    %34 = vector.load %arg6[%c0_24, %c32] : memref<256x36xf32, #tpu.memory_space<vmem>>, vector<256x4xf32>
    tpu.vector_store %arg6[%c0_24, %c32], %33 {strides = array<i32>} : memref<256x36xf32, #tpu.memory_space<vmem>>, vector<256x4xf32>,
    %c0_25 = arith.constant 0 : index
    %c0_26 = arith.constant 0 : index
    %35 = vector.load %arg6[%c0_25, %c0_26] : memref<256x36xf32, #tpu.memory_space<vmem>>, vector<256x36xf32>
    %36 = tpu.transpose %35, [1, 0] : vector<256x36xf32> -> vector<36x256xf32>
    %cst_27 = arith.constant dense<0.000000e+00> : vector<8x256xf32>
    %37 = tpu.matmul %0, %36, %cst_27 {dimension_numbers = #tpu.dot_dimension_numbers<[1], [0], [0], [1], [0, 0, 1, 1], [], []>} : vector<8x36xf32>, vector<36x256xf32>, vector<8x256xf32> -> vector<8x256xf32>
    %38 = vector.broadcast %1 : vector<8x1xf32> to vector<8x256xf32>
    %39 = arith.addf %37, %38 : vector<8x256xf32>
    %cst_28 = arith.constant 0.000000e+00 : f32
    %40 = vector.broadcast %cst_28 : f32 to vector<8x256xf32>
    %41 = arith.maximumf %39, %40 : vector<8x256xf32>
    %c0_29 = arith.constant 0 : index
    %c0_30 = arith.constant 0 : index
    %c0_31 = arith.constant 0 : index
    %42 = vector.load %arg4[%c0_29, %c0_30, %c0_31] : memref<2x8x256xf32, #tpu.memory_space<vmem>>, vector<1x8x256xf32>
    %43 = vector.shape_cast %42 : vector<1x8x256xf32> to vector<8x256xf32>
    %44 = vector.shape_cast %41 : vector<8x256xf32> to vector<1x8x256xf32>
    tpu.vector_store %arg4[%c0_29, %c0_30, %c0_31], %44 {strides = array<i32>} : memref<2x8x256xf32, #tpu.memory_space<vmem>>, vector<1x8x256xf32>,
    %c1_32 = arith.constant 1 : index
    %c0_33 = arith.constant 0 : index
    %c0_34 = arith.constant 0 : index
    %c0_35 = arith.constant 0 : index
    %45 = vector.load %arg1[%c1_32, %c0_33, %c0_34, %c0_35] : memref<2x16x16x4xf32, #tpu.memory_space<vmem>>, vector<1x16x16x4xf32>
    %46 = vector.shape_cast %45 : vector<1x16x16x4xf32> to vector<16x16x4xf32>
    %c1_36 = arith.constant 1 : index
    %c1_37 = arith.constant 1 : index
    %c0_38 = arith.constant 0 : index
    %47 = vector.load %arg5[%c1_36, %c1_37, %c0_38] : memref<18x18x4xf32, #tpu.memory_space<vmem>>, vector<16x16x4xf32>
    tpu.vector_store %arg5[%c1_36, %c1_37, %c0_38], %46 {strides = array<i32>} : memref<18x18x4xf32, #tpu.memory_space<vmem>>, vector<16x16x4xf32>,
    %c0_39 = arith.constant 0 : index
    %c0_40 = arith.constant 0 : index
    %c0_41 = arith.constant 0 : index
    %48 = vector.load %arg5[%c0_39, %c0_40, %c0_41] : memref<18x18x4xf32, #tpu.memory_space<vmem>>, vector<18x18x4xf32>
    %49 = vector.extract_strided_slice %48 {offsets = [0, 0, 0], sizes = [16, 16, 4], strides = [1, 1, 1]} : vector<18x18x4xf32> to vector<16x16x4xf32>
    %50 = vector.shape_cast %49 : vector<16x16x4xf32> to vector<256x4xf32>
    %c0_42 = arith.constant 0 : index
    %c0_43 = arith.constant 0 : index
    %51 = vector.load %arg6[%c0_42, %c0_43] : memref<256x36xf32, #tpu.memory_space<vmem>>, vector<256x4xf32>
    tpu.vector_store %arg6[%c0_42, %c0_43], %50 {strides = array<i32>} : memref<256x36xf32, #tpu.memory_space<vmem>>, vector<256x4xf32>,
    %52 = vector.extract_strided_slice %48 {offsets = [0, 1, 0], sizes = [16, 16, 4], strides = [1, 1, 1]} : vector<18x18x4xf32> to vector<16x16x4xf32>
    %53 = vector.shape_cast %52 : vector<16x16x4xf32> to vector<256x4xf32>
    %c0_44 = arith.constant 0 : index
    %c4_45 = arith.constant 4 : index
    %54 = vector.load %arg6[%c0_44, %c4_45] : memref<256x36xf32, #tpu.memory_space<vmem>>, vector<256x4xf32>
    tpu.vector_store %arg6[%c0_44, %c4_45], %53 {strides = array<i32>} : memref<256x36xf32, #tpu.memory_space<vmem>>, vector<256x4xf32>,
    %55 = vector.extract_strided_slice %48 {offsets = [0, 2, 0], sizes = [16, 16, 4], strides = [1, 1, 1]} : vector<18x18x4xf32> to vector<16x16x4xf32>
    %56 = vector.shape_cast %55 : vector<16x16x4xf32> to vector<256x4xf32>
    %c0_46 = arith.constant 0 : index
    %c8_47 = arith.constant 8 : index
    %57 = vector.load %arg6[%c0_46, %c8_47] : memref<256x36xf32, #tpu.memory_space<vmem>>, vector<256x4xf32>
    tpu.vector_store %arg6[%c0_46, %c8_47], %56 {strides = array<i32>} : memref<256x36xf32, #tpu.memory_space<vmem>>, vector<256x4xf32>,
    %58 = vector.extract_strided_slice %48 {offsets = [1, 0, 0], sizes = [16, 16, 4], strides = [1, 1, 1]} : vector<18x18x4xf32> to vector<16x16x4xf32>
    %59 = vector.shape_cast %58 : vector<16x16x4xf32> to vector<256x4xf32>
    %c0_48 = arith.constant 0 : index
    %c12_49 = arith.constant 12 : index
    %60 = vector.load %arg6[%c0_48, %c12_49] : memref<256x36xf32, #tpu.memory_space<vmem>>, vector<256x4xf32>
    tpu.vector_store %arg6[%c0_48, %c12_49], %59 {strides = array<i32>} : memref<256x36xf32, #tpu.memory_space<vmem>>, vector<256x4xf32>,
    %61 = vector.extract_strided_slice %48 {offsets = [1, 1, 0], sizes = [16, 16, 4], strides = [1, 1, 1]} : vector<18x18x4xf32> to vector<16x16x4xf32>
    %62 = vector.shape_cast %61 : vector<16x16x4xf32> to vector<256x4xf32>
    %c0_50 = arith.constant 0 : index
    %c16_51 = arith.constant 16 : index
    %63 = vector.load %arg6[%c0_50, %c16_51] : memref<256x36xf32, #tpu.memory_space<vmem>>, vector<256x4xf32>
    tpu.vector_store %arg6[%c0_50, %c16_51], %62 {strides = array<i32>} : memref<256x36xf32, #tpu.memory_space<vmem>>, vector<256x4xf32>,
    %64 = vector.extract_strided_slice %48 {offsets = [1, 2, 0], sizes = [16, 16, 4], strides = [1, 1, 1]} : vector<18x18x4xf32> to vector<16x16x4xf32>
    %65 = vector.shape_cast %64 : vector<16x16x4xf32> to vector<256x4xf32>
    %c0_52 = arith.constant 0 : index
    %c20_53 = arith.constant 20 : index
    %66 = vector.load %arg6[%c0_52, %c20_53] : memref<256x36xf32, #tpu.memory_space<vmem>>, vector<256x4xf32>
    tpu.vector_store %arg6[%c0_52, %c20_53], %65 {strides = array<i32>} : memref<256x36xf32, #tpu.memory_space<vmem>>, vector<256x4xf32>,
    %67 = vector.extract_strided_slice %48 {offsets = [2, 0, 0], sizes = [16, 16, 4], strides = [1, 1, 1]} : vector<18x18x4xf32> to vector<16x16x4xf32>
    %68 = vector.shape_cast %67 : vector<16x16x4xf32> to vector<256x4xf32>
    %c0_54 = arith.constant 0 : index
    %c24_55 = arith.constant 24 : index
    %69 = vector.load %arg6[%c0_54, %c24_55] : memref<256x36xf32, #tpu.memory_space<vmem>>, vector<256x4xf32>
    tpu.vector_store %arg6[%c0_54, %c24_55], %68 {strides = array<i32>} : memref<256x36xf32, #tpu.memory_space<vmem>>, vector<256x4xf32>,
    %70 = vector.extract_strided_slice %48 {offsets = [2, 1, 0], sizes = [16, 16, 4], strides = [1, 1, 1]} : vector<18x18x4xf32> to vector<16x16x4xf32>
    %71 = vector.shape_cast %70 : vector<16x16x4xf32> to vector<256x4xf32>
    %c0_56 = arith.constant 0 : index
    %c28_57 = arith.constant 28 : index
    %72 = vector.load %arg6[%c0_56, %c28_57] : memref<256x36xf32, #tpu.memory_space<vmem>>, vector<256x4xf32>
    tpu.vector_store %arg6[%c0_56, %c28_57], %71 {strides = array<i32>} : memref<256x36xf32, #tpu.memory_space<vmem>>, vector<256x4xf32>,
    %73 = vector.extract_strided_slice %48 {offsets = [2, 2, 0], sizes = [16, 16, 4], strides = [1, 1, 1]} : vector<18x18x4xf32> to vector<16x16x4xf32>
    %74 = vector.shape_cast %73 : vector<16x16x4xf32> to vector<256x4xf32>
    %c0_58 = arith.constant 0 : index
    %c32_59 = arith.constant 32 : index
    %75 = vector.load %arg6[%c0_58, %c32_59] : memref<256x36xf32, #tpu.memory_space<vmem>>, vector<256x4xf32>
    tpu.vector_store %arg6[%c0_58, %c32_59], %74 {strides = array<i32>} : memref<256x36xf32, #tpu.memory_space<vmem>>, vector<256x4xf32>,
    %c0_60 = arith.constant 0 : index
    %c0_61 = arith.constant 0 : index
    %76 = vector.load %arg6[%c0_60, %c0_61] : memref<256x36xf32, #tpu.memory_space<vmem>>, vector<256x36xf32>
    %77 = tpu.transpose %76, [1, 0] : vector<256x36xf32> -> vector<36x256xf32>
    %cst_62 = arith.constant dense<0.000000e+00> : vector<8x256xf32>
    %78 = tpu.matmul %0, %77, %cst_62 {dimension_numbers = #tpu.dot_dimension_numbers<[1], [0], [0], [1], [0, 0, 1, 1], [], []>} : vector<8x36xf32>, vector<36x256xf32>, vector<8x256xf32> -> vector<8x256xf32>
    %79 = vector.broadcast %1 : vector<8x1xf32> to vector<8x256xf32>
    %80 = arith.addf %78, %79 : vector<8x256xf32>
    %cst_63 = arith.constant 0.000000e+00 : f32
    %81 = vector.broadcast %cst_63 : f32 to vector<8x256xf32>
    %82 = arith.maximumf %80, %81 : vector<8x256xf32>
    %c1_64 = arith.constant 1 : index
    %c0_65 = arith.constant 0 : index
    %c0_66 = arith.constant 0 : index
    %83 = vector.load %arg4[%c1_64, %c0_65, %c0_66] : memref<2x8x256xf32, #tpu.memory_space<vmem>>, vector<1x8x256xf32>
    %84 = vector.shape_cast %83 : vector<1x8x256xf32> to vector<8x256xf32>
    %85 = vector.shape_cast %82 : vector<8x256xf32> to vector<1x8x256xf32>
    tpu.vector_store %arg4[%c1_64, %c0_65, %c0_66], %85 {strides = array<i32>} : memref<2x8x256xf32, #tpu.memory_space<vmem>>, vector<1x8x256xf32>,
    return
  }
  func.func @transform_0(%arg0: i32) -> (i32, i32, i32, i32) {
    %c0_i32 = arith.constant 0 : i32
    %c0_i32_0 = arith.constant 0 : i32
    %c0_i32_1 = arith.constant 0 : i32
    %c0_i32_2 = arith.constant 0 : i32
    return %arg0, %c0_i32, %c0_i32_0, %c0_i32_1 : i32, i32, i32, i32
  }
  func.func @transform_1(%arg0: i32) -> (i32, i32) {
    %c0_i32 = arith.constant 0 : i32
    %c0_i32_0 = arith.constant 0 : i32
    %c0_i32_1 = arith.constant 0 : i32
    return %c0_i32, %c0_i32_0 : i32, i32
  }
  func.func @transform_2(%arg0: i32) -> (i32, i32) {
    %c0_i32 = arith.constant 0 : i32
    %c0_i32_0 = arith.constant 0 : i32
    %c0_i32_1 = arith.constant 0 : i32
    return %c0_i32, %c0_i32_0 : i32, i32
  }
  func.func @transform_3(%arg0: i32) -> (i32, i32, i32) {
    %c0_i32 = arith.constant 0 : i32
    %c0_i32_0 = arith.constant 0 : i32
    %c0_i32_1 = arith.constant 0 : i32
    return %arg0, %c0_i32, %c0_i32_0 : i32, i32, i32
  }
}

</mosaic_0001>

<bundles_post_ra>
// kernel: tpu_custom_call.1
= control target key start
LH: loop header
LB: loop body
LE: loop exit
PB: predicated region body
PF: predicated region fallthrough
CT: control target
= control target key end

     0   :  { %vm17_vm0 = vcmask 31744   ;;  %v3414_v0 = vmov 0.0   ;;  %s6449_s0 = inlined_call_operand.vmem [shape: f32[2,16,16,4], index: 0, kind: input, shape index: {}]   ;;  %s6450_s1 = inlined_call_operand.vmem [shape: f32[8,36], index: 1, kind: input, shape index: {}]   ;;  %s6451_s2 = inlined_call_operand.vmem [shape: f32[8,1], index: 2, kind: input, shape index: {}]   ;;  %s6452_s3 = inlined_call_operand.hbm [shape: f32[2,8,256], index: 3, kind: output, shape index: {}]  }
   0x1   :  { %18 = vst.msk [vmem:[#allocation2] sm:$0xff] %vm17_vm0, %v3414_v0 }
   0x2   :  { %8 = vsyncpa [#allocation5], 0  ;;  %19 = vst.msk [vmem:[#allocation2 + $0x8] sm:$0xff] %vm17_vm0, %v3414_v0  ;;  %vm272_vm1 = vcmask 1046528   ;;  %s3415_s12 = smov 4   ;;  %vm20_vm2 = vcmask 25600  }
   0x3   :  { %22 = vst.msk [vmem:[#allocation2 + $0x18] sm:$0xff] %vm17_vm0, %v3414_v0  ;;  %v73_v6 = vld [vmem:[%s6449_s0] sm:$0xff]  ;;  %v74_v7 = vld [vmem:[%s6449_s0 + $0x8] sm:$0xff]  ;;  %v75_v23 = vld [vmem:[%s6449_s0 + $0x10] sm:$0xff]  ;;  %vm449_vm3 = vcmask 64544   ;;  %vm482_vm4 = vcmask 1045504  }
   0x4   :  { %23 = vst.msk [vmem:[#allocation2 + $0x20] sm:$0xff] %vm17_vm0, %v3414_v0  ;;  %v3307_v8 = vld [vmem:[%s6449_s0 + $0x100] sm:$0xff]  ;;  %v3308_v20 = vld [vmem:[%s6449_s0 + $0x108] sm:$0xff]  ;;  %v76_v24 = vld [vmem:[%s6449_s0 + $0x18] sm:$0xff]  ;;  %s3416_s29 = smov 8   ;;  %s3417_s30 = smov 12  }
   0x5   :  { %25 = vst.msk [vmem:[#allocation2 + $0x30] sm:$0xff] %vm17_vm0, %v3414_v0  ;;  %v77_v21 = vld [vmem:[%s6449_s0 + $0x20] sm:$0xff]  ;;  %v78_v22 = vld [vmem:[%s6449_s0 + $0x28] sm:$0xff]  ;;  %v79_v25 = vld [vmem:[%s6449_s0 + $0x30] sm:$0xff]  ;;  %vm659_vm5 = vcmask 97344   ;;  %s3418_s10 = smov 16  }
   0x6   :  { %26 = vst.msk [vmem:[#allocation2 + $0x38] sm:$0xff] %vm17_vm0, %v3414_v0  ;;  %v80_v26 = vld [vmem:[%s6449_s0 + $0x38] sm:$0xff]  ;;  %v81_v27 = vld [vmem:[%s6449_s0 + $0x40] sm:$0xff]  ;;  %v82_v28 = vld [vmem:[%s6449_s0 + $0x48] sm:$0xff]  ;;  %vm790_vm6 = vcmask 130144   ;;  %vm925_vm7 = vcmask 162944  }
   0x7   :  { %28 = vst.msk [vmem:[#allocation2 + $0x48] sm:$0xff] %vm17_vm0, %v3414_v0  ;;  %v3311_v29 = vld [vmem:[%s6449_s0 + $0x120] sm:$0xff]  ;;  %v3312_v34 = vld [vmem:[%s6449_s0 + $0x128] sm:$0xff]  ;;  %v3309_v38 = vld [vmem:[%s6449_s0 + $0x110] sm:$0xff]  ;;  %s3420_s14 = smov 24   ;;  %vm1059_vm8 = vcmask 195744  }
   0x8   :  { %v3460_v1 = vld [vmem:[#allocation2] sm:$0xff]  ;;  %29 = vst.msk [vmem:[#allocation2 + $0x50] sm:$0xff] %vm17_vm0, %v3414_v0  ;;  %v3314_v44 = vld [vmem:[%s6449_s0 + $0x138] sm:$0xff]  ;;  %v83_v60 = vld [vmem:[%s6449_s0 + $0x50] sm:$0xff]  ;;  %s3421_s15 = smov 28   ;;  %vm1190_vm9 = vcmask 228544  }
   0x9   :  { %v3464_v2 = vld [vmem:[#allocation2 + $0x8] sm:$0xff]  ;;  %v273_v3 = vrot.slane %v3460_v1, 1  ;;  %31 = vst.msk [vmem:[#allocation2 + $0x60] sm:$0xff] %vm17_vm0, %v3414_v0  ;;  %v3315_v54 = vld [vmem:[%s6449_s0 + $0x140] sm:$0xff]  ;;  %v3310_v59 = vld [vmem:[%s6449_s0 + $0x118] sm:$0xff]  ;;  %s3422_s16 = smov 32  }
   0xa   :  { %v274_v4 = vrot.slane %v3464_v2, 1  ;;  %32 = vst.msk [vmem:[#allocation2 + $0x68] sm:$0xff] %vm17_vm0, %v3414_v0  ;;  %v84_v62 = vld [vmem:[%s6449_s0 + $0x58] sm:$0xff]  ;;  %vm1325_vm10 = vcmask 261344   ;;  %vm1459_vm11 = vcmask 294144   ;;  %vm1529_vm12 = vcmask 293888  }
   0xb   :  { %34 = vst.msk [vmem:[#allocation2 + $0x78] sm:$0xff] %vm17_vm0, %v3414_v0  ;;  %s3424_s21 = smov [#allocation4]   ;;  %s3261_s25 = sshll.u32 %s6452_s3, 4  ;;  %s3262_s25 = int_to_ptr.hbm [resolvable:$true] %s3261_s25 }
   0xc   :  { %v275_v5 = vsel %vm272_vm1, %v273_v3, %v274_v4  ;;  %35 = vst.msk [vmem:[#allocation2 + $0x80] sm:$0xff] %vm17_vm0, %v3414_v0  ;;  %v85_v3 = vld [vmem:[%s6449_s0 + $0x60] sm:$0xff]  ;;  %s3259_s22 = sshll.u32 %s3424_s21, 4  ;;  %s3260_s22 = int_to_ptr.vmem [resolvable:$true] %s3259_s22 }
   0xd   :  { %353 = vrot.lane.b32.xlu0 %v275_v5, %s3415_s12  ;;  %37 = vst.msk [vmem:[#allocation2 + $0x90] sm:$0xff] %vm17_vm0, %v3414_v0  ;;  %v86_v5 = vld [vmem:[%s6449_s0 + $0x68] sm:$0xff] }
   0xe   :  { %38 = vst.msk [vmem:[#allocation2 + $0x98] sm:$0xff] %vm17_vm0, %v3414_v0 }
   0xf   :  { %40 = vst.msk [vmem:[#allocation2 + $0xa8] sm:$0xff] %vm17_vm0, %v3414_v0 }
  0x10   :  { %41 = vst.msk [vmem:[#allocation2 + $0xb0] sm:$0xff] %vm17_vm0, %v3414_v0 }
  0x11   :  { %43 = vst.msk [vmem:[#allocation2 + $0xc0] sm:$0xff] %vm17_vm0, %v3414_v0 }
  0x12   :  { %44 = vst.msk [vmem:[#allocation2 + $0xc8] sm:$0xff] %vm17_vm0, %v3414_v0 }
  0x13   :  { %46 = vst.msk [vmem:[#allocation2 + $0xd8] sm:$0xff] %vm17_vm0, %v3414_v0 }
  0x14   :  { %47 = vst.msk [vmem:[#allocation2 + $0xe0] sm:$0xff] %vm17_vm0, %v3414_v0 }
  0x15   :  { %49 = vst.msk [vmem:[#allocation2 + $0xf0] sm:$0xff] %vm17_vm0, %v3414_v0 }
  0x16   :  { %50 = vst.msk [vmem:[#allocation2 + $0xf8] sm:$0xff] %vm17_vm0, %v3414_v0 }
  0x17   :  { %52 = vst.msk [vmem:[#allocation2 + $0x108] sm:$0xff] %vm17_vm0, %v3414_v0 }
  0x18   :  { %53 = vst.msk [vmem:[#allocation2 + $0x110] sm:$0xff] %vm17_vm0, %v3414_v0 }
  0x19   :  { %55 = vst.msk [vmem:[#allocation2 + $0x120] sm:$0xff] %vm17_vm0, %v3414_v0 }
  0x1a   :  { %56 = vst.msk [vmem:[#allocation2 + $0x128] sm:$0xff] %vm17_vm0, %v3414_v0 }
  0x1b   :  { %58 = vst.msk [vmem:[#allocation2 + $0x138] sm:$0xff] %vm17_vm0, %v3414_v0 }
  0x1c   :  { %59 = vst.msk [vmem:[#allocation2 + $0x140] sm:$0xff] %vm17_vm0, %v3414_v0 }
  0x1d   :  { %61 = vst.msk [vmem:[#allocation2 + $0x150] sm:$0xff] %vm17_vm0, %v3414_v0 }
  0x1e   :  { %62 = vst.msk [vmem:[#allocation2 + $0x158] sm:$0xff] %vm17_vm0, %v3414_v0 }
  0x1f   :  { %64 = vst.msk [vmem:[#allocation2 + $0x168] sm:$0xff] %vm17_vm0, %v3414_v0 }
  0x20   :  { %65 = vst.msk [vmem:[#allocation2 + $0x170] sm:$0xff] %vm17_vm0, %v3414_v0 }
  0x21   :  { %67 = vst.msk [vmem:[#allocation2 + $0x180] sm:$0xff] %vm17_vm0, %v3414_v0 }
  0x22   :  { %68 = vst.msk [vmem:[#allocation2 + $0x188] sm:$0xff] %vm17_vm0, %v3414_v0 }
  0x23   :  { %70 = vst.msk [vmem:[#allocation2 + $0x198] sm:$0xff] %vm17_vm0, %v3414_v0 }
  0x24   :  { %71 = vst.msk [vmem:[#allocation2 + $0x1a0] sm:$0xff] %vm17_vm0, %v3414_v0 }
  0x25   :  { %192 = vst.msk [vmem:[#allocation3] sm:$0xff] %vm17_vm0, %v3460_v1 }
  0x26   :  { %193 = vst.msk [vmem:[#allocation3 + $0x8] sm:$0xff] %vm17_vm0, %v3464_v2 }
  0x27   :  { %24 = vst.msk [vmem:[#allocation2 + $0x28] sm:$0x3] %vm20_vm2, %v3414_v0 }
  0x28   :  { %106 = vst.msk [vmem:[#allocation2 + $0x19] sm:$0xff] %vm17_vm0, %v73_v6  ;;  %v87_v6 = vld [vmem:[%s6449_s0 + $0x70] sm:$0xff] }
  0x29   :  { %107 = vst.msk [vmem:[#allocation2 + $0x21] sm:$0xff] %vm17_vm0, %v74_v7  ;;  %v88_v7 = vld [vmem:[%s6449_s0 + $0x78] sm:$0xff] }
  0x2a   :  { %21 = vst.msk [vmem:[#allocation2 + $0x10] sm:$0x3] %vm20_vm2, %v3414_v0 }
  0x2b   :  { %27 = vst.msk [vmem:[#allocation2 + $0x40] sm:$0x3] %vm20_vm2, %v3414_v0 }
  0x2c   :  { %30 = vst.msk [vmem:[#allocation2 + $0x58] sm:$0x3] %vm20_vm2, %v3414_v0 }
  0x2d   :  { %33 = vst.msk [vmem:[#allocation2 + $0x70] sm:$0x3] %vm20_vm2, %v3414_v0 }
  0x2e   :  { %36 = vst.msk [vmem:[#allocation2 + $0x88] sm:$0x3] %vm20_vm2, %v3414_v0 }
  0x2f   :  { %v3553_v9 = vld [vmem:[#allocation2 + $0x18] sm:$0xff]  ;;  %39 = vst.msk [vmem:[#allocation2 + $0xa0] sm:$0x3] %vm20_vm2, %v3414_v0 }
  0x30   :  { %v3557_v10 = vld [vmem:[#allocation2 + $0x20] sm:$0xff]  ;;  %v278_v11 = vrot.slane %v3553_v9, 1  ;;  %42 = vst.msk [vmem:[#allocation2 + $0xb8] sm:$0x3] %vm20_vm2, %v3414_v0  ;;  %v3569_v15 = vld [vmem:[#allocation2 + $0x28] sm:$0x3] }
  0x31   :  { %v279_v12 = vrot.slane %v3557_v10, 1  ;;  %1706 = vst.msk [vmem:[#allocation2 + $0x19] sm:$0xff] %vm17_vm0, %v3307_v8  ;;  %v3564_v13 = vld [vmem:[#allocation2 + $0x10] sm:$0x3]  ;;  %v281_v18 = vrot.slane %v3569_v15, 1 }
  0x32   :  { %45 = vst.msk [vmem:[#allocation2 + $0xd0] sm:$0x3] %vm20_vm2, %v3414_v0  ;;  %v276_v14 = vrot.slane %v3564_v13, 1  ;;  %v3317_v8 = vld [vmem:[%s6449_s0 + $0x150] sm:$0xff] }
  0x33   :  { %v3572_v16 = vsel %vm272_vm1, %v278_v11, %v279_v12  ;;  %48 = vst.msk [vmem:[#allocation2 + $0xe8] sm:$0x3] %vm20_vm2, %v3414_v0  ;;  %v3594_v19 = vsel %vm272_vm1, %v279_v12, %v281_v18 }
  0x34   :  { %357 = vrot.lane.b32.xlu1 %v3572_v16, %s3415_s12  ;;  %51 = vst.msk [vmem:[#allocation2 + $0x100] sm:$0x3] %vm20_vm2, %v3414_v0  ;;  %v277_v17 = vsel %vm272_vm1, %v274_v4, %v276_v14 }
  0x35   :  { %54 = vst.msk [vmem:[#allocation2 + $0x118] sm:$0x3] %vm20_vm2, %v3414_v0  ;;  %355 = vrot.lane.b32.xlu0 %v277_v17, %s3415_s12 }
  0x36   :  { %57 = vst.msk [vmem:[#allocation2 + $0x130] sm:$0x3] %vm20_vm2, %v3414_v0 }
  0x37   :  { %60 = vst.msk [vmem:[#allocation2 + $0x148] sm:$0x3] %vm20_vm2, %v3414_v0 }
  0x38   :  { %63 = vst.msk [vmem:[#allocation2 + $0x160] sm:$0x3] %vm20_vm2, %v3414_v0 }
  0x39   :  { %66 = vst.msk [vmem:[#allocation2 + $0x178] sm:$0x3] %vm20_vm2, %v3414_v0 }
  0x3a   :  { %69 = vst.msk [vmem:[#allocation2 + $0x190] sm:$0x3] %vm20_vm2, %v3414_v0 }
  0x3b   :  { %72 = vst.msk [vmem:[#allocation2 + $0x1a8] sm:$0x3] %vm20_vm2, %v3414_v0  ;;  %v3313_v0 = vld [vmem:[%s6449_s0 + $0x130] sm:$0xff] }
  0x3c   :  { %194 = vst.msk [vmem:[#allocation3 + $0x10] sm:$0xff] %vm17_vm0, %v3553_v9  ;;  %359 = vrot.lane.b32.xlu1 %v3594_v19, %s3415_s12 }
  0x3d   :  { %195 = vst.msk [vmem:[#allocation3 + $0x18] sm:$0xff] %vm17_vm0, %v3557_v10 }
  0x3e   :  { %1707 = vst.msk [vmem:[#allocation2 + $0x21] sm:$0xff] %vm17_vm0, %v3308_v20 }
  0x3f   :  { %110 = vst.msk [vmem:[#allocation2 + $0x49] sm:$0xff] %vm17_vm0, %v77_v21  ;;  %v3318_v21 = vld [vmem:[%s6449_s0 + $0x158] sm:$0xff] }
  0x40   :  { %111 = vst.msk [vmem:[#allocation2 + $0x51] sm:$0xff] %vm17_vm0, %v78_v22 }
  0x41   :  { %108 = vst.msk [vmem:[#allocation2 + $0x31] sm:$0xff] %vm17_vm0, %v75_v23 }
  0x42   :  { %109 = vst.msk [vmem:[#allocation2 + $0x39] sm:$0xff] %vm17_vm0, %v76_v24  ;;  %v3316_v24 = vld [vmem:[%s6449_s0 + $0x148] sm:$0xff] }
  0x43   :  { %112 = vst.msk [vmem:[#allocation2 + $0x61] sm:$0xff] %vm17_vm0, %v79_v25  ;;  %v3320_v25 = vld [vmem:[%s6449_s0 + $0x168] sm:$0xff] }
  0x44   :  { %113 = vst.msk [vmem:[#allocation2 + $0x69] sm:$0xff] %vm17_vm0, %v80_v26 }
  0x45   :  { %114 = vst.msk [vmem:[#allocation2 + $0x79] sm:$0xff] %vm17_vm0, %v81_v27 }
  0x46   :  { %v3644_v30 = vld [vmem:[#allocation2 + $0x48] sm:$0xff]  ;;  %115 = vst.msk [vmem:[#allocation2 + $0x81] sm:$0xff] %vm17_vm0, %v82_v28 }
  0x47   :  { %v3647_v31 = vld [vmem:[#allocation2 + $0x50] sm:$0xff]  ;;  %v288_v32 = vrot.slane %v3644_v30, 1  ;;  %198 = vst.msk [vmem:[#allocation3 + $0x30] sm:$0xff] %vm17_vm0, %v3644_v30  ;;  %v3652_v33 = vld [vmem:[#allocation2 + $0x58] sm:$0x3] }
  0x48   :  { %v289_v35 = vrot.slane %v3647_v31, 1  ;;  %1710 = vst.msk [vmem:[#allocation2 + $0x49] sm:$0xff] %vm17_vm0, %v3311_v29  ;;  %v291_v36 = vrot.slane %v3652_v33, 1  ;;  %v3660_v37 = vld [vmem:[#allocation2 + $0x30] sm:$0xff] }
  0x49   :  { %199 = vst.msk [vmem:[#allocation3 + $0x38] sm:$0xff] %vm17_vm0, %v3647_v31  ;;  %v3667_v39 = vld [vmem:[#allocation2 + $0x38] sm:$0xff]  ;;  %v283_v40 = vrot.slane %v3660_v37, 1  ;;  %v3690_v47 = vld [vmem:[#allocation2 + $0x40] sm:$0x3] }
  0x4a   :  { %v3671_v41 = vsel %vm272_vm1, %v288_v32, %v289_v35  ;;  %v3674_v42 = vsel %vm272_vm1, %v289_v35, %v291_v36  ;;  %1711 = vst.msk [vmem:[#allocation2 + $0x51] sm:$0xff] %vm17_vm0, %v3312_v34  ;;  %v284_v43 = vrot.slane %v3667_v39, 1  ;;  %v286_v56 = vrot.slane %v3690_v47, 1  ;;  %v3746_v63 = vld [vmem:[#allocation2 + $0x60] sm:$0xff]  ;;  %v3321_v34 = vld [vmem:[%s6449_s0 + $0x170] sm:$0xff] }
  0x4b   :  { %365 = vrot.lane.b32.xlu0 %v3671_v41, %s3415_s12  ;;  %367 = vrot.lane.b32.xlu1 %v3674_v42, %s3415_s12  ;;  %1708 = vst.msk [vmem:[#allocation2 + $0x31] sm:$0xff] %vm17_vm0, %v3309_v38  ;;  %v3686_v45 = vld [vmem:[#allocation2 + $0x68] sm:$0xff]  ;;  %v3688_v46 = vld [vmem:[#allocation2 + $0x70] sm:$0x3]  ;;  %v293_v4 = vrot.slane %v3746_v63, 1 }
  0x4c   :  { %v3693_v48 = vsel %vm272_vm1, %v283_v40, %v284_v43  ;;  %196 = vst.msk [vmem:[#allocation3 + $0x20] sm:$0xff] %vm17_vm0, %v3660_v37  ;;  %v294_v49 = vrot.slane %v3686_v45, 1  ;;  %v296_v50 = vrot.slane %v3688_v46, 1  ;;  %v3699_v51 = vld [vmem:[#allocation2 + $0x78] sm:$0xff]  ;;  %v3736_v61 = vsel %vm272_vm1, %v284_v43, %v286_v56 }
  0x4d   :  { %361 = vrot.lane.b32.xlu2 %v3693_v48, %s3415_s12  ;;  %197 = vst.msk [vmem:[#allocation3 + $0x28] sm:$0xff] %vm17_vm0, %v3667_v39  ;;  %v3705_v52 = vld [vmem:[#allocation2 + $0x80] sm:$0xff]  ;;  %v298_v53 = vrot.slane %v3699_v51, 1  ;;  %v3783_v14 = vld [vmem:[#allocation2 + $0x88] sm:$0x3] }
  0x4e   :  { %1713 = vst.msk [vmem:[#allocation2 + $0x69] sm:$0xff] %vm17_vm0, %v3314_v44  ;;  %v299_v55 = vrot.slane %v3705_v52, 1  ;;  %v3717_v57 = vsel %vm272_vm1, %v294_v49, %v296_v50  ;;  %v3777_v11 = vsel %vm272_vm1, %v293_v4, %v294_v49  ;;  %v301_v26 = vrot.slane %v3783_v14, 1  ;;  %v89_v50 = vld [vmem:[%s6449_s0 + $0x80] sm:$0xff] }
  0x4f   :  { %201 = vst.msk [vmem:[#allocation3 + $0x48] sm:$0xff] %vm17_vm0, %v3686_v45 }
  0x50   :  { %6628 = vst [vmem:[#allocation7_spill] sm:$0xff] %v3717_v57  ;;  %v3722_v58 = vsel %vm272_vm1, %v298_v53, %v299_v55  ;;  %v3841_v44 = vsel %vm272_vm1, %v299_v55, %v301_v26 }
  0x51   :  { %6629 = vst [vmem:[#allocation8_spill] sm:$0xff] %v3722_v58 }
  0x52   :  { %1714 = vst.msk [vmem:[#allocation2 + $0x79] sm:$0xff] %vm17_vm0, %v3315_v54  ;;  %v90_v54 = vld [vmem:[%s6449_s0 + $0x88] sm:$0xff] }
  0x53   :  { %202 = vst.msk [vmem:[#allocation3 + $0x50] sm:$0xff] %vm17_vm0, %v3699_v51  ;;  %371 = vrot.lane.b32.xlu0 %v3717_v57, %s3415_s12  ;;  %373 = vrot.lane.b32.xlu1 %v3722_v58, %s3415_s12 }
  0x54   :  { %203 = vst.msk [vmem:[#allocation3 + $0x58] sm:$0xff] %vm17_vm0, %v3705_v52 }
  0x55   :  { %1709 = vst.msk [vmem:[#allocation2 + $0x39] sm:$0xff] %vm17_vm0, %v3310_v59  ;;  %363 = vrot.lane.b32.xlu2 %v3736_v61, %s3415_s12  ;;  %v3319_v59 = vld [vmem:[%s6449_s0 + $0x160] sm:$0xff] }
  0x56   :  { %116 = vst.msk [vmem:[#allocation2 + $0x91] sm:$0xff] %vm17_vm0, %v83_v60 }
  0x57   :  { %117 = vst.msk [vmem:[#allocation2 + $0x99] sm:$0xff] %vm17_vm0, %v84_v62  ;;  %v91_v62 = vld [vmem:[%s6449_s0 + $0x90] sm:$0xff] }
  0x58   :  { %1712 = vst.msk [vmem:[#allocation2 + $0x61] sm:$0xff] %vm17_vm0, %v3313_v0  ;;  %v92_v0 = vld [vmem:[%s6449_s0 + $0x98] sm:$0xff] }
  0x59   :  { %200 = vst.msk [vmem:[#allocation3 + $0x40] sm:$0xff] %vm17_vm0, %v3746_v63 }
  0x5a   :  { %118 = vst.msk [vmem:[#allocation2 + $0xa9] sm:$0xff] %vm17_vm0, %v85_v3  ;;  %v93_v3 = vld [vmem:[%s6449_s0 + $0xa0] sm:$0xff] }
  0x5b   :  { %119 = vst.msk [vmem:[#allocation2 + $0xb1] sm:$0xff] %vm17_vm0, %v86_v5  ;;  %v94_v5 = vld [vmem:[%s6449_s0 + $0xa8] sm:$0xff] }
  0x5c   :  { %6630 = vst [vmem:[#allocation9_spill] sm:$0xff] %v3777_v11 }
  0x5d   :  { %120 = vst.msk [vmem:[#allocation2 + $0xc1] sm:$0xff] %vm17_vm0, %v87_v6  ;;  %v3780_v12 = vld [vmem:[#allocation2 + $0x90] sm:$0xff]  ;;  %369 = vrot.lane.b32.xlu2 %v3777_v11, %s3415_s12 }
  0x5e   :  { %121 = vst.msk [vmem:[#allocation2 + $0xc9] sm:$0xff] %vm17_vm0, %v88_v7  ;;  %v3785_v17 = vld [vmem:[#allocation2 + $0x98] sm:$0xff]  ;;  %v303_v18 = vrot.slane %v3780_v12, 1  ;;  %v3790_v20 = vld [vmem:[#allocation2 + $0xa0] sm:$0x3] }
  0x5f   :  { %204 = vst.msk [vmem:[#allocation3 + $0x60] sm:$0xff] %vm17_vm0, %v3780_v12  ;;  %v304_v22 = vrot.slane %v3785_v17, 1  ;;  %v306_v23 = vrot.slane %v3790_v20, 1  ;;  %v3323_v7 = vld [vmem:[%s6449_s0 + $0x180] sm:$0xff] }
  0x60   :  { %1716 = vst.msk [vmem:[#allocation2 + $0x91] sm:$0xff] %vm17_vm0, %v3317_v8 }
  0x61   :  { %205 = vst.msk [vmem:[#allocation3 + $0x68] sm:$0xff] %vm17_vm0, %v3785_v17  ;;  %v3810_v27 = vsel %vm272_vm1, %v303_v18, %v304_v22  ;;  %v3813_v28 = vsel %vm272_vm1, %v304_v22, %v306_v23  ;;  %v3848_v53 = vld [vmem:[#allocation2 + $0xa8] sm:$0xff] }
  0x62   :  { %6631 = vst [vmem:[#allocation10_spill] sm:$0xff] %v3810_v27  ;;  %377 = vrot.lane.b32.xlu0 %v3810_v27, %s3415_s12  ;;  %379 = vrot.lane.b32.xlu1 %v3813_v28, %s3415_s12  ;;  %v3820_v29 = vld [vmem:[#allocation2 + $0xb0] sm:$0xff]  ;;  %v3822_v32 = vld [vmem:[#allocation2 + $0xb8] sm:$0x3]  ;;  %v308_v60 = vrot.slane %v3848_v53, 1  ;;  %v3324_v18 = vld [vmem:[%s6449_s0 + $0x188] sm:$0xff] }
  0x63   :  { %6632 = vst [vmem:[#allocation11_spill] sm:$0xff] %v3813_v28  ;;  %v309_v35 = vrot.slane %v3820_v29, 1  ;;  %v311_v36 = vrot.slane %v3822_v32, 1 }
  0x64   :  { %1717 = vst.msk [vmem:[#allocation2 + $0x99] sm:$0xff] %vm17_vm0, %v3318_v21  ;;  %v3831_v38 = vld [vmem:[#allocation2 + $0xc0] sm:$0xff] }
  0x65   :  { %1715 = vst.msk [vmem:[#allocation2 + $0x81] sm:$0xff] %vm17_vm0, %v3316_v24  ;;  %v3835_v40 = vld [vmem:[#allocation2 + $0xc8] sm:$0xff]  ;;  %v313_v43 = vrot.slane %v3831_v38, 1  ;;  %v3856_v55 = vsel %vm272_vm1, %v309_v35, %v311_v36  ;;  %375 = vrot.lane.b32.xlu2 %v3841_v44, %s3415_s12  ;;  %v3888_v4 = vsel %vm272_vm1, %v308_v60, %v309_v35  ;;  %v3895_v6 = vld [vmem:[#allocation2 + $0xd0] sm:$0x3]  ;;  %v3326_v35 = vld [vmem:[%s6449_s0 + $0x198] sm:$0xff] }
  0x66   :  { %1719 = vst.msk [vmem:[#allocation2 + $0xb1] sm:$0xff] %vm17_vm0, %v3320_v25  ;;  %v314_v49 = vrot.slane %v3835_v40, 1  ;;  %v316_v24 = vrot.slane %v3895_v6, 1 }
  0x67   :  { %207 = vst.msk [vmem:[#allocation3 + $0x78] sm:$0xff] %vm17_vm0, %v3820_v29 }
  0x68   :  { %6633 = vst [vmem:[#allocation12_spill] sm:$0xff] %v3841_v44  ;;  %v3859_v56 = vsel %vm272_vm1, %v313_v43, %v314_v49  ;;  %v3947_v60 = vsel %vm272_vm1, %v314_v49, %v316_v24  ;;  %v96_v24 = vld [vmem:[%s6449_s0 + $0xb8] sm:$0xff] }
  0x69   :  { %1720 = vst.msk [vmem:[#allocation2 + $0xc1] sm:$0xff] %vm17_vm0, %v3321_v34  ;;  %v3322_v34 = vld [vmem:[%s6449_s0 + $0x178] sm:$0xff] }
  0x6a   :  { %208 = vst.msk [vmem:[#allocation3 + $0x80] sm:$0xff] %vm17_vm0, %v3831_v38  ;;  %383 = vrot.lane.b32.xlu0 %v3856_v55, %s3415_s12  ;;  %385 = vrot.lane.b32.xlu1 %v3859_v56, %s3415_s12 }
  0x6b   :  { %6634 = vst [vmem:[#allocation13_spill] sm:$0xff] %v3856_v55 }
  0x6c   :  { %6635 = vst [vmem:[#allocation14_spill] sm:$0xff] %v3859_v56 }
  0x6d   :  { %209 = vst.msk [vmem:[#allocation3 + $0x88] sm:$0xff] %vm17_vm0, %v3835_v40  ;;  %381 = vrot.lane.b32.xlu2 %v3888_v4, %s3415_s12 }
  0x6e   :  { %122 = vst.msk [vmem:[#allocation2 + $0xd9] sm:$0xff] %vm17_vm0, %v89_v50 }
  0x6f   :  { %123 = vst.msk [vmem:[#allocation2 + $0xe1] sm:$0xff] %vm17_vm0, %v90_v54 }
  0x70   :  { %1718 = vst.msk [vmem:[#allocation2 + $0xa9] sm:$0xff] %vm17_vm0, %v3319_v59  ;;  %v3327_v59 = vld [vmem:[%s6449_s0 + $0x1a0] sm:$0xff] }
  0x71   :  { %206 = vst.msk [vmem:[#allocation3 + $0x70] sm:$0xff] %vm17_vm0, %v3848_v53 }
  0x72   :  { %6636 = vst [vmem:[#allocation15_spill] sm:$0xff] %v3888_v4 }
  0x73   :  { %124 = vst.msk [vmem:[#allocation2 + $0xf1] sm:$0xff] %vm17_vm0, %v91_v62 }
  0x74   :  { %125 = vst.msk [vmem:[#allocation2 + $0xf9] sm:$0xff] %vm17_vm0, %v92_v0 }
  0x75   :  { %126 = vst.msk [vmem:[#allocation2 + $0x109] sm:$0xff] %vm17_vm0, %v93_v3  ;;  %v3901_v8 = vld [vmem:[#allocation2 + $0xd8] sm:$0xff]  ;;  %387 = vrot.lane.b32.xlu2 %v3947_v60, %s3415_s12 }
  0x76   :  { %127 = vst.msk [vmem:[#allocation2 + $0x111] sm:$0xff] %vm17_vm0, %v94_v5  ;;  %v3909_v21 = vld [vmem:[#allocation2 + $0xe0] sm:$0xff]  ;;  %v318_v22 = vrot.slane %v3901_v8, 1  ;;  %v3914_v23 = vld [vmem:[#allocation2 + $0xe8] sm:$0x3] }
  0x77   :  { %210 = vst.msk [vmem:[#allocation3 + $0x90] sm:$0xff] %vm17_vm0, %v3901_v8  ;;  %v319_v25 = vrot.slane %v3909_v21, 1  ;;  %v321_v26 = vrot.slane %v3914_v23, 1 }
  0x78   :  { %1722 = vst.msk [vmem:[#allocation2 + $0xd9] sm:$0xff] %vm17_vm0, %v3323_v7 }
  0x79   :  { %211 = vst.msk [vmem:[#allocation3 + $0x98] sm:$0xff] %vm17_vm0, %v3909_v21  ;;  %v3929_v36 = vsel %vm272_vm1, %v318_v22, %v319_v25  ;;  %v3932_v43 = vsel %vm272_vm1, %v319_v25, %v321_v26  ;;  %v95_v22 = vld [vmem:[%s6449_s0 + $0xb0] sm:$0xff] }
  0x7a   :  { %6637 = vst [vmem:[#allocation16_spill] sm:$0xff] %v3929_v36  ;;  %389 = vrot.lane.b32.xlu0 %v3929_v36, %s3415_s12  ;;  %391 = vrot.lane.b32.xlu1 %v3932_v43, %s3415_s12  ;;  %v3955_v5 = vld [vmem:[#allocation2 + $0xf0] sm:$0xff]  ;;  %v3332_v36 = vld [vmem:[%s6449_s0 + $0x1c8] sm:$0xff] }
  0x7b   :  { %6638 = vst [vmem:[#allocation17_spill] sm:$0xff] %v3932_v43  ;;  %v3939_v50 = vld [vmem:[#allocation2 + $0xf8] sm:$0xff]  ;;  %v3941_v54 = vld [vmem:[#allocation2 + $0x100] sm:$0x3]  ;;  %v323_v25 = vrot.slane %v3955_v5, 1 }
  0x7c   :  { %1723 = vst.msk [vmem:[#allocation2 + $0xe1] sm:$0xff] %vm17_vm0, %v3324_v18  ;;  %v324_v62 = vrot.slane %v3939_v50, 1  ;;  %v326_v0 = vrot.slane %v3941_v54, 1  ;;  %v3953_v3 = vld [vmem:[#allocation2 + $0x108] sm:$0xff] }
  0x7d   :  { %6639 = vst [vmem:[#allocation18_spill] sm:$0xff] %v3947_v60  ;;  %v3959_v7 = vld [vmem:[#allocation2 + $0x110] sm:$0xff]  ;;  %v328_v49 = vrot.slane %v3953_v3, 1 }
  0x7e   :  { %1721 = vst.msk [vmem:[#allocation2 + $0xc9] sm:$0xff] %vm17_vm0, %v3322_v34  ;;  %v329_v18 = vrot.slane %v3959_v7, 1  ;;  %v3976_v26 = vsel %vm272_vm1, %v324_v62, %v326_v0  ;;  %v3996_v0 = vsel %vm272_vm1, %v323_v25, %v324_v62  ;;  %v100_v62 = vld [vmem:[%s6449_s0 + $0xd8] sm:$0xff]  ;;  %v3329_v25 = vld [vmem:[%s6449_s0 + $0x1b0] sm:$0xff] }
  0x7f   :  { %1725 = vst.msk [vmem:[#allocation2 + $0xf9] sm:$0xff] %vm17_vm0, %v3326_v35  ;;  %v3325_v35 = vld [vmem:[%s6449_s0 + $0x190] sm:$0xff]  ;;  %393 = vrot.lane.b32.xlu2 %v3996_v0, %s3415_s12 }
  0x80   :  { %213 = vst.msk [vmem:[#allocation3 + $0xa8] sm:$0xff] %vm17_vm0, %v3939_v50  ;;  %v3979_v34 = vsel %vm272_vm1, %v328_v49, %v329_v18  ;;  %v98_v49 = vld [vmem:[%s6449_s0 + $0xc8] sm:$0xff] }
  0x81   :  { %1726 = vst.msk [vmem:[#allocation2 + $0x109] sm:$0xff] %vm17_vm0, %v3327_v59  ;;  %v97_v59 = vld [vmem:[%s6449_s0 + $0xc0] sm:$0xff] }
  0x82   :  { %214 = vst.msk [vmem:[#allocation3 + $0xb0] sm:$0xff] %vm17_vm0, %v3953_v3  ;;  %395 = vrot.lane.b32.xlu0 %v3976_v26, %s3415_s12  ;;  %397 = vrot.lane.b32.xlu1 %v3979_v34, %s3415_s12 }
  0x83   :  { %6640 = vst [vmem:[#allocation19_spill] sm:$0xff] %v3976_v26 }
  0x84   :  { %6641 = vst [vmem:[#allocation20_spill] sm:$0xff] %v3979_v34 }
  0x85   :  { %215 = vst.msk [vmem:[#allocation3 + $0xb8] sm:$0xff] %vm17_vm0, %v3959_v7 }
  0x86   :  { %128 = vst.msk [vmem:[#allocation2 + $0x121] sm:$0xff] %vm17_vm0, %v95_v22  ;;  %v99_v22 = vld [vmem:[%s6449_s0 + $0xd0] sm:$0xff] }
  0x87   :  { %129 = vst.msk [vmem:[#allocation2 + $0x129] sm:$0xff] %vm17_vm0, %v96_v24  ;;  %v4007_v24 = vld [vmem:[#allocation2 + $0x118] sm:$0x3] }
  0x88   :  { %6642 = vst [vmem:[#allocation21_spill] sm:$0xff] %v3996_v0  ;;  %v3330_v0 = vld [vmem:[%s6449_s0 + $0x1b8] sm:$0xff] }
  0x89   :  { %1724 = vst.msk [vmem:[#allocation2 + $0xf1] sm:$0xff] %vm17_vm0, %v3325_v35  ;;  %v331_v35 = vrot.slane %v4007_v24, 1 }
  0x8a   :  { %212 = vst.msk [vmem:[#allocation3 + $0xa0] sm:$0xff] %vm17_vm0, %v3955_v5 }
  0x8b   :  { %130 = vst.msk [vmem:[#allocation2 + $0x139] sm:$0xff] %vm17_vm0, %v97_v59  ;;  %v4046_v60 = vsel %vm272_vm1, %v329_v18, %v331_v35 }
  0x8c   :  { %131 = vst.msk [vmem:[#allocation2 + $0x141] sm:$0xff] %vm17_vm0, %v98_v49  ;;  %399 = vrot.lane.b32.xlu2 %v4046_v60, %s3415_s12 }
  0x8d   :  { %132 = vst.msk [vmem:[#allocation2 + $0x151] sm:$0xff] %vm17_vm0, %v99_v22  ;;  %v4021_v34 = vld [vmem:[#allocation2 + $0x120] sm:$0xff] }
  0x8e   :  { %133 = vst.msk [vmem:[#allocation2 + $0x159] sm:$0xff] %vm17_vm0, %v100_v62  ;;  %v4024_v59 = vld [vmem:[#allocation2 + $0x128] sm:$0xff]  ;;  %v333_v26 = vrot.slane %v4021_v34, 1  ;;  %v4029_v49 = vld [vmem:[#allocation2 + $0x130] sm:$0x3] }
  0x8f   :  { %216 = vst.msk [vmem:[#allocation3 + $0xc0] sm:$0xff] %vm17_vm0, %v4021_v34  ;;  %v334_v22 = vrot.slane %v4024_v59, 1  ;;  %v336_v43 = vrot.slane %v4029_v49, 1  ;;  %v3328_v62 = vld [vmem:[%s6449_s0 + $0x1a8] sm:$0xff] }
  0x90   :  { %1728 = vst.msk [vmem:[#allocation2 + $0x121] sm:$0xff] %vm17_vm0, %v3329_v25 }
  0x91   :  { %217 = vst.msk [vmem:[#allocation3 + $0xc8] sm:$0xff] %vm17_vm0, %v4024_v59  ;;  %v4049_v56 = vsel %vm272_vm1, %v333_v26, %v334_v22  ;;  %v4052_v25 = vsel %vm272_vm1, %v334_v22, %v336_v43  ;;  %v3333_v26 = vld [vmem:[%s6449_s0 + $0x1d0] sm:$0xff] }
  0x92   :  { %6643 = vst [vmem:[#allocation22_spill] sm:$0xff] %v4046_v60  ;;  %v4055_v55 = vld [vmem:[#allocation2 + $0x138] sm:$0xff]  ;;  %401 = vrot.lane.b32.xlu0 %v4049_v56, %s3415_s12  ;;  %403 = vrot.lane.b32.xlu1 %v4052_v25, %s3415_s12  ;;  %v102_v60 = vld [vmem:[%s6449_s0 + $0xe8] sm:$0xff] }
  0x93   :  { %6644 = vst [vmem:[#allocation23_spill] sm:$0xff] %v4049_v56  ;;  %v4061_v4 = vld [vmem:[#allocation2 + $0x140] sm:$0xff]  ;;  %v4063_v18 = vld [vmem:[#allocation2 + $0x148] sm:$0x3] }
  0x94   :  { %6645 = vst [vmem:[#allocation24_spill] sm:$0xff] %v4052_v25  ;;  %v339_v43 = vrot.slane %v4061_v4, 1  ;;  %v4072_v35 = vld [vmem:[#allocation2 + $0x150] sm:$0xff] }
  0x95   :  { %1729 = vst.msk [vmem:[#allocation2 + $0x129] sm:$0xff] %vm17_vm0, %v3330_v0  ;;  %v341_v0 = vrot.slane %v4063_v18, 1  ;;  %v4078_v22 = vld [vmem:[#allocation2 + $0x158] sm:$0xff]  ;;  %v343_v25 = vrot.slane %v4072_v35, 1  ;;  %v4108_v58 = vld [vmem:[#allocation2 + $0x160] sm:$0x3] }
  0x96   :  { %1727 = vst.msk [vmem:[#allocation2 + $0x111] sm:$0xff] %vm17_vm0, %v3328_v62  ;;  %v338_v62 = vrot.slane %v4055_v55, 1  ;;  %v344_v56 = vrot.slane %v4078_v22, 1 }
  0x97   :  { %1731 = vst.msk [vmem:[#allocation2 + $0x141] sm:$0xff] %vm17_vm0, %v3332_v36  ;;  %v101_v36 = vld [vmem:[%s6449_s0 + $0xe0] sm:$0xff]  ;;  %v4093_v28 = vsel %vm272_vm1, %v339_v43, %v341_v0 }
  0x98   :  { %219 = vst.msk [vmem:[#allocation3 + $0xd8] sm:$0xff] %vm17_vm0, %v4061_v4  ;;  %v4096_v27 = vsel %vm272_vm1, %v343_v25, %v344_v56  ;;  %v4105_v44 = vsel %vm272_vm1, %v338_v62, %v339_v43  ;;  %v3334_v25 = vld [vmem:[%s6449_s0 + $0x1d8] sm:$0xff]  ;;  %v3335_v43 = vld [vmem:[%s6449_s0 + $0x1e0] sm:$0xff] }
  0x99   :  { %1732 = vst.msk [vmem:[#allocation2 + $0x151] sm:$0xff] %vm17_vm0, %v3333_v26  ;;  %v3331_v26 = vld [vmem:[%s6449_s0 + $0x1c0] sm:$0xff]  ;;  %405 = vrot.lane.b32.xlu2 %v4105_v44, %s3415_s12 }
  0x9a   :  { %220 = vst.msk [vmem:[#allocation3 + $0xe0] sm:$0xff] %vm17_vm0, %v4072_v35  ;;  %407 = vrot.lane.b32.xlu0 %v4093_v28, %s3415_s12  ;;  %409 = vrot.lane.b32.xlu1 %v4096_v27, %s3415_s12 }
  0x9b   :  { %6646 = vst [vmem:[#allocation25_spill] sm:$0xff] %v4093_v28 }
  0x9c   :  { %6647 = vst [vmem:[#allocation26_spill] sm:$0xff] %v4096_v27  ;;  %v3336_v27 = vld [vmem:[%s6449_s0 + $0x1e8] sm:$0xff] }
  0x9d   :  { %221 = vst.msk [vmem:[#allocation3 + $0xe8] sm:$0xff] %vm17_vm0, %v4078_v22 }
  0x9e   :  { %134 = vst.msk [vmem:[#allocation2 + $0x169] sm:$0xff] %vm17_vm0, %v101_v36 }
  0x9f   :  { %6648 = vst [vmem:[#allocation27_spill] sm:$0xff] %v4105_v44 }
  0xa0   :  { %135 = vst.msk [vmem:[#allocation2 + $0x171] sm:$0xff] %vm17_vm0, %v102_v60  ;;  %v346_v60 = vrot.slane %v4108_v58, 1 }
  0xa1   :  { %1730 = vst.msk [vmem:[#allocation2 + $0x139] sm:$0xff] %vm17_vm0, %v3331_v26 }
  0xa2   :  { %218 = vst.msk [vmem:[#allocation3 + $0xd0] sm:$0xff] %vm17_vm0, %v4055_v55 }
  0xa3   :  { %1733 = vst.msk [vmem:[#allocation2 + $0x159] sm:$0xff] %vm17_vm0, %v3334_v25  ;;  %v4140_v25 = vsel %vm272_vm1, %v344_v56, %v346_v60  ;;  %v483_v56 = vrot.slane %v3460_v1, 2  ;;  %v354_v60 = vpop.permute.xlu0 %353  ;;  %v491_v1 = vrot.slane %v3569_v15, 2 }
  0xa4   :  { %6649 = vst [vmem:[#allocation28_spill] sm:$0xff] %v4140_v25  ;;  %411 = vrot.lane.b32.xlu2 %v4140_v25, %s3415_s12 }
  0xa5   :  { %v4127_v0 = vld [vmem:[#allocation2 + $0x168] sm:$0xff]  ;;  %450 = vst.msk [vmem:[#allocation3] sm:$0xff] %vm449_vm3, %v354_v60 }
  0xa6   :  { %v348_v36 = vrot.slane %v4127_v0, 1  ;;  %222 = vst.msk [vmem:[#allocation3 + $0xf0] sm:$0xff] %vm17_vm0, %v4127_v0  ;;  %v358_v15 = vpop.permute.xlu1 %357 }
  0xa7   :  { %v4129_v62 = vld [vmem:[#allocation2 + $0x170] sm:$0xff]  ;;  %v4134_v26 = vld [vmem:[#allocation2 + $0x178] sm:$0x3]  ;;  %452 = vst.msk [vmem:[#allocation3 + $0x10] sm:$0xff] %vm449_vm3, %v358_v15 }
  0xa8   :  { %v349_v28 = vrot.slane %v4129_v62, 1  ;;  %1734 = vst.msk [vmem:[#allocation2 + $0x169] sm:$0xff] %vm17_vm0, %v3335_v43  ;;  %v351_v44 = vrot.slane %v4134_v26, 1  ;;  %v484_v43 = vrot.slane %v3464_v2, 2  ;;  %v493_v2 = vrot.slane %v3660_v37, 2 }
  0xa9   :  { %223 = vst.msk [vmem:[#allocation3 + $0xf8] sm:$0xff] %vm17_vm0, %v4129_v62 }
  0xaa   :  { %v4148_v57 = vsel %vm272_vm1, %v348_v36, %v349_v28  ;;  %v4151_v11 = vsel %vm272_vm1, %v349_v28, %v351_v44  ;;  %1735 = vst.msk [vmem:[#allocation2 + $0x171] sm:$0xff] %vm17_vm0, %v3336_v27  ;;  %v486_v36 = vrot.slane %v3564_v13, 2  ;;  %v488_v28 = vrot.slane %v3553_v9, 2 }
  0xab   :  { %6650 = vst [vmem:[#allocation29_spill] sm:$0xff] %v4148_v57  ;;  %413 = vrot.lane.b32.xlu0 %v4148_v57, %s3415_s12  ;;  %415 = vrot.lane.b32.xlu1 %v4151_v11, %s3415_s12  ;;  %v489_v27 = vrot.slane %v3557_v10, 2  ;;  %v485_v44 = vsel %vm482_vm4, %v483_v56, %v484_v43  ;;  %v494_v13 = vrot.slane %v3667_v39, 2  ;;  %v496_v56 = vrot.slane %v3690_v47, 2 }
  0xac   :  { %6651 = vst [vmem:[#allocation30_spill] sm:$0xff] %v4151_v11  ;;  %v487_v57 = vsel %vm482_vm4, %v484_v43, %v486_v36  ;;  %563 = vrot.lane.b32.xlu2 %v485_v44, %s3416_s29  ;;  %v498_v47 = vrot.slane %v3644_v30, 2  ;;  %v504_v44 = vrot.slane %v3686_v45, 2 }
  0xad   :  { %v4169_v11 = vsel %vm482_vm4, %v488_v28, %v489_v27  ;;  %v4180_v60 = vsel %vm482_vm4, %v489_v27, %v491_v1  ;;  %v4183_v43 = vsel %vm482_vm4, %v493_v2, %v494_v13  ;;  %v4186_v36 = vsel %vm482_vm4, %v494_v13, %v496_v56  ;;  %v362_v1 = vpop.permute.xlu2 %361  ;;  %v356_v2 = vpop.permute.xlu0 %355 }
  0xae   :  { %v501_v28 = vrot.slane %v3652_v33, 2  ;;  %v503_v27 = vrot.slane %v3746_v63, 2  ;;  %454 = vst.msk [vmem:[#allocation3 + $0x20] sm:$0xff] %vm449_vm3, %v362_v1  ;;  %v360_v15 = vpop.permute.xlu1 %359  ;;  %v506_v1 = vrot.slane %v3688_v46, 2  ;;  %v513_v46 = vrot.slane %v3780_v12, 2 }
  0xaf   :  { %451 = vst.msk [vmem:[#allocation3 + $0x8] sm:$0xff] %vm449_vm3, %v356_v2 }
  0xb0   :  { %v4209_v33 = vsel %vm482_vm4, %v503_v27, %v504_v44  ;;  %453 = vst.msk [vmem:[#allocation3 + $0x18] sm:$0xff] %vm449_vm3, %v360_v15  ;;  %v4224_v2 = vsel %vm482_vm4, %v504_v44, %v506_v1  ;;  %v516_v44 = vrot.slane %v3790_v20, 2  ;;  %v518_v15 = vrot.slane %v3848_v53, 2 }
  0xb1   :  { %6653 = vst [vmem:[#allocation32_spill] sm:$0xff] %v4209_v33  ;;  %v519_v1 = vrot.slane %v3820_v29, 2  ;;  %v521_v20 = vrot.slane %v3822_v32, 2 }
  0xb2   :  { %6654 = vst [vmem:[#allocation33_spill] sm:$0xff] %v4224_v2 }
  0xb3   :  { %565 = vrot.lane.b32.xlu0 %v487_v57, %s3416_s29  ;;  %567 = vrot.lane.b32.xlu1 %v4169_v11, %s3416_s29  ;;  %v499_v57 = vrot.slane %v3647_v31, 2 }
  0xb4   :  { %569 = vrot.lane.b32.xlu2 %v4180_v60, %s3416_s29 }
  0xb5   :  { %v4203_v13 = vsel %vm482_vm4, %v498_v47, %v499_v57  ;;  %v4206_v56 = vsel %vm482_vm4, %v499_v57, %v501_v28  ;;  %v508_v47 = vrot.slane %v3699_v51, 2  ;;  %v509_v57 = vrot.slane %v3705_v52, 2  ;;  %v364_v27 = vpop.permute.xlu2 %363 }
  0xb6   :  { %6652 = vst [vmem:[#allocation31_spill] sm:$0xff] %v4206_v56  ;;  %v511_v28 = vrot.slane %v3783_v14, 2  ;;  %v514_v14 = vrot.slane %v3785_v17, 2 }
  0xb7   :  { %455 = vst.msk [vmem:[#allocation3 + $0x28] sm:$0xff] %vm449_vm3, %v364_v27  ;;  %v4251_v27 = vsel %vm482_vm4, %v518_v15, %v519_v1 }
  0xb8   :  { %6658 = vst [vmem:[#allocation37_spill] sm:$0xff] %v4251_v27 }
  0xbb   :  { %571 = vrot.lane.b32.xlu0 %v4183_v43, %s3416_s29  ;;  %573 = vrot.lane.b32.xlu1 %v4186_v36, %s3416_s29 }
  0xbc   :  { %575 = vrot.lane.b32.xlu2 %v4203_v13, %s3416_s29 }
  0xc3   :  { %577 = vrot.lane.b32.xlu0 %v4206_v56, %s3416_s29  ;;  %579 = vrot.lane.b32.xlu1 %v4209_v33, %s3416_s29  ;;  %v4227_v56 = vsel %vm482_vm4, %v508_v47, %v509_v57  ;;  %v4230_v33 = vsel %vm482_vm4, %v509_v57, %v511_v28  ;;  %v370_v47 = vpop.permute.xlu2 %369  ;;  %v4245_v57 = vsel %vm482_vm4, %v513_v46, %v514_v14  ;;  %v523_v46 = vrot.slane %v3831_v38, 2 }
  0xc4   :  { %6655 = vst [vmem:[#allocation34_spill] sm:$0xff] %v4227_v56  ;;  %581 = vrot.lane.b32.xlu2 %v4224_v2, %s3416_s29  ;;  %v4248_v28 = vsel %vm482_vm4, %v514_v14, %v516_v44  ;;  %v524_v14 = vrot.slane %v3835_v40, 2  ;;  %v526_v44 = vrot.slane %v3895_v6, 2  ;;  %v528_v6 = vrot.slane %v3901_v8, 2 }
  0xc5   :  { %6656 = vst [vmem:[#allocation35_spill] sm:$0xff] %v4230_v33 }
  0xc6   :  { %458 = vst.msk [vmem:[#allocation3 + $0x40] sm:$0xff] %vm449_vm3, %v370_v47  ;;  %v4267_v47 = vsel %vm482_vm4, %v519_v1, %v521_v20  ;;  %v531_v1 = vrot.slane %v3914_v23, 2  ;;  %v533_v20 = vrot.slane %v3955_v5, 2  ;;  %v536_v23 = vrot.slane %v3941_v54, 2 }
  0xc7   :  { %6657 = vst [vmem:[#allocation36_spill] sm:$0xff] %v4248_v28  ;;  %v543_v54 = vrot.slane %v4021_v34, 2 }
  0xc8   :  { %6659 = vst [vmem:[#allocation38_spill] sm:$0xff] %v4267_v47 }
  0xcb   :  { %583 = vrot.lane.b32.xlu0 %v4227_v56, %s3416_s29  ;;  %585 = vrot.lane.b32.xlu1 %v4230_v33, %s3416_s29  ;;  %v366_v33 = vpop.permute.xlu0 %365  ;;  %v368_v56 = vpop.permute.xlu1 %367 }
  0xcc   :  { %587 = vrot.lane.b32.xlu2 %v4245_v57, %s3416_s29  ;;  %456 = vst.msk [vmem:[#allocation3 + $0x30] sm:$0xff] %vm449_vm3, %v366_v33  ;;  %v376_v15 = vpop.permute.xlu2 %375  ;;  %v4273_v33 = vsel %vm482_vm4, %v524_v14, %v526_v44 }
  0xcd   :  { %457 = vst.msk [vmem:[#allocation3 + $0x38] sm:$0xff] %vm449_vm3, %v368_v56  ;;  %v529_v56 = vrot.slane %v3909_v21, 2 }
  0xce   :  { %461 = vst.msk [vmem:[#allocation3 + $0x58] sm:$0xff] %vm449_vm3, %v376_v15 }
  0xcf   :  { %v4290_v44 = vsel %vm482_vm4, %v528_v6, %v529_v56  ;;  %v4293_v15 = vsel %vm482_vm4, %v529_v56, %v531_v1  ;;  %v539_v6 = vrot.slane %v3959_v7, 2  ;;  %v541_v56 = vrot.slane %v4007_v24, 2 }
  0xd0   :  { %6661 = vst [vmem:[#allocation40_spill] sm:$0xff] %v4290_v44  ;;  %v544_v24 = vrot.slane %v4024_v59, 2 }
  0xd1   :  { %6662 = vst [vmem:[#allocation41_spill] sm:$0xff] %v4293_v15 }
  0xd3   :  { %589 = vrot.lane.b32.xlu0 %v4248_v28, %s3416_s29  ;;  %591 = vrot.lane.b32.xlu1 %v4251_v27, %s3416_s29  ;;  %v4270_v27 = vsel %vm482_vm4, %v523_v46, %v524_v14  ;;  %v372_v32 = vpop.permute.xlu0 %371  ;;  %v374_v28 = vpop.permute.xlu1 %373  ;;  %v534_v46 = vrot.slane %v3939_v50, 2 }
  0xd4   :  { %6660 = vst [vmem:[#allocation39_spill] sm:$0xff] %v4270_v27  ;;  %593 = vrot.lane.b32.xlu2 %v4267_v47, %s3416_s29  ;;  %v382_v14 = vpop.permute.xlu2 %381 }
  0xd5   :  { %459 = vst.msk [vmem:[#allocation3 + $0x48] sm:$0xff] %vm449_vm3, %v372_v32  ;;  %v4296_v32 = vsel %vm482_vm4, %v533_v20, %v534_v46 }
  0xd6   :  { %460 = vst.msk [vmem:[#allocation3 + $0x50] sm:$0xff] %vm449_vm3, %v374_v28  ;;  %v538_v28 = vrot.slane %v3953_v3, 2 }
  0xd7   :  { %464 = vst.msk [vmem:[#allocation3 + $0x70] sm:$0xff] %vm449_vm3, %v382_v14 }
  0xd8   :  { %6663 = vst [vmem:[#allocation42_spill] sm:$0xff] %v4296_v32 }
  0xdb   :  { %595 = vrot.lane.b32.xlu0 %v4270_v27, %s3416_s29  ;;  %597 = vrot.lane.b32.xlu1 %v4273_v33, %s3416_s29  ;;  %v378_v20 = vpop.permute.xlu0 %377  ;;  %v380_v14 = vpop.permute.xlu1 %379 }
  0xdc   :  { %599 = vrot.lane.b32.xlu2 %v4290_v44, %s3416_s29  ;;  %v388_v1 = vpop.permute.xlu2 %387  ;;  %v4310_v44 = vsel %vm482_vm4, %v534_v46, %v536_v23  ;;  %462 = vst.msk [vmem:[#allocation3 + $0x60] sm:$0xff] %vm449_vm3, %v378_v20  ;;  %v546_v46 = vrot.slane %v4029_v49, 2  ;;  %v548_v23 = vrot.slane %v4055_v55, 2  ;;  %v4333_v20 = vsel %vm482_vm4, %v543_v54, %v544_v24 }
  0xdd   :  { %467 = vst.msk [vmem:[#allocation3 + $0x88] sm:$0xff] %vm449_vm3, %v388_v1  ;;  %v551_v49 = vrot.slane %v4063_v18, 2  ;;  %v553_v54 = vrot.slane %v4072_v35, 2 }
  0xde   :  { %463 = vst.msk [vmem:[#allocation3 + $0x68] sm:$0xff] %vm449_vm3, %v380_v14  ;;  %v4336_v14 = vsel %vm482_vm4, %v544_v24, %v546_v46  ;;  %v554_v24 = vrot.slane %v4078_v22, 2  ;;  %v556_v46 = vrot.slane %v4108_v58, 2  ;;  %v558_v58 = vrot.slane %v4127_v0, 2 }
  0xdf   :  { %6666 = vst [vmem:[#allocation45_spill] sm:$0xff] %v4336_v14 }
  0xe3   :  { %601 = vrot.lane.b32.xlu0 %v4293_v15, %s3416_s29  ;;  %603 = vrot.lane.b32.xlu1 %v4296_v32, %s3416_s29  ;;  %v4313_v15 = vsel %vm482_vm4, %v538_v28, %v539_v6  ;;  %v4316_v32 = vsel %vm482_vm4, %v539_v6, %v541_v56  ;;  %v549_v28 = vrot.slane %v4061_v4, 2  ;;  %v384_v56 = vpop.permute.xlu0 %383  ;;  %v386_v1 = vpop.permute.xlu1 %385 }
  0xe4   :  { %6664 = vst [vmem:[#allocation43_spill] sm:$0xff] %v4313_v15  ;;  %605 = vrot.lane.b32.xlu2 %v4310_v44, %s3416_s29  ;;  %v394_v6 = vpop.permute.xlu2 %393 }
  0xe5   :  { %6665 = vst [vmem:[#allocation44_spill] sm:$0xff] %v4316_v32 }
  0xe6   :  { %470 = vst.msk [vmem:[#allocation3 + $0xa0] sm:$0xff] %vm449_vm3, %v394_v6  ;;  %v4355_v6 = vsel %vm482_vm4, %v549_v28, %v551_v49  ;;  %v561_v49 = vrot.slane %v4134_v26, 2 }
  0xe7   :  { %465 = vst.msk [vmem:[#allocation3 + $0x78] sm:$0xff] %vm449_vm3, %v384_v56  ;;  %v4358_v56 = vsel %vm482_vm4, %v553_v54, %v554_v24 }
  0xe8   :  { %466 = vst.msk [vmem:[#allocation3 + $0x80] sm:$0xff] %vm449_vm3, %v386_v1  ;;  %v4361_v1 = vsel %vm482_vm4, %v554_v24, %v556_v46 }
  0xe9   :  { %6668 = vst [vmem:[#allocation47_spill] sm:$0xff] %v4358_v56 }
  0xeb   :  { %607 = vrot.lane.b32.xlu0 %v4313_v15, %s3416_s29  ;;  %609 = vrot.lane.b32.xlu1 %v4316_v32, %s3416_s29  ;;  %v4339_v32 = vsel %vm482_vm4, %v548_v23, %v549_v28  ;;  %v559_v28 = vrot.slane %v4129_v62, 2 }
  0xec   :  { %6667 = vst [vmem:[#allocation46_spill] sm:$0xff] %v4339_v32  ;;  %611 = vrot.lane.b32.xlu2 %v4333_v20, %s3416_s29  ;;  %v400_v23 = vpop.permute.xlu2 %399  ;;  %v392_v18 = vpop.permute.xlu1 %391 }
  0xed   :  { %473 = vst.msk [vmem:[#allocation3 + $0xb8] sm:$0xff] %vm449_vm3, %v400_v23  ;;  %v4379_v24 = vsel %vm482_vm4, %v559_v28, %v561_v49 }
  0xee   :  { %469 = vst.msk [vmem:[#allocation3 + $0x98] sm:$0xff] %vm449_vm3, %v392_v18 }
  0xef   :  { %6669 = vst [vmem:[#allocation48_spill] sm:$0xff] %v4379_v24 }
  0xf3   :  { %613 = vrot.lane.b32.xlu0 %v4336_v14, %s3416_s29  ;;  %615 = vrot.lane.b32.xlu1 %v4339_v32, %s3416_s29  ;;  %v390_v32 = vpop.permute.xlu0 %389 }
  0xf4   :  { %468 = vst.msk [vmem:[#allocation3 + $0x90] sm:$0xff] %vm449_vm3, %v390_v32  ;;  %617 = vrot.lane.b32.xlu2 %v4355_v6, %s3416_s29  ;;  %v406_v54 = vpop.permute.xlu2 %405  ;;  %v4376_v32 = vsel %vm482_vm4, %v558_v58, %v559_v28  ;;  %v398_v23 = vpop.permute.xlu1 %397 }
  0xf5   :  { %476 = vst.msk [vmem:[#allocation3 + $0xd0] sm:$0xff] %vm449_vm3, %v406_v54 }
  0xf6   :  { %472 = vst.msk [vmem:[#allocation3 + $0xb0] sm:$0xff] %vm449_vm3, %v398_v23 }
  0xfb   :  { %619 = vrot.lane.b32.xlu0 %v4358_v56, %s3416_s29  ;;  %621 = vrot.lane.b32.xlu1 %v4361_v1, %s3416_s29  ;;  %v396_v46 = vpop.permute.xlu0 %395 }
  0xfc   :  { %471 = vst.msk [vmem:[#allocation3 + $0xa8] sm:$0xff] %vm449_vm3, %v396_v46  ;;  %623 = vrot.lane.b32.xlu2 %v4376_v32, %s3416_s29 }
  0xfe   :  { %v412_v26 = vpop.permute.xlu2 %411 }
  0xff   :  { %479 = vst.msk [vmem:[#allocation3 + $0xe8] sm:$0xff] %vm449_vm3, %v412_v26 }
 0x103   :  { %625 = vrot.lane.b32.xlu0 %v4379_v24, %s3416_s29  ;;  %694 = vrot.lane.b32.xlu1 %v3553_v9, %s3417_s30 }
 0x104   :  { %696 = vrot.lane.b32.xlu2 %v3557_v10, %s3417_s30  ;;  %v402_v18 = vpop.permute.xlu0 %401  ;;  %v404_v58 = vpop.permute.xlu1 %403 }
 0x105   :  { %474 = vst.msk [vmem:[#allocation3 + $0xc0] sm:$0xff] %vm449_vm3, %v402_v18 }
 0x106   :  { %v564_v9 = vpop.permute.xlu2 %563  ;;  %475 = vst.msk [vmem:[#allocation3 + $0xc8] sm:$0xff] %vm449_vm3, %v404_v58 }
 0x107   :  { %660 = vst.msk [vmem:[#allocation3] sm:$0xff] %vm659_vm5, %v564_v9  ;;  %v103_v9 = vld [vmem:[%s6449_s0 + $0xf0] sm:$0xff] }
 0x108   :  { %136 = vst.msk [vmem:[#allocation2 + $0x181] sm:$0xff] %vm17_vm0, %v103_v9  ;;  %v104_v9 = vld [vmem:[%s6449_s0 + $0xf8] sm:$0xff] }
 0x109   :  { %137 = vst.msk [vmem:[#allocation2 + $0x189] sm:$0xff] %vm17_vm0, %v104_v9 }
 0x10b   :  { %698 = vrot.lane.b32.xlu0 %v3660_v37, %s3417_s30  ;;  %700 = vrot.lane.b32.xlu1 %v3667_v39, %s3417_s30 }
 0x10c   :  { %702 = vrot.lane.b32.xlu2 %v3644_v30, %s3417_s30  ;;  %v408_v10 = vpop.permute.xlu0 %407  ;;  %v410_v28 = vpop.permute.xlu1 %409 }
 0x10d   :  { %477 = vst.msk [vmem:[#allocation3 + $0xd8] sm:$0xff] %vm449_vm3, %v408_v10 }
 0x10e   :  { %v570_v49 = vpop.permute.xlu2 %569  ;;  %478 = vst.msk [vmem:[#allocation3 + $0xe0] sm:$0xff] %vm449_vm3, %v410_v28 }
 0x10f   :  { %663 = vst.msk [vmem:[#allocation3 + $0x18] sm:$0xff] %vm659_vm5, %v570_v49 }
 0x113   :  { %704 = vrot.lane.b32.xlu0 %v3647_v31, %s3417_s30  ;;  %706 = vrot.lane.b32.xlu1 %v3746_v63, %s3417_s30 }
 0x114   :  { %708 = vrot.lane.b32.xlu2 %v3686_v45, %s3417_s30 }
 0x116   :  { %v576_v54 = vpop.permute.xlu2 %575 }
 0x117   :  { %666 = vst.msk [vmem:[#allocation3 + $0x30] sm:$0xff] %vm659_vm5, %v576_v54 }
 0x11b   :  { %710 = vrot.lane.b32.xlu0 %v3699_v51, %s3417_s30  ;;  %712 = vrot.lane.b32.xlu1 %v3705_v52, %s3417_s30 }
 0x11c   :  { %714 = vrot.lane.b32.xlu2 %v3780_v12, %s3417_s30 }
 0x11d   :  { %v414_v46 = vpop.permute.xlu0 %413  ;;  %v416_v23 = vpop.permute.xlu1 %415 }
 0x11e   :  { %480 = vst.msk [vmem:[#allocation3 + $0xf0] sm:$0xff] %vm449_vm3, %v414_v46  ;;  %v582_v26 = vpop.permute.xlu2 %581 }
 0x11f   :  { %481 = vst.msk [vmem:[#allocation3 + $0xf8] sm:$0xff] %vm449_vm3, %v416_v23 }
 0x120   :  { %669 = vst.msk [vmem:[#allocation3 + $0x48] sm:$0xff] %vm659_vm5, %v582_v26 }
 0x123   :  { %716 = vrot.lane.b32.xlu0 %v3785_v17, %s3417_s30  ;;  %718 = vrot.lane.b32.xlu1 %v3848_v53, %s3417_s30 }
 0x124   :  { %720 = vrot.lane.b32.xlu2 %v3820_v29, %s3417_s30 }
 0x125   :  { %v566_v18 = vpop.permute.xlu0 %565  ;;  %v568_v58 = vpop.permute.xlu1 %567 }
 0x126   :  { %661 = vst.msk [vmem:[#allocation3 + $0x8] sm:$0xff] %vm659_vm5, %v566_v18  ;;  %v588_v10 = vpop.permute.xlu2 %587 }
 0x127   :  { %662 = vst.msk [vmem:[#allocation3 + $0x10] sm:$0xff] %vm659_vm5, %v568_v58 }
 0x128   :  { %672 = vst.msk [vmem:[#allocation3 + $0x60] sm:$0xff] %vm659_vm5, %v588_v10 }
 0x12b   :  { %722 = vrot.lane.b32.xlu0 %v3831_v38, %s3417_s30  ;;  %724 = vrot.lane.b32.xlu1 %v3835_v40, %s3417_s30 }
 0x12c   :  { %726 = vrot.lane.b32.xlu2 %v3901_v8, %s3417_s30 }
 0x12d   :  { %v572_v28 = vpop.permute.xlu0 %571  ;;  %v574_v49 = vpop.permute.xlu1 %573 }
 0x12e   :  { %664 = vst.msk [vmem:[#allocation3 + $0x20] sm:$0xff] %vm659_vm5, %v572_v28  ;;  %v594_v54 = vpop.permute.xlu2 %593 }
 0x12f   :  { %665 = vst.msk [vmem:[#allocation3 + $0x28] sm:$0xff] %vm659_vm5, %v574_v49 }
 0x130   :  { %675 = vst.msk [vmem:[#allocation3 + $0x78] sm:$0xff] %vm659_vm5, %v594_v54  ;;  %v4470_v54 = vld [vmem:[#allocation2 + $0x180] sm:$0xff] }
 0x133   :  { %728 = vrot.lane.b32.xlu0 %v3909_v21, %s3417_s30  ;;  %730 = vrot.lane.b32.xlu1 %v3955_v5, %s3417_s30 }
 0x134   :  { %732 = vrot.lane.b32.xlu2 %v3939_v50, %s3417_s30 }
 0x135   :  { %v578_v46 = vpop.permute.xlu0 %577  ;;  %v580_v23 = vpop.permute.xlu1 %579 }
 0x136   :  { %667 = vst.msk [vmem:[#allocation3 + $0x38] sm:$0xff] %vm659_vm5, %v578_v46  ;;  %v600_v26 = vpop.permute.xlu2 %599  ;;  %v4472_v46 = vld [vmem:[#allocation2 + $0x188] sm:$0xff] }
 0x137   :  { %668 = vst.msk [vmem:[#allocation3 + $0x40] sm:$0xff] %vm659_vm5, %v580_v23  ;;  %v3337_v23 = vld [vmem:[%s6449_s0 + $0x1f0] sm:$0xff] }
 0x138   :  { %678 = vst.msk [vmem:[#allocation3 + $0x90] sm:$0xff] %vm659_vm5, %v600_v26 }
 0x139   :  { %1736 = vst.msk [vmem:[#allocation2 + $0x181] sm:$0xff] %vm17_vm0, %v3337_v23 }
 0x13b   :  { %734 = vrot.lane.b32.xlu0 %v3953_v3, %s3417_s30  ;;  %736 = vrot.lane.b32.xlu1 %v3959_v7, %s3417_s30 }
 0x13c   :  { %738 = vrot.lane.b32.xlu2 %v4021_v34, %s3417_s30 }
 0x13d   :  { %v584_v18 = vpop.permute.xlu0 %583  ;;  %v586_v58 = vpop.permute.xlu1 %585 }
 0x13e   :  { %670 = vst.msk [vmem:[#allocation3 + $0x50] sm:$0xff] %vm659_vm5, %v584_v18  ;;  %v606_v10 = vpop.permute.xlu2 %605 }
 0x13f   :  { %671 = vst.msk [vmem:[#allocation3 + $0x58] sm:$0xff] %vm659_vm5, %v586_v58 }
 0x140   :  { %681 = vst.msk [vmem:[#allocation3 + $0xa8] sm:$0xff] %vm659_vm5, %v606_v10 }
 0x143   :  { %740 = vrot.lane.b32.xlu0 %v4024_v59, %s3417_s30  ;;  %742 = vrot.lane.b32.xlu1 %v4055_v55, %s3417_s30 }
 0x144   :  { %744 = vrot.lane.b32.xlu2 %v4061_v4, %s3417_s30 }
 0x145   :  { %v590_v28 = vpop.permute.xlu0 %589  ;;  %v592_v49 = vpop.permute.xlu1 %591 }
 0x146   :  { %673 = vst.msk [vmem:[#allocation3 + $0x68] sm:$0xff] %vm659_vm5, %v590_v28  ;;  %v612_v26 = vpop.permute.xlu2 %611 }
 0x147   :  { %674 = vst.msk [vmem:[#allocation3 + $0x70] sm:$0xff] %vm659_vm5, %v592_v49 }
 0x148   :  { %684 = vst.msk [vmem:[#allocation3 + $0xc0] sm:$0xff] %vm659_vm5, %v612_v26 }
 0x14b   :  { %746 = vrot.lane.b32.xlu0 %v4072_v35, %s3417_s30  ;;  %748 = vrot.lane.b32.xlu1 %v4078_v22, %s3417_s30 }
 0x14c   :  { %750 = vrot.lane.b32.xlu2 %v4127_v0, %s3417_s30 }
 0x14d   :  { %v596_v18 = vpop.permute.xlu0 %595  ;;  %v598_v58 = vpop.permute.xlu1 %597 }
 0x14e   :  { %676 = vst.msk [vmem:[#allocation3 + $0x80] sm:$0xff] %vm659_vm5, %v596_v18  ;;  %v618_v9 = vpop.permute.xlu2 %617 }
 0x14f   :  { %677 = vst.msk [vmem:[#allocation3 + $0x88] sm:$0xff] %vm659_vm5, %v598_v58  ;;  %v6670_v58 = vld [vmem:[#allocation9_spill] sm:$0xff] }
 0x150   :  { %687 = vst.msk [vmem:[#allocation3 + $0xd8] sm:$0xff] %vm659_vm5, %v618_v9  ;;  %v6671_v9 = vld [vmem:[#allocation7_spill] sm:$0xff] }
 0x153   :  { %752 = vrot.lane.b32.xlu0 %v4129_v62, %s3417_s30  ;;  %754 = vrot.lane.b32.xlu1 %v4470_v54, %s3417_s30 }
 0x154   :  { %756 = vrot.lane.b32.xlu2 %v4472_v46, %s3417_s30 }
 0x155   :  { %v602_v10 = vpop.permute.xlu0 %601  ;;  %v604_v28 = vpop.permute.xlu1 %603 }
 0x156   :  { %679 = vst.msk [vmem:[#allocation3 + $0x98] sm:$0xff] %vm659_vm5, %v602_v10  ;;  %v624_v49 = vpop.permute.xlu2 %623 }
 0x157   :  { %680 = vst.msk [vmem:[#allocation3 + $0xa0] sm:$0xff] %vm659_vm5, %v604_v28 }
 0x158   :  { %690 = vst.msk [vmem:[#allocation3 + $0xf0] sm:$0xff] %vm659_vm5, %v624_v49 }
 0x15b   :  { %829 = vrot.lane.b32.xlu0 %v3572_v16, %s3418_s10  ;;  %831 = vrot.lane.b32.xlu1 %v3594_v19, %s3418_s10 }
 0x15c   :  { %833 = vrot.lane.b32.xlu2 %v3693_v48, %s3418_s10 }
 0x15d   :  { %v608_v23 = vpop.permute.xlu0 %607  ;;  %v610_v26 = vpop.permute.xlu1 %609 }
 0x15e   :  { %682 = vst.msk [vmem:[#allocation3 + $0xb0] sm:$0xff] %vm659_vm5, %v608_v23  ;;  %v697_v16 = vpop.permute.xlu2 %696  ;;  %v6672_v23 = vld [vmem:[#allocation8_spill] sm:$0xff] }
 0x15f   :  { %683 = vst.msk [vmem:[#allocation3 + $0xb8] sm:$0xff] %vm659_vm5, %v610_v26  ;;  %v6673_v26 = vld [vmem:[#allocation12_spill] sm:$0xff] }
 0x160   :  { %792 = vst.msk [vmem:[#allocation3 + $0x8] sm:$0xff] %vm790_vm6, %v697_v16  ;;  %v6674_v16 = vld [vmem:[#allocation10_spill] sm:$0xff] }
 0x163   :  { %835 = vrot.lane.b32.xlu0 %v3736_v61, %s3418_s10  ;;  %837 = vrot.lane.b32.xlu1 %v3671_v41, %s3418_s10 }
 0x164   :  { %839 = vrot.lane.b32.xlu2 %v3674_v42, %s3418_s10 }
 0x165   :  { %v614_v19 = vpop.permute.xlu0 %613  ;;  %v616_v18 = vpop.permute.xlu1 %615 }
 0x166   :  { %685 = vst.msk [vmem:[#allocation3 + $0xc8] sm:$0xff] %vm659_vm5, %v614_v19  ;;  %v703_v10 = vpop.permute.xlu2 %702 }
 0x167   :  { %686 = vst.msk [vmem:[#allocation3 + $0xd0] sm:$0xff] %vm659_vm5, %v616_v18 }
 0x168   :  { %795 = vst.msk [vmem:[#allocation3 + $0x20] sm:$0xff] %vm790_vm6, %v703_v10  ;;  %v6675_v10 = vld [vmem:[#allocation11_spill] sm:$0xff] }
 0x16b   :  { %841 = vrot.lane.b32.xlu0 %v6670_v58, %s3418_s10  ;;  %843 = vrot.lane.b32.xlu1 %v6671_v9, %s3418_s10 }
 0x16c   :  { %845 = vrot.lane.b32.xlu2 %v6672_v23, %s3418_s10 }
 0x16d   :  { %v620_v28 = vpop.permute.xlu0 %619  ;;  %v622_v49 = vpop.permute.xlu1 %621 }
 0x16e   :  { %688 = vst.msk [vmem:[#allocation3 + $0xe0] sm:$0xff] %vm659_vm5, %v620_v28  ;;  %v709_v19 = vpop.permute.xlu2 %708  ;;  %v6676_v28 = vld [vmem:[#allocation15_spill] sm:$0xff] }
 0x16f   :  { %689 = vst.msk [vmem:[#allocation3 + $0xe8] sm:$0xff] %vm659_vm5, %v622_v49  ;;  %v6677_v49 = vld [vmem:[#allocation13_spill] sm:$0xff] }
 0x170   :  { %798 = vst.msk [vmem:[#allocation3 + $0x38] sm:$0xff] %vm790_vm6, %v709_v19  ;;  %v6679_v19 = vld [vmem:[#allocation18_spill] sm:$0xff] }
 0x173   :  { %847 = vrot.lane.b32.xlu0 %v6673_v26, %s3418_s10  ;;  %849 = vrot.lane.b32.xlu1 %v6674_v16, %s3418_s10 }
 0x174   :  { %851 = vrot.lane.b32.xlu2 %v6675_v10, %s3418_s10 }
 0x175   :  { %v626_v18 = vpop.permute.xlu0 %625  ;;  %v695_v9 = vpop.permute.xlu1 %694 }
 0x176   :  { %691 = vst.msk [vmem:[#allocation3 + $0xf8] sm:$0xff] %vm659_vm5, %v626_v18  ;;  %v715_v26 = vpop.permute.xlu2 %714  ;;  %v6680_v18 = vld [vmem:[#allocation16_spill] sm:$0xff] }
 0x177   :  { %791 = vst.msk [vmem:[#allocation3] sm:$0xff] %vm790_vm6, %v695_v9  ;;  %v6678_v9 = vld [vmem:[#allocation14_spill] sm:$0xff] }
 0x178   :  { %801 = vst.msk [vmem:[#allocation3 + $0x50] sm:$0xff] %vm790_vm6, %v715_v26  ;;  %v6682_v26 = vld [vmem:[#allocation21_spill] sm:$0xff] }
 0x17b   :  { %853 = vrot.lane.b32.xlu0 %v6676_v28, %s3418_s10  ;;  %855 = vrot.lane.b32.xlu1 %v6677_v49, %s3418_s10 }
 0x17c   :  { %857 = vrot.lane.b32.xlu2 %v6678_v9, %s3418_s10 }
 0x17d   :  { %v699_v16 = vpop.permute.xlu0 %698  ;;  %v701_v23 = vpop.permute.xlu1 %700 }
 0x17e   :  { %793 = vst.msk [vmem:[#allocation3 + $0x10] sm:$0xff] %vm790_vm6, %v699_v16  ;;  %v721_v28 = vpop.permute.xlu2 %720  ;;  %v6683_v16 = vld [vmem:[#allocation19_spill] sm:$0xff] }
 0x17f   :  { %794 = vst.msk [vmem:[#allocation3 + $0x18] sm:$0xff] %vm790_vm6, %v701_v23  ;;  %v6681_v23 = vld [vmem:[#allocation17_spill] sm:$0xff] }
 0x180   :  { %804 = vst.msk [vmem:[#allocation3 + $0x68] sm:$0xff] %vm790_vm6, %v721_v28 }
 0x183   :  { %859 = vrot.lane.b32.xlu0 %v6679_v19, %s3418_s10  ;;  %861 = vrot.lane.b32.xlu1 %v6680_v18, %s3418_s10  ;;  %v4556_v19 = vld [vmem:[#allocation2 + $0x190] sm:$0x3]  ;;  %v3338_v18 = vld [vmem:[%s6449_s0 + $0x1f8] sm:$0xff]  ;;  %s3419_s0 = smov 20  }
 0x184   :  { %863 = vrot.lane.b32.xlu2 %v6681_v23, %s3418_s10  ;;  %1737 = vst.msk [vmem:[#allocation2 + $0x189] sm:$0xff] %vm17_vm0, %v3338_v18  ;;  %v6686_v23 = vld [vmem:[#allocation23_spill] sm:$0xff] }
 0x185   :  { %v705_v49 = vpop.permute.xlu0 %704  ;;  %v707_v10 = vpop.permute.xlu1 %706 }
 0x186   :  { %796 = vst.msk [vmem:[#allocation3 + $0x28] sm:$0xff] %vm790_vm6, %v705_v49  ;;  %v727_v28 = vpop.permute.xlu2 %726 }
 0x187   :  { %797 = vst.msk [vmem:[#allocation3 + $0x30] sm:$0xff] %vm790_vm6, %v707_v10 }
 0x188   :  { %807 = vst.msk [vmem:[#allocation3 + $0x80] sm:$0xff] %vm790_vm6, %v727_v28  ;;  %v6687_v28 = vld [vmem:[#allocation24_spill] sm:$0xff] }
 0x18b   :  { %865 = vrot.lane.b32.xlu0 %v6682_v26, %s3418_s10  ;;  %867 = vrot.lane.b32.xlu1 %v6683_v16, %s3418_s10  ;;  %v6684_v26 = vld [vmem:[#allocation20_spill] sm:$0xff]  ;;  %v6685_v16 = vld [vmem:[#allocation22_spill] sm:$0xff] }
 0x18c   :  { %869 = vrot.lane.b32.xlu2 %v6684_v26, %s3418_s10 }
 0x18d   :  { %v711_v49 = vpop.permute.xlu0 %710  ;;  %v713_v10 = vpop.permute.xlu1 %712 }
 0x18e   :  { %799 = vst.msk [vmem:[#allocation3 + $0x40] sm:$0xff] %vm790_vm6, %v711_v49  ;;  %v733_v9 = vpop.permute.xlu2 %732  ;;  %v6688_v49 = vld [vmem:[#allocation27_spill] sm:$0xff] }
 0x18f   :  { %800 = vst.msk [vmem:[#allocation3 + $0x48] sm:$0xff] %vm790_vm6, %v713_v10  ;;  %v6689_v10 = vld [vmem:[#allocation25_spill] sm:$0xff] }
 0x190   :  { %810 = vst.msk [vmem:[#allocation3 + $0x98] sm:$0xff] %vm790_vm6, %v733_v9  ;;  %v6691_v9 = vld [vmem:[#allocation29_spill] sm:$0xff] }
 0x193   :  { %871 = vrot.lane.b32.xlu0 %v6685_v16, %s3418_s10  ;;  %873 = vrot.lane.b32.xlu1 %v6686_v23, %s3418_s10 }
 0x194   :  { %875 = vrot.lane.b32.xlu2 %v6687_v28, %s3418_s10 }
 0x195   :  { %v717_v58 = vpop.permute.xlu0 %716  ;;  %v719_v18 = vpop.permute.xlu1 %718 }
 0x196   :  { %802 = vst.msk [vmem:[#allocation3 + $0x58] sm:$0xff] %vm790_vm6, %v717_v58  ;;  %v739_v16 = vpop.permute.xlu2 %738  ;;  %v6690_v58 = vld [vmem:[#allocation26_spill] sm:$0xff] }
 0x197   :  { %803 = vst.msk [vmem:[#allocation3 + $0x60] sm:$0xff] %vm790_vm6, %v719_v18  ;;  %v824_v18 = vrot.slane %v4470_v54, 1 }
 0x198   :  { %813 = vst.msk [vmem:[#allocation3 + $0xb0] sm:$0xff] %vm790_vm6, %v739_v16 }
 0x19b   :  { %877 = vrot.lane.b32.xlu0 %v6688_v49, %s3418_s10  ;;  %879 = vrot.lane.b32.xlu1 %v6689_v10, %s3418_s10  ;;  %v825_v10 = vrot.slane %v4472_v46, 1  ;;  %v827_v49 = vrot.slane %v4556_v19, 1 }
 0x19c   :  { %881 = vrot.lane.b32.xlu2 %v6690_v58, %s3418_s10 }
 0x19d   :  { %v723_v23 = vpop.permute.xlu0 %722  ;;  %v725_v26 = vpop.permute.xlu1 %724 }
 0x19e   :  { %805 = vst.msk [vmem:[#allocation3 + $0x70] sm:$0xff] %vm790_vm6, %v723_v23  ;;  %v745_v16 = vpop.permute.xlu2 %744 }
 0x19f   :  { %806 = vst.msk [vmem:[#allocation3 + $0x78] sm:$0xff] %vm790_vm6, %v725_v26  ;;  %v4596_v26 = vsel %vm272_vm1, %v824_v18, %v825_v10 }
 0x1a0   :  { %816 = vst.msk [vmem:[#allocation3 + $0xc8] sm:$0xff] %vm790_vm6, %v745_v16 }
 0x1a3   :  { %883 = vrot.lane.b32.xlu0 %v4140_v25, %s3418_s10  ;;  %885 = vrot.lane.b32.xlu1 %v6691_v9, %s3418_s10  ;;  %v4599_v9 = vsel %vm272_vm1, %v825_v10, %v827_v49  ;;  %v6692_v25 = vld [vmem:[#allocation30_spill] sm:$0xff] }
 0x1a4   :  { %887 = vrot.lane.b32.xlu2 %v6692_v25, %s3418_s10 }
 0x1a5   :  { %v729_v28 = vpop.permute.xlu0 %728  ;;  %v731_v23 = vpop.permute.xlu1 %730 }
 0x1a6   :  { %808 = vst.msk [vmem:[#allocation3 + $0x88] sm:$0xff] %vm790_vm6, %v729_v28  ;;  %v751_v16 = vpop.permute.xlu2 %750 }
 0x1a7   :  { %809 = vst.msk [vmem:[#allocation3 + $0x90] sm:$0xff] %vm790_vm6, %v731_v23 }
 0x1a8   :  { %819 = vst.msk [vmem:[#allocation3 + $0xe0] sm:$0xff] %vm790_vm6, %v751_v16  ;;  %v6694_v16 = vld [vmem:[#allocation32_spill] sm:$0xff] }
 0x1ab   :  { %889 = vrot.lane.b32.xlu0 %v4596_v26, %s3418_s10  ;;  %891 = vrot.lane.b32.xlu1 %v4599_v9, %s3418_s10 }
 0x1ac   :  { %963 = vrot.lane.b32.xlu2 %v4169_v11, %s3419_s0  ;;  %v6693_v11 = vld [vmem:[#allocation31_spill] sm:$0xff] }
 0x1ad   :  { %v735_v58 = vpop.permute.xlu0 %734  ;;  %v737_v28 = vpop.permute.xlu1 %736 }
 0x1ae   :  { %811 = vst.msk [vmem:[#allocation3 + $0xa0] sm:$0xff] %vm790_vm6, %v735_v58  ;;  %v757_v49 = vpop.permute.xlu2 %756 }
 0x1af   :  { %812 = vst.msk [vmem:[#allocation3 + $0xa8] sm:$0xff] %vm790_vm6, %v737_v28  ;;  %v6695_v28 = vld [vmem:[#allocation34_spill] sm:$0xff] }
 0x1b0   :  { %822 = vst.msk [vmem:[#allocation3 + $0xf8] sm:$0xff] %vm790_vm6, %v757_v49 }
 0x1b3   :  { %965 = vrot.lane.b32.xlu0 %v4180_v60, %s3419_s0  ;;  %967 = vrot.lane.b32.xlu1 %v4183_v43, %s3419_s0 }
 0x1b4   :  { %969 = vrot.lane.b32.xlu2 %v4186_v36, %s3419_s0 }
 0x1b5   :  { %v741_v10 = vpop.permute.xlu0 %740  ;;  %v743_v18 = vpop.permute.xlu1 %742 }
 0x1b6   :  { %814 = vst.msk [vmem:[#allocation3 + $0xb8] sm:$0xff] %vm790_vm6, %v741_v10  ;;  %v834_v60 = vpop.permute.xlu2 %833 }
 0x1b7   :  { %815 = vst.msk [vmem:[#allocation3 + $0xc0] sm:$0xff] %vm790_vm6, %v743_v18 }
 0x1b8   :  { %928 = vst.msk [vmem:[#allocation3 + $0x10] sm:$0xff] %vm925_vm7, %v834_v60  ;;  %v6696_v60 = vld [vmem:[#allocation35_spill] sm:$0xff] }
 0x1bb   :  { %971 = vrot.lane.b32.xlu0 %v4203_v13, %s3419_s0  ;;  %973 = vrot.lane.b32.xlu1 %v6693_v11, %s3419_s0 }
 0x1bc   :  { %975 = vrot.lane.b32.xlu2 %v6694_v16, %s3419_s0 }
 0x1bd   :  { %v747_v58 = vpop.permute.xlu0 %746  ;;  %v749_v23 = vpop.permute.xlu1 %748 }
 0x1be   :  { %817 = vst.msk [vmem:[#allocation3 + $0xd0] sm:$0xff] %vm790_vm6, %v747_v58  ;;  %v840_v49 = vpop.permute.xlu2 %839  ;;  %v6697_v58 = vld [vmem:[#allocation36_spill] sm:$0xff] }
 0x1bf   :  { %818 = vst.msk [vmem:[#allocation3 + $0xd8] sm:$0xff] %vm790_vm6, %v749_v23 }
 0x1c0   :  { %931 = vst.msk [vmem:[#allocation3 + $0x28] sm:$0xff] %vm925_vm7, %v840_v49  ;;  %v6698_v49 = vld [vmem:[#allocation37_spill] sm:$0xff] }
 0x1c3   :  { %977 = vrot.lane.b32.xlu0 %v4224_v2, %s3419_s0  ;;  %979 = vrot.lane.b32.xlu1 %v6695_v28, %s3419_s0 }
 0x1c4   :  { %981 = vrot.lane.b32.xlu2 %v6696_v60, %s3419_s0 }
 0x1c5   :  { %v753_v10 = vpop.permute.xlu0 %752  ;;  %v755_v18 = vpop.permute.xlu1 %754 }
 0x1c6   :  { %820 = vst.msk [vmem:[#allocation3 + $0xe8] sm:$0xff] %vm790_vm6, %v753_v10  ;;  %v846_v23 = vpop.permute.xlu2 %845 }
 0x1c7   :  { %821 = vst.msk [vmem:[#allocation3 + $0xf0] sm:$0xff] %vm790_vm6, %v755_v18 }
 0x1c8   :  { %934 = vst.msk [vmem:[#allocation3 + $0x40] sm:$0xff] %vm925_vm7, %v846_v23 }
 0x1cb   :  { %983 = vrot.lane.b32.xlu0 %v4245_v57, %s3419_s0  ;;  %985 = vrot.lane.b32.xlu1 %v6697_v58, %s3419_s0 }
 0x1cc   :  { %987 = vrot.lane.b32.xlu2 %v6698_v49, %s3419_s0 }
 0x1cd   :  { %v830_v28 = vpop.permute.xlu0 %829  ;;  %v832_v2 = vpop.permute.xlu1 %831 }
 0x1ce   :  { %926 = vst.msk [vmem:[#allocation3] sm:$0xff] %vm925_vm7, %v830_v28  ;;  %v852_v10 = vpop.permute.xlu2 %851  ;;  %v6700_v28 = vld [vmem:[#allocation41_spill] sm:$0xff] }
 0x1cf   :  { %927 = vst.msk [vmem:[#allocation3 + $0x8] sm:$0xff] %vm925_vm7, %v832_v2  ;;  %v6699_v2 = vld [vmem:[#allocation40_spill] sm:$0xff] }
 0x1d0   :  { %937 = vst.msk [vmem:[#allocation3 + $0x58] sm:$0xff] %vm925_vm7, %v852_v10 }
 0x1d3   :  { %989 = vrot.lane.b32.xlu0 %v4267_v47, %s3419_s0  ;;  %991 = vrot.lane.b32.xlu1 %v4270_v27, %s3419_s0 }
 0x1d4   :  { %993 = vrot.lane.b32.xlu2 %v4273_v33, %s3419_s0 }
 0x1d5   :  { %v836_v18 = vpop.permute.xlu0 %835  ;;  %v838_v58 = vpop.permute.xlu1 %837 }
 0x1d6   :  { %929 = vst.msk [vmem:[#allocation3 + $0x18] sm:$0xff] %vm925_vm7, %v836_v18  ;;  %v858_v23 = vpop.permute.xlu2 %857 }
 0x1d7   :  { %930 = vst.msk [vmem:[#allocation3 + $0x20] sm:$0xff] %vm925_vm7, %v838_v58  ;;  %v6701_v58 = vld [vmem:[#allocation42_spill] sm:$0xff] }
 0x1d8   :  { %940 = vst.msk [vmem:[#allocation3 + $0x70] sm:$0xff] %vm925_vm7, %v858_v23 }
 0x1db   :  { %995 = vrot.lane.b32.xlu0 %v6699_v2, %s3419_s0  ;;  %997 = vrot.lane.b32.xlu1 %v6700_v28, %s3419_s0 }
 0x1dc   :  { %999 = vrot.lane.b32.xlu2 %v6701_v58, %s3419_s0 }
 0x1dd   :  { %v842_v27 = vpop.permute.xlu0 %841  ;;  %v844_v47 = vpop.permute.xlu1 %843 }
 0x1de   :  { %932 = vst.msk [vmem:[#allocation3 + $0x30] sm:$0xff] %vm925_vm7, %v842_v27  ;;  %v864_v10 = vpop.permute.xlu2 %863  ;;  %v6702_v27 = vld [vmem:[#allocation44_spill] sm:$0xff] }
 0x1df   :  { %933 = vst.msk [vmem:[#allocation3 + $0x38] sm:$0xff] %vm925_vm7, %v844_v47 }
 0x1e0   :  { %943 = vst.msk [vmem:[#allocation3 + $0x88] sm:$0xff] %vm925_vm7, %v864_v10 }
 0x1e3   :  { %1001 = vrot.lane.b32.xlu0 %v4310_v44, %s3419_s0  ;;  %1003 = vrot.lane.b32.xlu1 %v4313_v15, %s3419_s0 }
 0x1e4   :  { %1005 = vrot.lane.b32.xlu2 %v6702_v27, %s3419_s0 }
 0x1e5   :  { %v848_v18 = vpop.permute.xlu0 %847  ;;  %v850_v28 = vpop.permute.xlu1 %849 }
 0x1e6   :  { %935 = vst.msk [vmem:[#allocation3 + $0x48] sm:$0xff] %vm925_vm7, %v848_v18  ;;  %v870_v47 = vpop.permute.xlu2 %869 }
 0x1e7   :  { %936 = vst.msk [vmem:[#allocation3 + $0x50] sm:$0xff] %vm925_vm7, %v850_v28  ;;  %v6703_v28 = vld [vmem:[#allocation46_spill] sm:$0xff] }
 0x1e8   :  { %946 = vst.msk [vmem:[#allocation3 + $0xa0] sm:$0xff] %vm925_vm7, %v870_v47  ;;  %v959_v47 = vrot.slane %v4472_v46, 2 }
 0x1eb   :  { %1007 = vrot.lane.b32.xlu0 %v4333_v20, %s3419_s0  ;;  %1009 = vrot.lane.b32.xlu1 %v4336_v14, %s3419_s0 }
 0x1ec   :  { %1011 = vrot.lane.b32.xlu2 %v6703_v28, %s3419_s0 }
 0x1ed   :  { %v854_v23 = vpop.permute.xlu0 %853  ;;  %v856_v15 = vpop.permute.xlu1 %855 }
 0x1ee   :  { %938 = vst.msk [vmem:[#allocation3 + $0x60] sm:$0xff] %vm925_vm7, %v854_v23  ;;  %v876_v10 = vpop.permute.xlu2 %875  ;;  %v961_v23 = vrot.slane %v4556_v19, 2 }
 0x1ef   :  { %939 = vst.msk [vmem:[#allocation3 + $0x68] sm:$0xff] %vm925_vm7, %v856_v15  ;;  %v958_v15 = vrot.slane %v4470_v54, 2 }
 0x1f0   :  { %949 = vst.msk [vmem:[#allocation3 + $0xb8] sm:$0xff] %vm925_vm7, %v876_v10 }
 0x1f3   :  { %1013 = vrot.lane.b32.xlu0 %v4355_v6, %s3419_s0  ;;  %1015 = vrot.lane.b32.xlu1 %v4358_v56, %s3419_s0 }
 0x1f4   :  { %1017 = vrot.lane.b32.xlu2 %v4361_v1, %s3419_s0 }
 0x1f5   :  { %v860_v18 = vpop.permute.xlu0 %859  ;;  %v862_v14 = vpop.permute.xlu1 %861 }
 0x1f6   :  { %941 = vst.msk [vmem:[#allocation3 + $0x78] sm:$0xff] %vm925_vm7, %v860_v18  ;;  %v882_v10 = vpop.permute.xlu2 %881 }
 0x1f7   :  { %942 = vst.msk [vmem:[#allocation3 + $0x80] sm:$0xff] %vm925_vm7, %v862_v14  ;;  %v4704_v14 = vsel %vm482_vm4, %v958_v15, %v959_v47 }
 0x1f8   :  { %952 = vst.msk [vmem:[#allocation3 + $0xd0] sm:$0xff] %vm925_vm7, %v882_v10 }
 0x1fb   :  { %1019 = vrot.lane.b32.xlu0 %v4376_v32, %s3419_s0  ;;  %1021 = vrot.lane.b32.xlu1 %v4379_v24, %s3419_s0  ;;  %v4707_v24 = vsel %vm482_vm4, %v959_v47, %v961_v23  ;;  %v4799_v23 = vld [vmem:[#allocation2 + $0x198] sm:$0xff] }
 0x1fc   :  { %1023 = vrot.lane.b32.xlu2 %v4704_v14, %s3419_s0 }
 0x1fd   :  { %v866_v56 = vpop.permute.xlu0 %865  ;;  %v868_v18 = vpop.permute.xlu1 %867 }
 0x1fe   :  { %944 = vst.msk [vmem:[#allocation3 + $0x90] sm:$0xff] %vm925_vm7, %v866_v56  ;;  %v888_v19 = vpop.permute.xlu2 %887 }
 0x1ff   :  { %945 = vst.msk [vmem:[#allocation3 + $0x98] sm:$0xff] %vm925_vm7, %v868_v18  ;;  %v4810_v18 = vld [vmem:[#allocation2 + $0x1a0] sm:$0xff] }
 0x200   :  { %955 = vst.msk [vmem:[#allocation3 + $0xe8] sm:$0xff] %vm925_vm7, %v888_v19 }
 0x203   :  { %1025 = vrot.lane.b32.xlu0 %v4707_v24, %s3419_s0  ;;  %1094 = vrot.lane.b32.xlu1 %v3660_v37, %s3420_s14 }
 0x204   :  { %1096 = vrot.lane.b32.xlu2 %v3667_v39, %s3420_s14 }
 0x205   :  { %v872_v56 = vpop.permute.xlu0 %871  ;;  %v874_v10 = vpop.permute.xlu1 %873 }
 0x206   :  { %947 = vst.msk [vmem:[#allocation3 + $0xa8] sm:$0xff] %vm925_vm7, %v872_v56  ;;  %v964_v37 = vpop.permute.xlu2 %963 }
 0x207   :  { %948 = vst.msk [vmem:[#allocation3 + $0xb0] sm:$0xff] %vm925_vm7, %v874_v10 }
 0x208   :  { %1060 = vst.msk [vmem:[#allocation3] sm:$0xff] %vm1059_vm8, %v964_v37  ;;  %v6705_v37 = vld [vmem:[#allocation7_spill] sm:$0xff] }
 0x20b   :  { %1098 = vrot.lane.b32.xlu0 %v3644_v30, %s3420_s14  ;;  %1100 = vrot.lane.b32.xlu1 %v3647_v31, %s3420_s14 }
 0x20c   :  { %1102 = vrot.lane.b32.xlu2 %v3746_v63, %s3420_s14 }
 0x20d   :  { %v878_v15 = vpop.permute.xlu0 %877  ;;  %v880_v47 = vpop.permute.xlu1 %879 }
 0x20e   :  { %950 = vst.msk [vmem:[#allocation3 + $0xc0] sm:$0xff] %vm925_vm7, %v878_v15  ;;  %v970_v30 = vpop.permute.xlu2 %969 }
 0x20f   :  { %951 = vst.msk [vmem:[#allocation3 + $0xc8] sm:$0xff] %vm925_vm7, %v880_v47 }
 0x210   :  { %1063 = vst.msk [vmem:[#allocation3 + $0x18] sm:$0xff] %vm1059_vm8, %v970_v30 }
 0x213   :  { %1104 = vrot.lane.b32.xlu0 %v3686_v45, %s3420_s14  ;;  %1106 = vrot.lane.b32.xlu1 %v3699_v51, %s3420_s14 }
 0x214   :  { %1108 = vrot.lane.b32.xlu2 %v3705_v52, %s3420_s14 }
 0x215   :  { %v884_v31 = vpop.permute.xlu0 %883  ;;  %v886_v39 = vpop.permute.xlu1 %885 }
 0x216   :  { %953 = vst.msk [vmem:[#allocation3 + $0xd8] sm:$0xff] %vm925_vm7, %v884_v31  ;;  %v976_v45 = vpop.permute.xlu2 %975  ;;  %v6708_v31 = vld [vmem:[#allocation10_spill] sm:$0xff] }
 0x217   :  { %954 = vst.msk [vmem:[#allocation3 + $0xe0] sm:$0xff] %vm925_vm7, %v886_v39  ;;  %v6709_v39 = vld [vmem:[#allocation11_spill] sm:$0xff] }
 0x218   :  { %1066 = vst.msk [vmem:[#allocation3 + $0x30] sm:$0xff] %vm1059_vm8, %v976_v45  ;;  %v6710_v45 = vld [vmem:[#allocation15_spill] sm:$0xff] }
 0x21b   :  { %1110 = vrot.lane.b32.xlu0 %v3780_v12, %s3420_s14  ;;  %1112 = vrot.lane.b32.xlu1 %v3785_v17, %s3420_s14 }
 0x21c   :  { %1114 = vrot.lane.b32.xlu2 %v3848_v53, %s3420_s14 }
 0x21d   :  { %v890_v51 = vpop.permute.xlu0 %889  ;;  %v892_v63 = vpop.permute.xlu1 %891 }
 0x21e   :  { %956 = vst.msk [vmem:[#allocation3 + $0xf0] sm:$0xff] %vm925_vm7, %v890_v51  ;;  %v982_v52 = vpop.permute.xlu2 %981 }
 0x21f   :  { %957 = vst.msk [vmem:[#allocation3 + $0xf8] sm:$0xff] %vm925_vm7, %v892_v63 }
 0x220   :  { %1069 = vst.msk [vmem:[#allocation3 + $0x48] sm:$0xff] %vm1059_vm8, %v982_v52 }
 0x223   :  { %1116 = vrot.lane.b32.xlu0 %v3820_v29, %s3420_s14  ;;  %1118 = vrot.lane.b32.xlu1 %v3831_v38, %s3420_s14 }
 0x224   :  { %1120 = vrot.lane.b32.xlu2 %v3835_v40, %s3420_s14 }
 0x225   :  { %v966_v12 = vpop.permute.xlu0 %965  ;;  %v968_v17 = vpop.permute.xlu1 %967 }
 0x226   :  { %1061 = vst.msk [vmem:[#allocation3 + $0x8] sm:$0xff] %vm1059_vm8, %v966_v12  ;;  %v988_v29 = vpop.permute.xlu2 %987  ;;  %v6711_v12 = vld [vmem:[#allocation13_spill] sm:$0xff] }
 0x227   :  { %1062 = vst.msk [vmem:[#allocation3 + $0x10] sm:$0xff] %vm1059_vm8, %v968_v17  ;;  %v6712_v17 = vld [vmem:[#allocation14_spill] sm:$0xff] }
 0x228   :  { %1072 = vst.msk [vmem:[#allocation3 + $0x60] sm:$0xff] %vm1059_vm8, %v988_v29  ;;  %v6713_v29 = vld [vmem:[#allocation18_spill] sm:$0xff] }
 0x22b   :  { %1122 = vrot.lane.b32.xlu0 %v3901_v8, %s3420_s14  ;;  %1124 = vrot.lane.b32.xlu1 %v3909_v21, %s3420_s14 }
 0x22c   :  { %1126 = vrot.lane.b32.xlu2 %v3955_v5, %s3420_s14 }
 0x22d   :  { %v972_v38 = vpop.permute.xlu0 %971  ;;  %v974_v53 = vpop.permute.xlu1 %973 }
 0x22e   :  { %1064 = vst.msk [vmem:[#allocation3 + $0x20] sm:$0xff] %vm1059_vm8, %v972_v38  ;;  %v994_v40 = vpop.permute.xlu2 %993 }
 0x22f   :  { %1065 = vst.msk [vmem:[#allocation3 + $0x28] sm:$0xff] %vm1059_vm8, %v974_v53 }
 0x230   :  { %1075 = vst.msk [vmem:[#allocation3 + $0x78] sm:$0xff] %vm1059_vm8, %v994_v40 }
 0x233   :  { %1128 = vrot.lane.b32.xlu0 %v3939_v50, %s3420_s14  ;;  %1130 = vrot.lane.b32.xlu1 %v3953_v3, %s3420_s14 }
 0x234   :  { %1132 = vrot.lane.b32.xlu2 %v3959_v7, %s3420_s14 }
 0x235   :  { %v978_v8 = vpop.permute.xlu0 %977  ;;  %v980_v21 = vpop.permute.xlu1 %979 }
 0x236   :  { %1067 = vst.msk [vmem:[#allocation3 + $0x38] sm:$0xff] %vm1059_vm8, %v978_v8  ;;  %v1000_v50 = vpop.permute.xlu2 %999  ;;  %v6714_v8 = vld [vmem:[#allocation16_spill] sm:$0xff] }
 0x237   :  { %1068 = vst.msk [vmem:[#allocation3 + $0x40] sm:$0xff] %vm1059_vm8, %v980_v21  ;;  %v1224_v21 = vrot.slane %v4799_v23, 1 }
 0x238   :  { %1078 = vst.msk [vmem:[#allocation3 + $0x90] sm:$0xff] %vm1059_vm8, %v1000_v50  ;;  %v1225_v50 = vrot.slane %v4810_v18, 1 }
 0x23b   :  { %1134 = vrot.lane.b32.xlu0 %v4021_v34, %s3420_s14  ;;  %1136 = vrot.lane.b32.xlu1 %v4024_v59, %s3420_s14 }
 0x23c   :  { %1138 = vrot.lane.b32.xlu2 %v4055_v55, %s3420_s14 }
 0x23d   :  { %v984_v3 = vpop.permute.xlu0 %983  ;;  %v986_v5 = vpop.permute.xlu1 %985 }
 0x23e   :  { %1070 = vst.msk [vmem:[#allocation3 + $0x50] sm:$0xff] %vm1059_vm8, %v984_v3  ;;  %v1006_v7 = vpop.permute.xlu2 %1005  ;;  %v6715_v3 = vld [vmem:[#allocation17_spill] sm:$0xff] }
 0x23f   :  { %1071 = vst.msk [vmem:[#allocation3 + $0x58] sm:$0xff] %vm1059_vm8, %v986_v5  ;;  %v6716_v5 = vld [vmem:[#allocation21_spill] sm:$0xff] }
 0x240   :  { %1081 = vst.msk [vmem:[#allocation3 + $0xa8] sm:$0xff] %vm1059_vm8, %v1006_v7 }
 0x243   :  { %1140 = vrot.lane.b32.xlu0 %v4061_v4, %s3420_s14  ;;  %1142 = vrot.lane.b32.xlu1 %v4072_v35, %s3420_s14 }
 0x244   :  { %1144 = vrot.lane.b32.xlu2 %v4078_v22, %s3420_s14 }
 0x245   :  { %v990_v34 = vpop.permute.xlu0 %989  ;;  %v992_v59 = vpop.permute.xlu1 %991 }
 0x246   :  { %1073 = vst.msk [vmem:[#allocation3 + $0x68] sm:$0xff] %vm1059_vm8, %v990_v34  ;;  %v1012_v55 = vpop.permute.xlu2 %1011 }
 0x247   :  { %1074 = vst.msk [vmem:[#allocation3 + $0x70] sm:$0xff] %vm1059_vm8, %v992_v59 }
 0x248   :  { %1084 = vst.msk [vmem:[#allocation3 + $0xc0] sm:$0xff] %vm1059_vm8, %v1012_v55  ;;  %v1226_v55 = vsel %vm272_vm1, %v1224_v21, %v1225_v50  ;;  %v6729_v21 = vld [vmem:[#allocation36_spill] sm:$0xff] }
 0x24b   :  { %1146 = vrot.lane.b32.xlu0 %v4127_v0, %s3420_s14  ;;  %1148 = vrot.lane.b32.xlu1 %v4129_v62, %s3420_s14 }
 0x24c   :  { %1150 = vrot.lane.b32.xlu2 %v4470_v54, %s3420_s14 }
 0x24d   :  { %v996_v4 = vpop.permute.xlu0 %995  ;;  %v998_v35 = vpop.permute.xlu1 %997 }
 0x24e   :  { %1076 = vst.msk [vmem:[#allocation3 + $0x80] sm:$0xff] %vm1059_vm8, %v996_v4  ;;  %v1018_v22 = vpop.permute.xlu2 %1017  ;;  %v6717_v4 = vld [vmem:[#allocation19_spill] sm:$0xff] }
 0x24f   :  { %1077 = vst.msk [vmem:[#allocation3 + $0x88] sm:$0xff] %vm1059_vm8, %v998_v35  ;;  %v6718_v35 = vld [vmem:[#allocation20_spill] sm:$0xff] }
 0x250   :  { %1087 = vst.msk [vmem:[#allocation3 + $0xd8] sm:$0xff] %vm1059_vm8, %v1018_v22  ;;  %v6719_v22 = vld [vmem:[#allocation22_spill] sm:$0xff] }
 0x253   :  { %1152 = vrot.lane.b32.xlu0 %v4472_v46, %s3420_s14  ;;  %1154 = vrot.lane.b32.xlu1 %v4799_v23, %s3420_s14 }
 0x254   :  { %1156 = vrot.lane.b32.xlu2 %v4810_v18, %s3420_s14 }
 0x255   :  { %v1002_v0 = vpop.permute.xlu0 %1001  ;;  %v1004_v62 = vpop.permute.xlu1 %1003 }
 0x256   :  { %1079 = vst.msk [vmem:[#allocation3 + $0x98] sm:$0xff] %vm1059_vm8, %v1002_v0  ;;  %v1024_v54 = vpop.permute.xlu2 %1023 }
 0x257   :  { %1080 = vst.msk [vmem:[#allocation3 + $0xa0] sm:$0xff] %vm1059_vm8, %v1004_v62 }
 0x258   :  { %1090 = vst.msk [vmem:[#allocation3 + $0xf0] sm:$0xff] %vm1059_vm8, %v1024_v54 }
 0x25b   :  { %1229 = vrot.lane.b32.xlu0 %v3693_v48, %s3421_s15  ;;  %1231 = vrot.lane.b32.xlu1 %v3736_v61, %s3421_s15  ;;  %v6704_v48 = vld [vmem:[#allocation9_spill] sm:$0xff] }
 0x25c   :  { %1233 = vrot.lane.b32.xlu2 %v3671_v41, %s3421_s15  ;;  %v6706_v41 = vld [vmem:[#allocation8_spill] sm:$0xff] }
 0x25d   :  { %v1008_v46 = vpop.permute.xlu0 %1007  ;;  %v1010_v19 = vpop.permute.xlu1 %1009 }
 0x25e   :  { %1082 = vst.msk [vmem:[#allocation3 + $0xb0] sm:$0xff] %vm1059_vm8, %v1008_v46  ;;  %v1097_v61 = vpop.permute.xlu2 %1096  ;;  %v6720_v46 = vld [vmem:[#allocation23_spill] sm:$0xff] }
 0x25f   :  { %1083 = vst.msk [vmem:[#allocation3 + $0xb8] sm:$0xff] %vm1059_vm8, %v1010_v19  ;;  %v6721_v19 = vld [vmem:[#allocation24_spill] sm:$0xff] }
 0x260   :  { %1192 = vst.msk [vmem:[#allocation3 + $0x8] sm:$0xff] %vm1190_vm9, %v1097_v61 }
 0x263   :  { %1235 = vrot.lane.b32.xlu0 %v3674_v42, %s3421_s15  ;;  %1237 = vrot.lane.b32.xlu1 %v6704_v48, %s3421_s15  ;;  %v6707_v42 = vld [vmem:[#allocation12_spill] sm:$0xff]  ;;  %v6722_v48 = vld [vmem:[#allocation27_spill] sm:$0xff] }
 0x264   :  { %1239 = vrot.lane.b32.xlu2 %v6705_v37, %s3421_s15  ;;  %v6723_v37 = vld [vmem:[#allocation25_spill] sm:$0xff] }
 0x265   :  { %v1014_v56 = vpop.permute.xlu0 %1013  ;;  %v1016_v10 = vpop.permute.xlu1 %1015 }
 0x266   :  { %1085 = vst.msk [vmem:[#allocation3 + $0xc8] sm:$0xff] %vm1059_vm8, %v1014_v56  ;;  %v1103_v15 = vpop.permute.xlu2 %1102 }
 0x267   :  { %1086 = vst.msk [vmem:[#allocation3 + $0xd0] sm:$0xff] %vm1059_vm8, %v1016_v10 }
 0x268   :  { %1195 = vst.msk [vmem:[#allocation3 + $0x20] sm:$0xff] %vm1190_vm9, %v1103_v15 }
 0x26b   :  { %1241 = vrot.lane.b32.xlu0 %v6706_v41, %s3421_s15  ;;  %1243 = vrot.lane.b32.xlu1 %v6707_v42, %s3421_s15  ;;  %v6724_v41 = vld [vmem:[#allocation26_spill] sm:$0xff]  ;;  %v6725_v42 = vld [vmem:[#allocation28_spill] sm:$0xff] }
 0x26c   :  { %1245 = vrot.lane.b32.xlu2 %v6708_v31, %s3421_s15  ;;  %v4896_v31 = vld [vmem:[#allocation2 + $0x1a8] sm:$0x3] }
 0x26d   :  { %v1020_v47 = vpop.permute.xlu0 %1019  ;;  %v1022_v30 = vpop.permute.xlu1 %1021 }
 0x26e   :  { %1088 = vst.msk [vmem:[#allocation3 + $0xe0] sm:$0xff] %vm1059_vm8, %v1020_v47  ;;  %v1109_v51 = vpop.permute.xlu2 %1108 }
 0x26f   :  { %1089 = vst.msk [vmem:[#allocation3 + $0xe8] sm:$0xff] %vm1059_vm8, %v1022_v30 }
 0x270   :  { %1198 = vst.msk [vmem:[#allocation3 + $0x38] sm:$0xff] %vm1190_vm9, %v1109_v51 }
 0x273   :  { %1247 = vrot.lane.b32.xlu0 %v6709_v39, %s3421_s15  ;;  %1249 = vrot.lane.b32.xlu1 %v6710_v45, %s3421_s15  ;;  %v6726_v39 = vld [vmem:[#allocation29_spill] sm:$0xff]  ;;  %v1227_v45 = vrot.slane %v4896_v31, 1 }
 0x274   :  { %1251 = vrot.lane.b32.xlu2 %v6711_v12, %s3421_s15 }
 0x275   :  { %v1026_v63 = vpop.permute.xlu0 %1025  ;;  %v1095_v52 = vpop.permute.xlu1 %1094  ;;  %v1228_v12 = vsel %vm272_vm1, %v1225_v50, %v1227_v45 }
 0x276   :  { %1091 = vst.msk [vmem:[#allocation3 + $0xf8] sm:$0xff] %vm1059_vm8, %v1026_v63  ;;  %v1115_v38 = vpop.permute.xlu2 %1114 }
 0x277   :  { %1191 = vst.msk [vmem:[#allocation3] sm:$0xff] %vm1190_vm9, %v1095_v52 }
 0x278   :  { %1201 = vst.msk [vmem:[#allocation3 + $0x50] sm:$0xff] %vm1190_vm9, %v1115_v38 }
 0x27b   :  { %1253 = vrot.lane.b32.xlu0 %v6712_v17, %s3421_s15  ;;  %1255 = vrot.lane.b32.xlu1 %v6713_v29, %s3421_s15 }
 0x27c   :  { %1257 = vrot.lane.b32.xlu2 %v6714_v8, %s3421_s15 }
 0x27d   :  { %v1099_v53 = vpop.permute.xlu0 %1098  ;;  %v1101_v40 = vpop.permute.xlu1 %1100 }
 0x27e   :  { %1193 = vst.msk [vmem:[#allocation3 + $0x10] sm:$0xff] %vm1190_vm9, %v1099_v53  ;;  %v1121_v7 = vpop.permute.xlu2 %1120 }
 0x27f   :  { %1194 = vst.msk [vmem:[#allocation3 + $0x18] sm:$0xff] %vm1190_vm9, %v1101_v40  ;;  %v6728_v40 = vld [vmem:[#allocation34_spill] sm:$0xff] }
 0x280   :  { %1204 = vst.msk [vmem:[#allocation3 + $0x68] sm:$0xff] %vm1190_vm9, %v1121_v7 }
 0x283   :  { %1259 = vrot.lane.b32.xlu0 %v6715_v3, %s3421_s15  ;;  %1261 = vrot.lane.b32.xlu1 %v6716_v5, %s3421_s15  ;;  %v6731_v5 = vld [vmem:[#allocation39_spill] sm:$0xff] }
 0x284   :  { %1263 = vrot.lane.b32.xlu2 %v6717_v4, %s3421_s15  ;;  %v3423_v4 = vmov 0  }
 0x285   :  { %v1105_v34 = vpop.permute.xlu0 %1104  ;;  %v1107_v59 = vpop.permute.xlu1 %1106  ;;  %3385 = vset.pattern.permute.xlu1 %v3423_v4  ;;  %3386 = vset.pattern.permute.xlu0 %v3423_v4 }
 0x286   :  { %1196 = vst.msk [vmem:[#allocation3 + $0x28] sm:$0xff] %vm1190_vm9, %v1105_v34  ;;  %v1127_v0 = vpop.permute.xlu2 %1126 }
 0x287   :  { %1197 = vst.msk [vmem:[#allocation3 + $0x30] sm:$0xff] %vm1190_vm9, %v1107_v59  ;;  %v6732_v59 = vld [vmem:[#allocation41_spill] sm:$0xff] }
 0x288   :  { %1207 = vst.msk [vmem:[#allocation3 + $0x80] sm:$0xff] %vm1190_vm9, %v1127_v0  ;;  %v6734_v0 = vld [vmem:[#allocation45_spill] sm:$0xff] }
 0x28b   :  { %1265 = vrot.lane.b32.xlu0 %v6718_v35, %s3421_s15  ;;  %1267 = vrot.lane.b32.xlu1 %v6719_v22, %s3421_s15  ;;  %v6733_v35 = vld [vmem:[#allocation43_spill] sm:$0xff] }
 0x28c   :  { %1269 = vrot.lane.b32.xlu2 %v6720_v46, %s3421_s15  ;;  %v1359_v46 = vrot.slane %v4810_v18, 2 }
 0x28d   :  { %v1111_v62 = vpop.permute.xlu0 %1110  ;;  %v1113_v54 = vpop.permute.xlu1 %1112 }
 0x28e   :  { %1199 = vst.msk [vmem:[#allocation3 + $0x40] sm:$0xff] %vm1190_vm9, %v1111_v62  ;;  %v1133_v61 = vpop.permute.xlu2 %1132 }
 0x28f   :  { %1200 = vst.msk [vmem:[#allocation3 + $0x48] sm:$0xff] %vm1190_vm9, %v1113_v54  ;;  %v1358_v54 = vrot.slane %v4799_v23, 2  ;;  %v6736_v23 = vld [vmem:[#allocation48_spill] sm:$0xff] }
 0x290   :  { %1210 = vst.msk [vmem:[#allocation3 + $0x98] sm:$0xff] %vm1190_vm9, %v1133_v61 }
 0x293   :  { %1271 = vrot.lane.b32.xlu0 %v6721_v19, %s3421_s15  ;;  %1273 = vrot.lane.b32.xlu1 %v6722_v48, %s3421_s15  ;;  %v6735_v19 = vld [vmem:[#allocation47_spill] sm:$0xff] }
 0x294   :  { %1275 = vrot.lane.b32.xlu2 %v6723_v37, %s3421_s15  ;;  %v5014_v37 = vld [vmem:[#allocation2 + $0x8] sm:$0xff] }
 0x295   :  { %v1117_v56 = vpop.permute.xlu0 %1116  ;;  %v1119_v10 = vpop.permute.xlu1 %1118 }
 0x296   :  { %1202 = vst.msk [vmem:[#allocation3 + $0x58] sm:$0xff] %vm1190_vm9, %v1117_v56  ;;  %v1139_v15 = vpop.permute.xlu2 %1138 }
 0x297   :  { %1203 = vst.msk [vmem:[#allocation3 + $0x60] sm:$0xff] %vm1190_vm9, %v1119_v10 }
 0x298   :  { %1213 = vst.msk [vmem:[#allocation3 + $0xb0] sm:$0xff] %vm1190_vm9, %v1139_v15  ;;  %v5022_v15 = vld [vmem:[#allocation2 + $0x20] sm:$0xff] }
 0x299   :  { %v1878_v45 = vrot.slane %v5022_v15, 1 }
 0x29b   :  { %1277 = vrot.lane.b32.xlu0 %v6724_v41, %s3421_s15  ;;  %1279 = vrot.lane.b32.xlu1 %v6725_v42, %s3421_s15  ;;  %v5018_v41 = vld [vmem:[#allocation2 + $0x10] sm:$0x3]  ;;  %v5020_v42 = vld [vmem:[#allocation2 + $0x18] sm:$0xff] }
 0x29c   :  { %1281 = vrot.lane.b32.xlu2 %v6726_v39, %s3421_s15  ;;  %v1877_v39 = vrot.slane %v5020_v42, 1 }
 0x29d   :  { %v1123_v47 = vpop.permute.xlu0 %1122  ;;  %v1125_v30 = vpop.permute.xlu1 %1124 }
 0x29e   :  { %1205 = vst.msk [vmem:[#allocation3 + $0x70] sm:$0xff] %vm1190_vm9, %v1123_v47  ;;  %v1145_v51 = vpop.permute.xlu2 %1144 }
 0x29f   :  { %1206 = vst.msk [vmem:[#allocation3 + $0x78] sm:$0xff] %vm1190_vm9, %v1125_v30  ;;  %v1873_v30 = vrot.slane %v5014_v37, 1 }
 0x2a0   :  { %1216 = vst.msk [vmem:[#allocation3 + $0xc8] sm:$0xff] %vm1190_vm9, %v1145_v51 }
 0x2a3   :  { %1283 = vrot.lane.b32.xlu0 %v6692_v25, %s3421_s15  ;;  %1285 = vrot.lane.b32.xlu1 %v4596_v26, %s3421_s15 }
 0x2a4   :  { %1287 = vrot.lane.b32.xlu2 %v4599_v9, %s3421_s15 }
 0x2a5   :  { %v1129_v63 = vpop.permute.xlu0 %1128  ;;  %v1131_v52 = vpop.permute.xlu1 %1130 }
 0x2a6   :  { %1208 = vst.msk [vmem:[#allocation3 + $0x88] sm:$0xff] %vm1190_vm9, %v1129_v63  ;;  %v1151_v25 = vpop.permute.xlu2 %1150 }
 0x2a7   :  { %1209 = vst.msk [vmem:[#allocation3 + $0x90] sm:$0xff] %vm1190_vm9, %v1131_v52 }
 0x2a8   :  { %1219 = vst.msk [vmem:[#allocation3 + $0xe0] sm:$0xff] %vm1190_vm9, %v1151_v25 }
 0x2ab   :  { %1289 = vrot.lane.b32.xlu0 %v1226_v55, %s3421_s15  ;;  %1291 = vrot.lane.b32.xlu1 %v1228_v12, %s3421_s15 }
 0x2ac   :  { %1363 = vrot.lane.b32.xlu2 %v4183_v43, %s3422_s16  ;;  %v6727_v43 = vld [vmem:[#allocation33_spill] sm:$0xff] }
 0x2ad   :  { %v1135_v26 = vpop.permute.xlu0 %1134  ;;  %v1137_v17 = vpop.permute.xlu1 %1136 }
 0x2ae   :  { %1211 = vst.msk [vmem:[#allocation3 + $0xa0] sm:$0xff] %vm1190_vm9, %v1135_v26  ;;  %v1157_v9 = vpop.permute.xlu2 %1156  ;;  %v5037_v26 = vsel %vm272_vm1, %v1877_v39, %v1878_v45 }
 0x2af   :  { %1212 = vst.msk [vmem:[#allocation3 + $0xa8] sm:$0xff] %vm1190_vm9, %v1137_v17  ;;  %v5039_v17 = vld [vmem:[#allocation2 + $0x28] sm:$0x3] }
 0x2b0   :  { %1222 = vst.msk [vmem:[#allocation3 + $0xf8] sm:$0xff] %vm1190_vm9, %v1157_v9  ;;  %v5041_v9 = vld [vmem:[#allocation2 + $0x30] sm:$0xff] }
 0x2b1   :  { %6737 = vst [vmem:[#allocation30_spill] sm:$0xff] %v5037_v26 }
 0x2b3   :  { %1365 = vrot.lane.b32.xlu0 %v4186_v36, %s3422_s16  ;;  %1367 = vrot.lane.b32.xlu1 %v4203_v13, %s3422_s16 }
 0x2b4   :  { %1369 = vrot.lane.b32.xlu2 %v6693_v11, %s3422_s16 }
 0x2b5   :  { %v1141_v29 = vpop.permute.xlu0 %1140  ;;  %v1143_v38 = vpop.permute.xlu1 %1142 }
 0x2b6   :  { %1214 = vst.msk [vmem:[#allocation3 + $0xb8] sm:$0xff] %vm1190_vm9, %v1141_v29  ;;  %v1234_v36 = vpop.permute.xlu2 %1233  ;;  %v5043_v29 = vld [vmem:[#allocation2 + $0x38] sm:$0xff] }
 0x2b7   :  { %1215 = vst.msk [vmem:[#allocation3 + $0xc0] sm:$0xff] %vm1190_vm9, %v1143_v38  ;;  %v5045_v38 = vld [vmem:[#allocation2 + $0x40] sm:$0x3] }
 0x2b8   :  { %1328 = vst.msk [vmem:[#allocation3 + $0x10] sm:$0xff] %vm1325_vm10, %v1234_v36  ;;  %v1882_v36 = vrot.slane %v5041_v9, 1 }
 0x2bb   :  { %1371 = vrot.lane.b32.xlu0 %v6694_v16, %s3422_s16  ;;  %1373 = vrot.lane.b32.xlu1 %v6727_v43, %s3422_s16  ;;  %v1880_v43 = vrot.slane %v5039_v17, 1 }
 0x2bc   :  { %1375 = vrot.lane.b32.xlu2 %v6728_v40, %s3422_s16 }
 0x2bd   :  { %v1147_v13 = vpop.permute.xlu0 %1146  ;;  %v1149_v53 = vpop.permute.xlu1 %1148 }
 0x2be   :  { %1217 = vst.msk [vmem:[#allocation3 + $0xd0] sm:$0xff] %vm1190_vm9, %v1147_v13  ;;  %v1240_v11 = vpop.permute.xlu2 %1239  ;;  %v1883_v13 = vrot.slane %v5043_v29, 1 }
 0x2bf   :  { %1218 = vst.msk [vmem:[#allocation3 + $0xd8] sm:$0xff] %vm1190_vm9, %v1149_v53  ;;  %v1885_v53 = vrot.slane %v5045_v38, 1 }
 0x2c0   :  { %1331 = vst.msk [vmem:[#allocation3 + $0x28] sm:$0xff] %vm1325_vm10, %v1240_v11 }
 0x2c3   :  { %1377 = vrot.lane.b32.xlu0 %v6696_v60, %s3422_s16  ;;  %1379 = vrot.lane.b32.xlu1 %v4245_v57, %s3422_s16  ;;  %v6730_v60 = vld [vmem:[#allocation38_spill] sm:$0xff] }
 0x2c4   :  { %1381 = vrot.lane.b32.xlu2 %v6729_v21, %s3422_s16  ;;  %v5062_v21 = vsel %vm272_vm1, %v1882_v36, %v1883_v13 }
 0x2c5   :  { %v1153_v16 = vpop.permute.xlu0 %1152  ;;  %v1155_v8 = vpop.permute.xlu1 %1154  ;;  %6739 = vst [vmem:[#allocation32_spill] sm:$0xff] %v5062_v21 }
 0x2c6   :  { %1220 = vst.msk [vmem:[#allocation3 + $0xe8] sm:$0xff] %vm1190_vm9, %v1153_v16  ;;  %v1246_v50 = vpop.permute.xlu2 %1245 }
 0x2c7   :  { %1221 = vst.msk [vmem:[#allocation3 + $0xf0] sm:$0xff] %vm1190_vm9, %v1155_v8  ;;  %v5059_v8 = vsel %vm272_vm1, %v1878_v45, %v1880_v43 }
 0x2c8   :  { %1334 = vst.msk [vmem:[#allocation3 + $0x40] sm:$0xff] %vm1325_vm10, %v1246_v50  ;;  %v5067_v50 = vld [vmem:[#allocation2 + $0x50] sm:$0xff] }
 0x2c9   :  { %6738 = vst [vmem:[#allocation31_spill] sm:$0xff] %v5059_v8 }
 0x2cb   :  { %1383 = vrot.lane.b32.xlu0 %v6698_v49, %s3422_s16  ;;  %1385 = vrot.lane.b32.xlu1 %v6730_v60, %s3422_s16  ;;  %v5065_v60 = vsel %vm272_vm1, %v1883_v13, %v1885_v53 }
 0x2cc   :  { %1387 = vrot.lane.b32.xlu2 %v6731_v5, %s3422_s16  ;;  %6740 = vst [vmem:[#allocation35_spill] sm:$0xff] %v5065_v60  ;;  %v5073_v5 = vld [vmem:[#allocation2 + $0x60] sm:$0xff] }
 0x2cd   :  { %v1230_v57 = vpop.permute.xlu0 %1229  ;;  %v1232_v3 = vpop.permute.xlu1 %1231 }
 0x2ce   :  { %1326 = vst.msk [vmem:[#allocation3] sm:$0xff] %vm1325_vm10, %v1230_v57  ;;  %v1252_v49 = vpop.permute.xlu2 %1251  ;;  %v5069_v57 = vld [vmem:[#allocation2 + $0x48] sm:$0xff] }
 0x2cf   :  { %1327 = vst.msk [vmem:[#allocation3 + $0x8] sm:$0xff] %vm1325_vm10, %v1232_v3  ;;  %v5071_v3 = vld [vmem:[#allocation2 + $0x58] sm:$0x3] }
 0x2d0   :  { %1337 = vst.msk [vmem:[#allocation3 + $0x58] sm:$0xff] %vm1325_vm10, %v1252_v49  ;;  %v5075_v49 = vld [vmem:[#allocation2 + $0x68] sm:$0xff] }
 0x2d3   :  { %1389 = vrot.lane.b32.xlu0 %v4273_v33, %s3422_s16  ;;  %1391 = vrot.lane.b32.xlu1 %v6699_v2, %s3422_s16 }
 0x2d4   :  { %1393 = vrot.lane.b32.xlu2 %v6732_v59, %s3422_s16  ;;  %v1890_v59 = vrot.slane %v5071_v3, 1 }
 0x2d5   :  { %v1236_v7 = vpop.permute.xlu0 %1235  ;;  %v1238_v34 = vpop.permute.xlu1 %1237 }
 0x2d6   :  { %1329 = vst.msk [vmem:[#allocation3 + $0x18] sm:$0xff] %vm1325_vm10, %v1236_v7  ;;  %v1258_v33 = vpop.permute.xlu2 %1257  ;;  %v1887_v7 = vrot.slane %v5069_v57, 1 }
 0x2d7   :  { %1330 = vst.msk [vmem:[#allocation3 + $0x20] sm:$0xff] %vm1325_vm10, %v1238_v34  ;;  %v1888_v34 = vrot.slane %v5067_v50, 1 }
 0x2d8   :  { %1340 = vst.msk [vmem:[#allocation3 + $0x70] sm:$0xff] %vm1325_vm10, %v1258_v33  ;;  %v1892_v33 = vrot.slane %v5073_v5, 1 }
 0x2db   :  { %1395 = vrot.lane.b32.xlu0 %v6701_v58, %s3422_s16  ;;  %1397 = vrot.lane.b32.xlu1 %v4310_v44, %s3422_s16 }
 0x2dc   :  { %1399 = vrot.lane.b32.xlu2 %v6733_v35, %s3422_s16 }
 0x2dd   :  { %v1242_v2 = vpop.permute.xlu0 %1241  ;;  %v1244_v55 = vpop.permute.xlu1 %1243 }
 0x2de   :  { %1332 = vst.msk [vmem:[#allocation3 + $0x30] sm:$0xff] %vm1325_vm10, %v1242_v2  ;;  %v1264_v44 = vpop.permute.xlu2 %1263  ;;  %v1893_v2 = vrot.slane %v5075_v49, 1 }
 0x2df   :  { %1333 = vst.msk [vmem:[#allocation3 + $0x38] sm:$0xff] %vm1325_vm10, %v1244_v55 }
 0x2e0   :  { %1343 = vst.msk [vmem:[#allocation3 + $0x88] sm:$0xff] %vm1325_vm10, %v1264_v44  ;;  %v5092_v44 = vsel %vm272_vm1, %v1887_v7, %v1888_v34  ;;  %v5179_v7 = vld [vmem:[#allocation2 + $0xc8] sm:$0xff] }
 0x2e1   :  { %6741 = vst [vmem:[#allocation37_spill] sm:$0xff] %v5092_v44 }
 0x2e3   :  { %1401 = vrot.lane.b32.xlu0 %v6702_v27, %s3422_s16  ;;  %1403 = vrot.lane.b32.xlu1 %v4333_v20, %s3422_s16 }
 0x2e4   :  { %1405 = vrot.lane.b32.xlu2 %v6734_v0, %s3422_s16  ;;  %v5100_v0 = vsel %vm272_vm1, %v1892_v33, %v1893_v2 }
 0x2e5   :  { %v1248_v58 = vpop.permute.xlu0 %1247  ;;  %v1250_v22 = vpop.permute.xlu1 %1249  ;;  %6744 = vst [vmem:[#allocation44_spill] sm:$0xff] %v5100_v0 }
 0x2e6   :  { %1335 = vst.msk [vmem:[#allocation3 + $0x48] sm:$0xff] %vm1325_vm10, %v1248_v58  ;;  %v1270_v27 = vpop.permute.xlu2 %1269 }
 0x2e7   :  { %1336 = vst.msk [vmem:[#allocation3 + $0x50] sm:$0xff] %vm1325_vm10, %v1250_v22  ;;  %v5097_v22 = vsel %vm272_vm1, %v1888_v34, %v1890_v59  ;;  %v5181_v34 = vld [vmem:[#allocation2 + $0xd0] sm:$0x3] }
 0x2e8   :  { %1346 = vst.msk [vmem:[#allocation3 + $0xa0] sm:$0xff] %vm1325_vm10, %v1270_v27  ;;  %v5102_v27 = vld [vmem:[#allocation2 + $0x70] sm:$0x3] }
 0x2e9   :  { %6743 = vst [vmem:[#allocation42_spill] sm:$0xff] %v5097_v22 }
 0x2eb   :  { %1407 = vrot.lane.b32.xlu0 %v6703_v28, %s3422_s16  ;;  %1409 = vrot.lane.b32.xlu1 %v4355_v6, %s3422_s16  ;;  %v1360_v6 = vsel %vm482_vm4, %v1358_v54, %v1359_v46  ;;  %v5110_v54 = vld [vmem:[#allocation2 + $0x88] sm:$0x3] }
 0x2ec   :  { %1411 = vrot.lane.b32.xlu2 %v6735_v19, %s3422_s16 }
 0x2ed   :  { %v1254_v20 = vpop.permute.xlu0 %1253  ;;  %v1256_v62 = vpop.permute.xlu1 %1255 }
 0x2ee   :  { %1338 = vst.msk [vmem:[#allocation3 + $0x60] sm:$0xff] %vm1325_vm10, %v1254_v20  ;;  %v1276_v28 = vpop.permute.xlu2 %1275  ;;  %v5106_v20 = vld [vmem:[#allocation2 + $0x78] sm:$0xff] }
 0x2ef   :  { %1339 = vst.msk [vmem:[#allocation3 + $0x68] sm:$0xff] %vm1325_vm10, %v1256_v62  ;;  %v5108_v62 = vld [vmem:[#allocation2 + $0x80] sm:$0xff]  ;;  %v1897_v19 = vrot.slane %v5106_v20, 1 }
 0x2f0   :  { %1349 = vst.msk [vmem:[#allocation3 + $0xb8] sm:$0xff] %vm1325_vm10, %v1276_v28  ;;  %v1900_v28 = vrot.slane %v5110_v54, 1 }
 0x2f3   :  { %1413 = vrot.lane.b32.xlu0 %v4361_v1, %s3422_s16  ;;  %1415 = vrot.lane.b32.xlu1 %v4376_v32, %s3422_s16  ;;  %v1361_v1 = vrot.slane %v4896_v31, 2  ;;  %v1875_v31 = vrot.slane %v5018_v41, 1 }
 0x2f4   :  { %1417 = vrot.lane.b32.xlu2 %v6736_v23, %s3422_s16 }
 0x2f5   :  { %v1260_v48 = vpop.permute.xlu0 %1259  ;;  %v1262_v61 = vpop.permute.xlu1 %1261  ;;  %v1362_v10 = vsel %vm482_vm4, %v1359_v46, %v1361_v1  ;;  %v1876_v25 = vsel %vm272_vm1, %v1873_v30, %v1875_v31  ;;  %v1895_v46 = vrot.slane %v5102_v27, 1  ;;  %v5144_v31 = vld [vmem:[#allocation2 + $0xb0] sm:$0xff] }
 0x2f6   :  { %1341 = vst.msk [vmem:[#allocation3 + $0x78] sm:$0xff] %vm1325_vm10, %v1260_v48  ;;  %v1282_v32 = vpop.permute.xlu2 %1281 }
 0x2f7   :  { %1342 = vst.msk [vmem:[#allocation3 + $0x80] sm:$0xff] %vm1325_vm10, %v1262_v61  ;;  %v5126_v1 = vsel %vm272_vm1, %v1893_v2, %v1895_v46  ;;  %v1913_v2 = vrot.slane %v5179_v7, 1 }
 0x2f8   :  { %1352 = vst.msk [vmem:[#allocation3 + $0xd0] sm:$0xff] %vm1325_vm10, %v1282_v32 }
 0x2f9   :  { %6745 = vst [vmem:[#allocation46_spill] sm:$0xff] %v5126_v1 }
 0x2fb   :  { %1419 = vrot.lane.b32.xlu0 %v4704_v14, %s3422_s16  ;;  %1421 = vrot.lane.b32.xlu1 %v4707_v24, %s3422_s16  ;;  %v16_v14 = vld [vmem:[%s6451_s2] sm:$0xff] }
 0x2fc   :  { %v5016_v24 = vld [vmem:[#allocation2] sm:$0xff]  ;;  %1423 = vrot.lane.b32.xlu2 %v1360_v6, %s3422_s16  ;;  %v1898_v6 = vrot.slane %v5108_v62, 1 }
 0x2fd   :  { %v1266_v18 = vpop.permute.xlu0 %1265  ;;  %v1268_v56 = vpop.permute.xlu1 %1267  ;;  %v1872_v47 = vrot.slane %v5016_v24, 1 }
 0x2fe   :  { %1344 = vst.msk [vmem:[#allocation3 + $0x90] sm:$0xff] %vm1325_vm10, %v1266_v18  ;;  %v1288_v51 = vpop.permute.xlu2 %1287  ;;  %v5129_v32 = vsel %vm272_vm1, %v1897_v19, %v1898_v6  ;;  %v5132_v18 = vsel %vm272_vm1, %v1898_v6, %v1900_v28  ;;  %v5196_v19 = vld [vmem:[#allocation2 + $0xe0] sm:$0xff] }
 0x2ff   :  { %1345 = vst.msk [vmem:[#allocation3 + $0x98] sm:$0xff] %vm1325_vm10, %v1268_v56  ;;  %v1874_v12 = vsel %vm272_vm1, %v1872_v47, %v1873_v30  ;;  %v5134_v56 = vld [vmem:[#allocation2 + $0x98] sm:$0xff]  ;;  %v5140_v47 = vld [vmem:[#allocation2 + $0xa0] sm:$0x3]  ;;  %v5142_v30 = vld [vmem:[#allocation2 + $0xa8] sm:$0xff] }
 0x300   :  { %1355 = vst.msk [vmem:[#allocation3 + $0xe8] sm:$0xff] %vm1325_vm10, %v1288_v51  ;;  %v1903_v45 = vrot.slane %v5134_v56, 1  ;;  %v1905_v51 = vrot.slane %v5140_v47, 1 }
 0x301   :  { %6746 = vst [vmem:[#allocation9_spill] sm:$0xff] %v5129_v32 }
 0x302   :  { %6747 = vst [vmem:[#allocation7_spill] sm:$0xff] %v5132_v18  ;;  %v5168_v53 = vsel %vm272_vm1, %v1903_v45, %v1905_v51  ;;  %v5215_v51 = vld [vmem:[#allocation2 + $0xf8] sm:$0xff] }
 0x303   :  { %1425 = vrot.lane.b32.xlu0 %v1362_v10, %s3422_s16  ;;  %1526 = vperm.xlu1 %3385, %v16_v14   ;;  %v5136_v10 = vld [vmem:[#allocation2 + $0x90] sm:$0xff]  ;;  %6749 = vst [vmem:[#allocation12_spill] sm:$0xff] %v5168_v53 }
 0x304   :  { %1952 = vrot.lane.b32.xlu2 %v1874_v12, %s3415_s12  ;;  %v1902_v39 = vrot.slane %v5136_v10, 1  ;;  %6756 = vst [vmem:[#allocation16_spill] sm:$0xff] %v5215_v51 }
 0x305   :  { %v1272_v63 = vpop.permute.xlu0 %1271  ;;  %v1274_v52 = vpop.permute.xlu1 %1273 }
 0x306   :  { %1347 = vst.msk [vmem:[#allocation3 + $0xa8] sm:$0xff] %vm1325_vm10, %v1272_v63  ;;  %v1364_v40 = vpop.permute.xlu2 %1363  ;;  %v1907_v63 = vrot.slane %v5142_v30, 1  ;;  %v5163_v36 = vsel %vm272_vm1, %v1902_v39, %v1903_v45  ;;  %v5213_v45 = vld [vmem:[#allocation2 + $0xf0] sm:$0xff] }
 0x307   :  { %1348 = vst.msk [vmem:[#allocation3 + $0xb0] sm:$0xff] %vm1325_vm10, %v1274_v52  ;;  %v1908_v52 = vrot.slane %v5144_v31, 1 }
 0x308   :  { %1460 = vst.msk [vmem:[#allocation3] sm:$0xff] %vm1459_vm11, %v1364_v40 }
 0x309   :  { %6748 = vst [vmem:[#allocation8_spill] sm:$0xff] %v5163_v36  ;;  %v5171_v40 = vsel %vm272_vm1, %v1907_v63, %v1908_v52 }
 0x30a   :  { %6750 = vst [vmem:[#allocation10_spill] sm:$0xff] %v5171_v40 }
 0x30b   :  { %1954 = vrot.lane.b32.xlu0 %v1876_v25, %s3415_s12  ;;  %1956 = vrot.lane.b32.xlu1 %v5037_v26, %s3415_s12  ;;  %6755 = vst [vmem:[#allocation18_spill] sm:$0xff] %v5213_v45 }
 0x30c   :  { %1958 = vrot.lane.b32.xlu2 %v5059_v8, %s3415_s12 }
 0x30d   :  { %v1278_v11 = vpop.permute.xlu0 %1277  ;;  %v1280_v16 = vpop.permute.xlu1 %1279 }
 0x30e   :  { %1350 = vst.msk [vmem:[#allocation3 + $0xc0] sm:$0xff] %vm1325_vm10, %v1278_v11  ;;  %v1370_v55 = vpop.permute.xlu2 %1369  ;;  %v5173_v11 = vld [vmem:[#allocation2 + $0xb8] sm:$0x3] }
 0x30f   :  { %1351 = vst.msk [vmem:[#allocation3 + $0xc8] sm:$0xff] %vm1325_vm10, %v1280_v16  ;;  %v5094_v58 = vld [vmem:[#allocation3] sm:$0xff]  ;;  %v5177_v16 = vld [vmem:[#allocation2 + $0xc0] sm:$0xff]  ;;  %v1910_v59 = vrot.slane %v5173_v11, 1 }
 0x310   :  { %1463 = vst.msk [vmem:[#allocation3 + $0x18] sm:$0xff] %vm1459_vm11, %v1370_v55  ;;  %v1912_v33 = vrot.slane %v5177_v16, 1  ;;  %v1915_v55 = vrot.slane %v5181_v34, 1 }
 0x311   :  { %6742 = vst [vmem:[#allocation40_spill] sm:$0xff] %v5094_v58  ;;  %v5199_v6 = vsel %vm272_vm1, %v1908_v52, %v1910_v59  ;;  %v1922_v59 = vrot.slane %v5213_v45, 1 }
 0x312   :  { %1792 = vst.msk [vmem:[#allocation3] sm:$0xff] %vm17_vm0, %v5016_v24  ;;  %v5202_v28 = vsel %vm272_vm1, %v1912_v33, %v1913_v2  ;;  %v1923_v33 = vrot.slane %v5215_v51, 1 }
 0x313   :  { %1960 = vrot.lane.b32.xlu0 %v5062_v21, %s3415_s12  ;;  %1962 = vrot.lane.b32.xlu1 %v5065_v60, %s3415_s12  ;;  %6751 = vst [vmem:[#allocation11_spill] sm:$0xff] %v5199_v6  ;;  %v5305_v60 = vld [vmem:[#allocation2 + $0x140] sm:$0xff] }
 0x314   :  { %1964 = vrot.lane.b32.xlu2 %v5092_v44, %s3415_s12  ;;  %6752 = vst [vmem:[#allocation15_spill] sm:$0xff] %v5202_v28 }
 0x315   :  { %v1284_v4 = vpop.permute.xlu0 %1283  ;;  %v1286_v35 = vpop.permute.xlu1 %1285 }
 0x316   :  { %1353 = vst.msk [vmem:[#allocation3 + $0xd8] sm:$0xff] %vm1325_vm10, %v1284_v4  ;;  %v1376_v48 = vpop.permute.xlu2 %1375 }
 0x317   :  { %1354 = vst.msk [vmem:[#allocation3 + $0xe0] sm:$0xff] %vm1325_vm10, %v1286_v35  ;;  %v5138_v14 = vld [vmem:[#allocation3 + $0x18] sm:$0xff] }
 0x318   :  { %1466 = vst.msk [vmem:[#allocation3 + $0x30] sm:$0xff] %vm1459_vm11, %v1376_v48  ;;  %v5205_v48 = vsel %vm272_vm1, %v1913_v2, %v1915_v55 }
 0x319   :  { %1795 = vst.msk [vmem:[#allocation3 + $0x18] sm:$0xff] %vm17_vm0, %v5022_v15 }
 0x31a   :  { %6753 = vst [vmem:[#allocation13_spill] sm:$0xff] %v5205_v48 }
 0x31b   :  { %1966 = vrot.lane.b32.xlu0 %v5097_v22, %s3415_s12  ;;  %1968 = vrot.lane.b32.xlu1 %v5100_v0, %s3415_s12  ;;  %v5296_v22 = vld [vmem:[#allocation2 + $0x130] sm:$0x3] }
 0x31c   :  { %1970 = vrot.lane.b32.xlu2 %v5126_v1, %s3415_s12  ;;  %6768 = vst [vmem:[#allocation29_spill] sm:$0xff] %v5296_v22 }
 0x31d   :  { %v1290_v61 = vpop.permute.xlu0 %1289  ;;  %v1292_v23 = vpop.permute.xlu1 %1291 }
 0x31e   :  { %1356 = vst.msk [vmem:[#allocation3 + $0xf0] sm:$0xff] %vm1325_vm10, %v1290_v61  ;;  %v1382_v12 = vpop.permute.xlu2 %1381  ;;  %v5207_v61 = vld [vmem:[#allocation2 + $0xe8] sm:$0x3] }
 0x31f   :  { %1357 = vst.msk [vmem:[#allocation3 + $0xf8] sm:$0xff] %vm1325_vm10, %v1292_v23  ;;  %v5165_v13 = vld [vmem:[#allocation3 + $0x30] sm:$0xff]  ;;  %v5209_v23 = vld [vmem:[#allocation2 + $0xd8] sm:$0xff] }
 0x320   :  { %1469 = vst.msk [vmem:[#allocation3 + $0x48] sm:$0xff] %vm1459_vm11, %v1382_v12  ;;  %v1917_v12 = vrot.slane %v5209_v23, 1 }
 0x321   :  { %1798 = vst.msk [vmem:[#allocation3 + $0x30] sm:$0xff] %vm17_vm0, %v5069_v57 }
 0x322   :  { %6754 = vst [vmem:[#allocation14_spill] sm:$0xff] %v5207_v61 }
 0x323   :  { %1972 = vrot.lane.b32.xlu0 %v5129_v32, %s3415_s12  ;;  %1974 = vrot.lane.b32.xlu1 %v5132_v18, %s3415_s12 }
 0x324   :  { %1976 = vrot.lane.b32.xlu2 %v5163_v36, %s3415_s12 }
 0x325   :  { %v1366_v25 = vpop.permute.xlu0 %1365  ;;  %v1368_v43 = vpop.permute.xlu1 %1367 }
 0x326   :  { %1461 = vst.msk [vmem:[#allocation3 + $0x8] sm:$0xff] %vm1459_vm11, %v1366_v25  ;;  %v1388_v4 = vpop.permute.xlu2 %1387  ;;  %v1918_v25 = vrot.slane %v5196_v19, 1 }
 0x327   :  { %1462 = vst.msk [vmem:[#allocation3 + $0x10] sm:$0xff] %vm1459_vm11, %v1368_v43  ;;  %v5211_v39 = vld [vmem:[#allocation3 + $0x48] sm:$0xff]  ;;  %v1920_v43 = vrot.slane %v5207_v61, 1 }
 0x328   :  { %1472 = vst.msk [vmem:[#allocation3 + $0x60] sm:$0xff] %vm1459_vm11, %v1388_v4 }
 0x329   :  { %1801 = vst.msk [vmem:[#allocation3 + $0x48] sm:$0xff] %vm17_vm0, %v5075_v49 }
 0x32b   :  { %1978 = vrot.lane.b32.xlu0 %v5168_v53, %s3415_s12  ;;  %1980 = vrot.lane.b32.xlu1 %v5171_v40, %s3415_s12  ;;  %v5252_v40 = vld [vmem:[#allocation2 + $0x108] sm:$0xff] }
 0x32c   :  { %1982 = vrot.lane.b32.xlu2 %v5199_v6, %s3415_s12  ;;  %6760 = vst [vmem:[#allocation20_spill] sm:$0xff] %v5252_v40  ;;  %v5254_v6 = vld [vmem:[#allocation2 + $0x100] sm:$0x3] }
 0x32d   :  { %v1372_v35 = vpop.permute.xlu0 %1371  ;;  %v1374_v46 = vpop.permute.xlu1 %1373  ;;  %v5219_v63 = vld [vmem:[#allocation3 + $0x8] sm:$0xff]  ;;  %6761 = vst [vmem:[#allocation22_spill] sm:$0xff] %v5254_v6 }
 0x32e   :  { %1464 = vst.msk [vmem:[#allocation3 + $0x20] sm:$0xff] %vm1459_vm11, %v1372_v35  ;;  %v5225_v52 = vld [vmem:[#allocation3 + $0x10] sm:$0xff]  ;;  %v1394_v2 = vpop.permute.xlu2 %1393  ;;  %v5242_v35 = vsel %vm272_vm1, %v1917_v12, %v1918_v25  ;;  %v5262_v12 = vld [vmem:[#allocation2 + $0x118] sm:$0x3] }
 0x32f   :  { %1465 = vst.msk [vmem:[#allocation3 + $0x28] sm:$0xff] %vm1459_vm11, %v1374_v46  ;;  %v5244_v46 = vld [vmem:[#allocation3 + $0x60] sm:$0xff]  ;;  %v1930_v53 = vrot.slane %v5262_v12, 1 }
 0x330   :  { %1793 = vst.msk [vmem:[#allocation3 + $0x8] sm:$0xff] %vm17_vm0, %v5014_v37 }
 0x331   :  { %1794 = vst.msk [vmem:[#allocation3 + $0x10] sm:$0xff] %vm17_vm0, %v5020_v42 }
 0x332   :  { %1475 = vst.msk [vmem:[#allocation3 + $0x78] sm:$0xff] %vm1459_vm11, %v1394_v2 }
 0x333   :  { %1984 = vrot.lane.b32.xlu0 %v5202_v28, %s3415_s12  ;;  %1986 = vrot.lane.b32.xlu1 %v5205_v48, %s3415_s12  ;;  %6757 = vst [vmem:[#allocation17_spill] sm:$0xff] %v5242_v35  ;;  %v5247_v48 = vsel %vm272_vm1, %v1918_v25, %v1920_v43  ;;  %v5250_v28 = vsel %vm272_vm1, %v1922_v59, %v1923_v33  ;;  %v1925_v43 = vrot.slane %v5254_v6, 1  ;;  %v1927_v59 = vrot.slane %v5252_v40, 1 }
 0x334   :  { %6758 = vst [vmem:[#allocation21_spill] sm:$0xff] %v5247_v48  ;;  %1988 = vrot.lane.b32.xlu2 %v5242_v35, %s3415_s12 }
 0x335   :  { %v1378_v55 = vpop.permute.xlu0 %1377  ;;  %v1380_v4 = vpop.permute.xlu1 %1379  ;;  %6759 = vst [vmem:[#allocation19_spill] sm:$0xff] %v5250_v28  ;;  %v5266_v25 = vld [vmem:[#allocation3 + $0x20] sm:$0xff] }
 0x336   :  { %1467 = vst.msk [vmem:[#allocation3 + $0x38] sm:$0xff] %vm1459_vm11, %v1378_v55  ;;  %v5258_v2 = vld [vmem:[#allocation3 + $0x28] sm:$0xff]  ;;  %v5260_v55 = vld [vmem:[#allocation2 + $0x110] sm:$0xff]  ;;  %v1400_v36 = vpop.permute.xlu2 %1399 }
 0x337   :  { %1468 = vst.msk [vmem:[#allocation3 + $0x40] sm:$0xff] %vm1459_vm11, %v1380_v4  ;;  %v1928_v4 = vrot.slane %v5260_v55, 1 }
 0x338   :  { %1804 = vst.msk [vmem:[#allocation3 + $0x60] sm:$0xff] %vm17_vm0, %v5136_v10 }
 0x339   :  { %6762 = vst [vmem:[#allocation23_spill] sm:$0xff] %v5260_v55  ;;  %v1507_v18 = vld [vmem:[#allocation3 + $0x78] sm:$0xff]  ;;  %v5291_v0 = vsel %vm272_vm1, %v1927_v59, %v1928_v4  ;;  %v5294_v1 = vsel %vm272_vm1, %v1928_v4, %v1930_v53  ;;  %v1938_v4 = vrot.slane %v5305_v60, 1 }
 0x33a   :  { %6763 = vst [vmem:[#allocation24_spill] sm:$0xff] %v5262_v12  ;;  %3273 = vmatpush.xpose.msk.msra.mxu0 %vm1529_vm12, %v1507_v18  ;;  %v5299_v18 = vld [vmem:[#allocation2 + $0x120] sm:$0xff] }
 0x33b   :  { %1797 = vst.msk [vmem:[#allocation3 + $0x28] sm:$0xff] %vm17_vm0, %v5043_v29  ;;  %1990 = vrot.lane.b32.xlu0 %v5247_v48, %s3415_s12  ;;  %1992 = vrot.lane.b32.xlu1 %v5250_v28, %s3415_s12  ;;  %v5285_v28 = vld [vmem:[#allocation2 + $0x128] sm:$0xff]  ;;  %v5288_v48 = vsel %vm272_vm1, %v1923_v33, %v1925_v43  ;;  %v1935_v43 = vrot.slane %v5296_v22, 1 }
 0x33c   :  { %1796 = vst.msk [vmem:[#allocation3 + $0x20] sm:$0xff] %vm17_vm0, %v5041_v9  ;;  %1994 = vrot.lane.b32.xlu2 %v5288_v48, %s3415_s12  ;;  %v1933_v53 = vrot.slane %v5285_v28, 1 }
 0x33d   :  { %v1384_v35 = vpop.permute.xlu0 %1383  ;;  %v1386_v32 = vpop.permute.xlu1 %1385  ;;  %1807 = vst.msk [vmem:[#allocation3 + $0x78] sm:$0xff] %vm17_vm0, %v5144_v31  ;;  %v5309_v33 = vld [vmem:[#allocation3 + $0x38] sm:$0xff] }
 0x33e   :  { %1470 = vst.msk [vmem:[#allocation3 + $0x50] sm:$0xff] %vm1459_vm11, %v1384_v35  ;;  %v5301_v35 = vld [vmem:[#allocation3 + $0x40] sm:$0xff]  ;;  %v5333_v26 = vsel %vm272_vm1, %v1933_v53, %v1935_v43 }
 0x33f   :  { %1471 = vst.msk [vmem:[#allocation3 + $0x58] sm:$0xff] %vm1459_vm11, %v1386_v32  ;;  %v5303_v32 = vld [vmem:[#allocation2 + $0x138] sm:$0xff] }
 0x340   :  { %6764 = vst [vmem:[#allocation27_spill] sm:$0xff] %v5285_v28  ;;  %v1937_v59 = vrot.slane %v5303_v32, 1 }
 0x341   :  { %6765 = vst [vmem:[#allocation25_spill] sm:$0xff] %v5288_v48  ;;  %v1406_v48 = vpop.permute.xlu2 %1405 }
 0x342   :  { %6766 = vst [vmem:[#allocation26_spill] sm:$0xff] %v5291_v0  ;;  %v5336_v8 = vsel %vm272_vm1, %v1937_v59, %v1938_v4 }
 0x343   :  { %6767 = vst [vmem:[#allocation28_spill] sm:$0xff] %v5294_v1  ;;  %1996 = vrot.lane.b32.xlu0 %v5291_v0, %s3415_s12  ;;  %1998 = vrot.lane.b32.xlu1 %v5294_v1, %s3415_s12 }
 0x344   :  { %1478 = vst.msk [vmem:[#allocation3 + $0x90] sm:$0xff] %vm1459_vm11, %v1400_v36  ;;  %v1932_v36 = vrot.slane %v5299_v18, 1 }
 0x345   :  { %6769 = vst [vmem:[#allocation33_spill] sm:$0xff] %v5299_v18  ;;  %v1390_v44 = vpop.permute.xlu0 %1389  ;;  %v1392_v21 = vpop.permute.xlu1 %1391  ;;  %v5340_v22 = vld [vmem:[#allocation3 + $0x50] sm:$0xff] }
 0x346   :  { %6770 = vst [vmem:[#allocation34_spill] sm:$0xff] %v5303_v32  ;;  %v5327_v1 = vld [vmem:[#allocation3 + $0x58] sm:$0xff]  ;;  %v5330_v0 = vsel %vm272_vm1, %v1932_v36, %v1933_v53  ;;  %v5352_v53 = vld [vmem:[#allocation2 + $0x160] sm:$0x3] }
 0x347   :  { %1800 = vst.msk [vmem:[#allocation3 + $0x40] sm:$0xff] %vm17_vm0, %v5073_v5  ;;  %2000 = vrot.lane.b32.xlu2 %v5330_v0, %s3415_s12 }
 0x348   :  { %1799 = vst.msk [vmem:[#allocation3 + $0x38] sm:$0xff] %vm17_vm0, %v5067_v50 }
 0x349   :  { %1481 = vst.msk [vmem:[#allocation3 + $0xa8] sm:$0xff] %vm1459_vm11, %v1406_v48  ;;  %v5342_v48 = vld [vmem:[#allocation2 + $0x148] sm:$0x3]  ;;  %v1412_v12 = vpop.permute.xlu2 %1411 }
 0x34a   :  { %1473 = vst.msk [vmem:[#allocation3 + $0x68] sm:$0xff] %vm1459_vm11, %v1390_v44  ;;  %v5344_v44 = vld [vmem:[#allocation2 + $0x150] sm:$0xff]  ;;  %v1940_v43 = vrot.slane %v5342_v48, 1 }
 0x34b   :  { %1474 = vst.msk [vmem:[#allocation3 + $0x70] sm:$0xff] %vm1459_vm11, %v1392_v21  ;;  %v5346_v21 = vld [vmem:[#allocation2 + $0x158] sm:$0xff]  ;;  %v5350_v36 = vld [vmem:[#allocation3 + $0x90] sm:$0xff]  ;;  %2002 = vrot.lane.b32.xlu0 %v5333_v26, %s3415_s12  ;;  %2004 = vrot.lane.b32.xlu1 %v5336_v8, %s3415_s12  ;;  %v1942_v59 = vrot.slane %v5344_v44, 1 }
 0x34c   :  { %6771 = vst [vmem:[#allocation36_spill] sm:$0xff] %v5330_v0  ;;  %v1945_v0 = vrot.slane %v5352_v53, 1 }
 0x34d   :  { %6772 = vst [vmem:[#allocation38_spill] sm:$0xff] %v5333_v26  ;;  %v1396_v6 = vpop.permute.xlu0 %1395  ;;  %v1398_v61 = vpop.permute.xlu1 %1397 }
 0x34e   :  { %6773 = vst [vmem:[#allocation39_spill] sm:$0xff] %v5336_v8  ;;  %v5371_v8 = vsel %vm272_vm1, %v1938_v4, %v1940_v43 }
 0x34f   :  { %1803 = vst.msk [vmem:[#allocation3 + $0x58] sm:$0xff] %vm17_vm0, %v5108_v62  ;;  %2006 = vrot.lane.b32.xlu2 %v5371_v8, %s3415_s12 }
 0x350   :  { %6774 = vst [vmem:[#allocation41_spill] sm:$0xff] %v5342_v48 }
 0x351   :  { %1802 = vst.msk [vmem:[#allocation3 + $0x50] sm:$0xff] %vm17_vm0, %v5106_v20  ;;  %v1505_v48 = vld [vmem:[#allocation3 + $0x68] sm:$0xff]  ;;  %v1418_v43 = vpop.permute.xlu2 %1417 }
 0x352   :  { %6775 = vst [vmem:[#allocation43_spill] sm:$0xff] %v5350_v36  ;;  %v1943_v36 = vrot.slane %v5346_v21, 1  ;;  %v1506_v58 = vld [vmem:[#allocation3 + $0x70] sm:$0xff] }
 0x353   :  { %6776 = vst [vmem:[#allocation45_spill] sm:$0xff] %v5352_v53  ;;  %3274 = vmatpush.xpose.msk.msra.mxu0 %vm1529_vm12, %v1506_v58  ;;  %v5378_v53 = vld [vmem:[#allocation2 + $0x168] sm:$0xff]  ;;  %v5387_v58 = vld [vmem:[#allocation2 + $0x178] sm:$0x3] }
 0x354   :  { %1810 = vst.msk [vmem:[#allocation3 + $0x90] sm:$0xff] %vm17_vm0, %v5209_v23  ;;  %v5376_v26 = vsel %vm272_vm1, %v1942_v59, %v1943_v36 }
 0x355   :  { %1484 = vst.msk [vmem:[#allocation3 + $0xc0] sm:$0xff] %vm1459_vm11, %v1412_v12  ;;  %v5389_v12 = vld [vmem:[#allocation3 + $0xa8] sm:$0xff]  ;;  %2008 = vrot.lane.b32.xlu0 %v5376_v26, %s3415_s12  ;;  %v1402_v59 = vpop.permute.xlu0 %1401 }
 0x356   :  { %1476 = vst.msk [vmem:[#allocation3 + $0x80] sm:$0xff] %vm1459_vm11, %v1396_v6  ;;  %v5383_v6 = vsel %vm272_vm1, %v1943_v36, %v1945_v0  ;;  %v1947_v0 = vrot.slane %v5378_v53, 1  ;;  %v1950_v36 = vrot.slane %v5387_v58, 1 }
 0x357   :  { %1477 = vst.msk [vmem:[#allocation3 + $0x88] sm:$0xff] %vm1459_vm11, %v1398_v61  ;;  %v5385_v61 = vld [vmem:[#allocation2 + $0x170] sm:$0xff]  ;;  %3275 = vmatpush.xpose.msk.msra.mxu0 %vm1529_vm12, %v1505_v48  ;;  %2010 = vrot.lane.b32.xlu1 %v5383_v6, %s3415_s12 }
 0x358   :  { %6777 = vst [vmem:[#allocation47_spill] sm:$0xff] %v5371_v8  ;;  %v1948_v4 = vrot.slane %v5385_v61, 1  ;;  %v1404_v8 = vpop.permute.xlu1 %1403 }
 0x359   :  { %1806 = vst.msk [vmem:[#allocation3 + $0x70] sm:$0xff] %vm17_vm0, %v5142_v30 }
 0x35a   :  { %6778 = vst [vmem:[#allocation48_spill] sm:$0xff] %v5376_v26  ;;  %v5411_v48 = vsel %vm272_vm1, %v1947_v0, %v1948_v4  ;;  %v5416_v26 = vsel %vm272_vm1, %v1948_v4, %v1950_v36  ;;  %v2086_v0 = vrot.slane %v5022_v15, 2  ;;  %v1424_v4 = vpop.permute.xlu2 %1423 }
 0x35b   :  { %1805 = vst.msk [vmem:[#allocation3 + $0x68] sm:$0xff] %vm17_vm0, %v5134_v56  ;;  %3276 = vmatpush.xpose.msk.msra.mxu0 %vm1529_vm12, %v5244_v46  ;;  %2012 = vrot.lane.b32.xlu2 %v5411_v48, %s3415_s12  ;;  %v2083_v46 = vrot.slane %v5018_v41, 2 }
 0x35c   :  { %6779 = vst [vmem:[#allocation49_spill] sm:$0xff] %v5383_v6  ;;  %v5413_v6 = vld [vmem:[#allocation3 + $0xc0] sm:$0xff] }
 0x35d   :  { %6780 = vst [vmem:[#allocation50_spill] sm:$0xff] %v5389_v12  ;;  %v2080_v12 = vrot.slane %v5016_v24, 2  ;;  %2014 = vrot.lane.b32.xlu0 %v5416_v26, %s3415_s12  ;;  %v1408_v36 = vpop.permute.xlu0 %1407 }
 0x35e   :  { %1813 = vst.msk [vmem:[#allocation3 + $0xa8] sm:$0xff] %vm17_vm0, %v5215_v51  ;;  %v2081_v51 = vrot.slane %v5014_v37, 2  ;;  %v5420_v37 = vld [vmem:[#allocation3 + $0x80] sm:$0xff] }
 0x35f   :  { %1487 = vst.msk [vmem:[#allocation3 + $0xd8] sm:$0xff] %vm1459_vm11, %v1418_v43  ;;  %3277 = vmatpush.xpose.msk.msra.mxu0 %vm1529_vm12, %v5327_v1 }
 0x360   :  { %1479 = vst.msk [vmem:[#allocation3 + $0x98] sm:$0xff] %vm1459_vm11, %v1402_v59  ;;  %v2082_v24 = vsel %vm482_vm4, %v2080_v12, %v2081_v51  ;;  %v2085_v12 = vrot.slane %v5020_v42, 2  ;;  %v1410_v43 = vpop.permute.xlu1 %1409  ;;  %v2088_v59 = vrot.slane %v5039_v17, 2  ;;  %v2084_v41 = vsel %vm482_vm4, %v2081_v51, %v2083_v46 }
 0x361   :  { %1480 = vst.msk [vmem:[#allocation3 + $0xa0] sm:$0xff] %vm1459_vm11, %v1404_v8  ;;  %v5425_v8 = vld [vmem:[#allocation3 + $0x88] sm:$0xff]  ;;  %2160 = vrot.lane.b32.xlu1 %v2082_v24, %s3416_s29  ;;  %v2091_v51 = vrot.slane %v5043_v29, 2  ;;  %v2093_v46 = vrot.slane %v5045_v38, 2 }
 0x362   :  { %1816 = vst.msk [vmem:[#allocation3 + $0xc0] sm:$0xff] %vm17_vm0, %v5299_v18  ;;  %v5449_v24 = vsel %vm482_vm4, %v2085_v12, %v2086_v0  ;;  %v1953_v12 = vpop.permute.xlu2 %1952 }
 0x363   :  { %1808 = vst.msk [vmem:[#allocation3 + $0x80] sm:$0xff] %vm17_vm0, %v5177_v16  ;;  %3278 = vmatpush.xpose.msk.msra.mxu0 %vm1529_vm12, %v5340_v22  ;;  %2162 = vrot.lane.b32.xlu2 %v2084_v41, %s3416_s29  ;;  %v2090_v22 = vrot.slane %v5041_v9, 2  ;;  %v2096_v41 = vrot.slane %v5067_v50, 2 }
 0x364   :  { %1809 = vst.msk [vmem:[#allocation3 + $0x88] sm:$0xff] %vm17_vm0, %v5179_v7 }
 0x365   :  { %1490 = vst.msk [vmem:[#allocation3 + $0xf0] sm:$0xff] %vm1459_vm11, %v1424_v4  ;;  %v5456_v4 = vsel %vm482_vm4, %v2086_v0, %v2088_v59  ;;  %2164 = vrot.lane.b32.xlu0 %v5449_v24, %s3416_s29  ;;  %v1414_v0 = vpop.permute.xlu0 %1413  ;;  %v2095_v59 = vrot.slane %v5069_v57, 2 }
 0x366   :  { %1482 = vst.msk [vmem:[#allocation3 + $0xb0] sm:$0xff] %vm1459_vm11, %v1408_v36  ;;  %v5446_v1 = vld [vmem:[#allocation3 + $0xd8] sm:$0xff] }
 0x367   :  { %1483 = vst.msk [vmem:[#allocation3 + $0xb8] sm:$0xff] %vm1459_vm11, %v1410_v43  ;;  %v5460_v36 = vld [vmem:[#allocation3 + $0x98] sm:$0xff]  ;;  %3279 = vmatpush.xpose.msk.msra.mxu0 %vm1529_vm12, %v5211_v39  ;;  %v5482_v39 = vsel %vm482_vm4, %v2090_v22, %v2091_v51  ;;  %v2098_v22 = vrot.slane %v5071_v3, 2 }
 0x368   :  { %6781 = vst [vmem:[#allocation51_spill] sm:$0xff] %v5449_v24  ;;  %v5453_v17 = vld [vmem:[#allocation3 + $0xa0] sm:$0xff]  ;;  %v1416_v43 = vpop.permute.xlu1 %1415 }
 0x369   :  { %1819 = vst.msk [vmem:[#allocation3 + $0xd8] sm:$0xff] %vm17_vm0, %v5305_v60  ;;  %2166 = vrot.lane.b32.xlu1 %v5456_v4, %s3416_s29  ;;  %v5520_v3 = vsel %vm482_vm4, %v2096_v41, %v2098_v22 }
 0x36a   :  { %6782 = vst [vmem:[#allocation52_spill] sm:$0xff] %v5456_v4  ;;  %v5487_v4 = vsel %vm482_vm4, %v2091_v51, %v2093_v46  ;;  %v2100_v51 = vrot.slane %v5073_v5, 2  ;;  %v2101_v46 = vrot.slane %v5075_v49, 2 }
 0x36b   :  { %1812 = vst.msk [vmem:[#allocation3 + $0xa0] sm:$0xff] %vm17_vm0, %v5213_v45  ;;  %3280 = vmatpush.xpose.msk.msra.mxu0 %vm1529_vm12, %v5301_v35  ;;  %2168 = vrot.lane.b32.xlu2 %v5482_v39, %s3416_s29 }
 0x36c   :  { %1811 = vst.msk [vmem:[#allocation3 + $0x98] sm:$0xff] %vm17_vm0, %v5196_v19  ;;  %v5484_v38 = vld [vmem:[#allocation3 + $0xf0] sm:$0xff] }
 0x36d   :  { %2048 = vst.msk [vmem:[#allocation3] sm:$0xff] %vm449_vm3, %v1953_v12  ;;  %v5494_v12 = vsel %vm482_vm4, %v2095_v59, %v2096_v41  ;;  %v5498_v35 = vld [vmem:[#allocation3 + $0xb0] sm:$0xff]  ;;  %2170 = vrot.lane.b32.xlu0 %v5487_v4, %s3416_s29  ;;  %v2106_v41 = vrot.slane %v5108_v62, 2 }
 0x36e   :  { %1485 = vst.msk [vmem:[#allocation3 + $0xc8] sm:$0xff] %vm1459_vm11, %v1414_v0  ;;  %v5491_v24 = vld [vmem:[#allocation3 + $0xb8] sm:$0xff]  ;;  %v1959_v0 = vpop.permute.xlu2 %1958 }
 0x36f   :  { %1486 = vst.msk [vmem:[#allocation3 + $0xd0] sm:$0xff] %vm1459_vm11, %v1416_v43  ;;  %3281 = vmatpush.xpose.msk.msra.mxu0 %vm1529_vm12, %v5309_v33  ;;  %v1420_v43 = vpop.permute.xlu0 %1419 }
 0x370   :  { %6783 = vst [vmem:[#allocation53_spill] sm:$0xff] %v5482_v39  ;;  %v1422_v59 = vpop.permute.xlu1 %1421  ;;  %v2103_v39 = vrot.slane %v5102_v27, 2 }
 0x371   :  { %6784 = vst [vmem:[#allocation54_spill] sm:$0xff] %v5487_v4  ;;  %2172 = vrot.lane.b32.xlu1 %v5494_v12, %s3416_s29 }
 0x372   :  { %1822 = vst.msk [vmem:[#allocation3 + $0xf0] sm:$0xff] %vm17_vm0, %v5378_v53 }
 0x373   :  { %6785 = vst [vmem:[#allocation55_spill] sm:$0xff] %v5494_v12  ;;  %3282 = vmatpush.xpose.msk.msra.mxu0 %vm1529_vm12, %v5165_v13  ;;  %v5525_v12 = vsel %vm482_vm4, %v2100_v51, %v2101_v46  ;;  %2174 = vrot.lane.b32.xlu2 %v5520_v3, %s3416_s29  ;;  %v2105_v13 = vrot.slane %v5106_v20, 2 }
 0x374   :  { %1815 = vst.msk [vmem:[#allocation3 + $0xb8] sm:$0xff] %vm17_vm0, %v5260_v55 }
 0x375   :  { %1814 = vst.msk [vmem:[#allocation3 + $0xb0] sm:$0xff] %vm17_vm0, %v5252_v40  ;;  %v5529_v27 = vld [vmem:[#allocation3 + $0xc8] sm:$0xff]  ;;  %2176 = vrot.lane.b32.xlu0 %v5525_v12, %s3416_s29 }
 0x376   :  { %2051 = vst.msk [vmem:[#allocation3 + $0x18] sm:$0xff] %vm449_vm3, %v1959_v0  ;;  %v5522_v33 = vld [vmem:[#allocation3 + $0xd0] sm:$0xff]  ;;  %v5532_v0 = vsel %vm482_vm4, %v2101_v46, %v2103_v39  ;;  %v2108_v39 = vrot.slane %v5110_v54, 2  ;;  %v1965_v22 = vpop.permute.xlu2 %1964 }
 0x377   :  { %1488 = vst.msk [vmem:[#allocation3 + $0xe0] sm:$0xff] %vm1459_vm11, %v1420_v43  ;;  %3283 = vmatpush.xpose.msk.msra.mxu0 %vm1529_vm12, %v5258_v2  ;;  %v1426_v51 = vpop.permute.xlu0 %1425  ;;  %v2110_v43 = vrot.slane %v5136_v10, 2 }
 0x378   :  { %1489 = vst.msk [vmem:[#allocation3 + $0xe8] sm:$0xff] %vm1459_vm11, %v1422_v59  ;;  %v5547_v46 = vpop.permute.xlu1 %1526  ;;  %v2111_v59 = vrot.slane %v5134_v56, 2 }
 0x379   :  { %6786 = vst [vmem:[#allocation56_spill] sm:$0xff] %v5520_v3  ;;  %2178 = vrot.lane.b32.xlu1 %v5532_v0, %s3416_s29 }
 0x37a   :  { %6787 = vst [vmem:[#allocation57_spill] sm:$0xff] %v5525_v12  ;;  %v5561_v12 = vsel %vm482_vm4, %v2106_v41, %v2108_v39 }
 0x37b   :  { %1818 = vst.msk [vmem:[#allocation3 + $0xd0] sm:$0xff] %vm17_vm0, %v5303_v32  ;;  %3284 = vmatpush.xpose.msk.msra.mxu0 %vm1529_vm12, %v5266_v25  ;;  %v2113_v25 = vrot.slane %v5140_v47, 2 }
 0x37c   :  { %6788 = vst [vmem:[#allocation58_spill] sm:$0xff] %v5532_v0  ;;  %v5558_v0 = vsel %vm482_vm4, %v2105_v13, %v2106_v41  ;;  %v2115_v13 = vrot.slane %v5142_v30, 2  ;;  %v2116_v41 = vrot.slane %v5144_v31, 2 }
 0x37d   :  { %1817 = vst.msk [vmem:[#allocation3 + $0xc8] sm:$0xff] %vm17_vm0, %v5285_v28  ;;  %2180 = vrot.lane.b32.xlu2 %v5558_v0, %s3416_s29  ;;  %2182 = vrot.lane.b32.xlu0 %v5561_v12, %s3416_s29 }
 0x37e   :  { %6789 = vst [vmem:[#allocation59_spill] sm:$0xff] %v5547_v46  ;;  %v1520_v54 = vld [vmem:[#allocation3 + $0xe0] sm:$0xff]  ;;  %v1971_v39 = vpop.permute.xlu2 %1970  ;;  %v5592_v47 = vsel %vm482_vm4, %v2115_v13, %v2116_v41  ;;  %v2125_v13 = vrot.slane %v5209_v23, 2 }
 0x37f   :  { %2054 = vst.msk [vmem:[#allocation3 + $0x30] sm:$0xff] %vm449_vm3, %v1965_v22  ;;  %v1521_v2 = vld [vmem:[#allocation3 + $0xe8] sm:$0xff]  ;;  %v5566_v22 = vsel %vm482_vm4, %v2110_v43, %v2111_v59  ;;  %3285 = vmatpush.xpose.msk.msra.mxu0 %vm1529_vm12, %v5138_v14  ;;  %v5588_v14 = vsel %vm482_vm4, %v2111_v59, %v2113_v25  ;;  %v2120_v59 = vrot.slane %v5177_v16, 2 }
 0x380   :  { %1491 = vst.msk [vmem:[#allocation3 + $0xf8] sm:$0xff] %vm1459_vm11, %v1426_v51  ;;  %v1955_v51 = vpop.permute.xlu0 %1954  ;;  %v1957_v3 = vpop.permute.xlu1 %1956 }
 0x381   :  { %1821 = vst.msk [vmem:[#allocation3 + $0xe8] sm:$0xff] %vm17_vm0, %v5346_v21  ;;  %2184 = vrot.lane.b32.xlu1 %v5566_v22, %s3416_s29 }
 0x382   :  { %6790 = vst [vmem:[#allocation60_spill] sm:$0xff] %v5558_v0  ;;  %v2118_v0 = vrot.slane %v5173_v11, 2 }
 0x383   :  { %1820 = vst.msk [vmem:[#allocation3 + $0xe0] sm:$0xff] %vm17_vm0, %v5344_v44  ;;  %3286 = vmatpush.xpose.msk.msra.mxu0 %vm1529_vm12, %v5225_v52  ;;  %v2121_v52 = vrot.slane %v5179_v7, 2 }
 0x384   :  { %2057 = vst.msk [vmem:[#allocation3 + $0x48] sm:$0xff] %vm449_vm3, %v1971_v39  ;;  %v5595_v11 = vsel %vm482_vm4, %v2116_v41, %v2118_v0  ;;  %v2126_v41 = vrot.slane %v5196_v19, 2 }
 0x385   :  { %2049 = vst.msk [vmem:[#allocation3 + $0x8] sm:$0xff] %vm449_vm3, %v1955_v51  ;;  %2186 = vrot.lane.b32.xlu2 %v5588_v14, %s3416_s29  ;;  %2188 = vrot.lane.b32.xlu0 %v5592_v47, %s3416_s29  ;;  %v5627_v51 = vsel %vm482_vm4, %v2120_v59, %v2121_v52  ;;  %v6795_v59 = vld [vmem:[#allocation14_spill] sm:$0xff] }
 0x386   :  { %2050 = vst.msk [vmem:[#allocation3 + $0x10] sm:$0xff] %vm449_vm3, %v1957_v3  ;;  %v2123_v3 = vrot.slane %v5181_v34, 2  ;;  %v1977_v0 = vpop.permute.xlu2 %1976  ;;  %v5621_v34 = vld [vmem:[%s6450_s1] sm:$0xff] }
 0x387   :  { %v1523_v43 = vld [vmem:[#allocation3 + $0xf8] sm:$0xff]  ;;  %3287 = vmatpush.xpose.msk.msra.mxu0 %vm1529_vm12, %v5219_v63  ;;  %2060 = vst.msk [vmem:[#allocation3 + $0x60] sm:$0xff] %vm449_vm3, %v1977_v0  ;;  %v6791_v63 = vld [vmem:[#allocation40_spill] sm:$0xff] }
 0x388   :  { %3290 = vmatpush.xpose.msk.msra.mxu1 %vm1529_vm12, %v1523_v43  ;;  %1823 = vst.msk [vmem:[#allocation3 + $0xf8] sm:$0xff] %vm17_vm0, %v5385_v61  ;;  %v1963_v25 = vpop.permute.xlu1 %1962  ;;  %v5624_v39 = vsel %vm482_vm4, %v2121_v52, %v2123_v3  ;;  %v5630_v43 = vsel %vm482_vm4, %v2125_v13, %v2126_v41  ;;  %v6794_v52 = vld [vmem:[#allocation16_spill] sm:$0xff] }
 0x389   :  { %2190 = vrot.lane.b32.xlu1 %v5595_v11, %s3416_s29  ;;  %2053 = vst.msk [vmem:[#allocation3 + $0x28] sm:$0xff] %vm449_vm3, %v1963_v25  ;;  %v2131_v3 = vrot.slane %v6794_v52, 2 }
 0x38a   :  { %6792 = vst [vmem:[#allocation40_spill] sm:$0xff] %v5624_v39 }
 0x38b   :  { %3288 = vmatpush.xpose.msk.msra.mxu0 %vm1529_vm12, %v6791_v63  ;;  %6793 = vst [vmem:[#allocation61_spill] sm:$0xff] %v5630_v43  ;;  %v6796_v63 = vld [vmem:[#allocation22_spill] sm:$0xff] }
 0x38c   :  { %3291 = vmatpush.xpose.msk.msra.mxu1 %vm1529_vm12, %v5484_v38  ;;  %v1961_v38 = vpop.permute.xlu0 %1960 }
 0x38d   :  { %2052 = vst.msk [vmem:[#allocation3 + $0x20] sm:$0xff] %vm449_vm3, %v1961_v38  ;;  %2194 = vrot.lane.b32.xlu0 %v5624_v39, %s3416_s29  ;;  %2192 = vrot.lane.b32.xlu2 %v5627_v51, %s3416_s29  ;;  %v2128_v38 = vrot.slane %v6795_v59, 2 }
 0x38e   :  { %3289 = vmatmul.msk.f32.vlgmr.msra.gmra.mxu0 %vm1529_vm12, %v5621_v34  ;;  %v1983_v0 = vpop.permute.xlu2 %1982 }
 0x38f   :  { %2063 = vst.msk [vmem:[#allocation3 + $0x78] sm:$0xff] %vm449_vm3, %v1983_v0  ;;  %v5654_v39 = vsel %vm482_vm4, %v2126_v41, %v2128_v38 }
 0x390   :  { %3292 = vmatpush.xpose.msk.msra.mxu1 %vm1529_vm12, %v1521_v2  ;;  %v2130_v2 = vrot.slane %v5213_v45, 2  ;;  %v1969_v13 = vpop.permute.xlu1 %1968 }
 0x391   :  { %2196 = vrot.lane.b32.xlu1 %v5630_v43, %s3416_s29  ;;  %2056 = vst.msk [vmem:[#allocation3 + $0x40] sm:$0xff] %vm449_vm3, %v1969_v13  ;;  %v2141_v13 = vrot.slane %v5285_v28, 2 }
 0x392   :  { %v5651_v43 = vsel %vm482_vm4, %v2130_v2, %v2131_v3  ;;  %v6799_v2 = vld [vmem:[#allocation24_spill] sm:$0xff] }
 0x393   :  { %6797 = vst [vmem:[#allocation14_spill] sm:$0xff] %v5651_v43  ;;  %v2138_v41 = vrot.slane %v6799_v2, 2 }
 0x394   :  { %3293 = vmatpush.xpose.msk.msra.mxu1 %vm1529_vm12, %v1520_v54  ;;  %v1967_v25 = vpop.permute.xlu0 %1966  ;;  %v2133_v54 = vrot.slane %v6796_v63, 2 }
 0x395   :  { %2055 = vst.msk [vmem:[#allocation3 + $0x38] sm:$0xff] %vm449_vm3, %v1967_v25  ;;  %2200 = vrot.lane.b32.xlu0 %v5651_v43, %s3416_s29  ;;  %2198 = vrot.lane.b32.xlu2 %v5654_v39, %s3416_s29 }
 0x396   :  { %v5657_v59 = vsel %vm482_vm4, %v2131_v3, %v2133_v54  ;;  %v1989_v0 = vpop.permute.xlu2 %1988  ;;  %v2135_v3 = vrot.slane %v5252_v40, 2 }
 0x397   :  { %6798 = vst [vmem:[#allocation22_spill] sm:$0xff] %v5657_v59 }
 0x398   :  { %3294 = vmatpush.xpose.msk.msra.mxu1 %vm1529_vm12, %v5446_v1  ;;  %v2136_v1 = vrot.slane %v5260_v55, 2  ;;  %v1975_v25 = vpop.permute.xlu1 %1974  ;;  %2066 = vst.msk [vmem:[#allocation3 + $0x90] sm:$0xff] %vm449_vm3, %v1989_v0  ;;  %v6803_v0 = vld [vmem:[#allocation29_spill] sm:$0xff] }
 0x399   :  { %2202 = vrot.lane.b32.xlu1 %v5657_v59, %s3416_s29  ;;  %2059 = vst.msk [vmem:[#allocation3 + $0x58] sm:$0xff] %vm449_vm3, %v1975_v25 }
 0x39a   :  { %v5678_v63 = vsel %vm482_vm4, %v2136_v1, %v2138_v41  ;;  %v5681_v54 = vsel %vm482_vm4, %v2135_v3, %v2136_v1  ;;  %v2146_v1 = vrot.slane %v5305_v60, 2  ;;  %v2143_v3 = vrot.slane %v6803_v0, 2 }
 0x39b   :  { %6800 = vst [vmem:[#allocation24_spill] sm:$0xff] %v5678_v63 }
 0x39c   :  { %3295 = vmatpush.xpose.msk.msra.mxu1 %vm1529_vm12, %v5522_v33  ;;  %v1973_v38 = vpop.permute.xlu0 %1972  ;;  %v2140_v33 = vrot.slane %v5299_v18, 2  ;;  %6801 = vst [vmem:[#allocation62_spill] sm:$0xff] %v5681_v54 }
 0x39d   :  { %2058 = vst.msk [vmem:[#allocation3 + $0x50] sm:$0xff] %vm449_vm3, %v1973_v38  ;;  %2206 = vrot.lane.b32.xlu0 %v5678_v63, %s3416_s29  ;;  %2204 = vrot.lane.b32.xlu2 %v5681_v54, %s3416_s29  ;;  %v5707_v63 = vsel %vm482_vm4, %v2141_v13, %v2143_v3 }
 0x39e   :  { %v5684_v2 = vsel %vm482_vm4, %v2140_v33, %v2141_v13  ;;  %v1995_v41 = vpop.permute.xlu2 %1994  ;;  %v6804_v33 = vld [vmem:[#allocation41_spill] sm:$0xff] }
 0x39f   :  { %6802 = vst [vmem:[#allocation63_spill] sm:$0xff] %v5684_v2 }
 0x3a0   :  { %3296 = vmatpush.xpose.msk.msra.mxu1 %vm1529_vm12, %v5529_v27  ;;  %v2145_v27 = vrot.slane %v5303_v32, 2  ;;  %v1981_v25 = vpop.permute.xlu1 %1980  ;;  %2069 = vst.msk [vmem:[#allocation3 + $0xa8] sm:$0xff] %vm449_vm3, %v1995_v41 }
 0x3a1   :  { %2208 = vrot.lane.b32.xlu1 %v5684_v2, %s3416_s29  ;;  %2062 = vst.msk [vmem:[#allocation3 + $0x70] sm:$0xff] %vm449_vm3, %v1981_v25  ;;  %v2156_v25 = vrot.slane %v5385_v61, 2 }
 0x3a2   :  { %v5704_v2 = vsel %vm482_vm4, %v2145_v27, %v2146_v1  ;;  %v6806_v27 = vld [vmem:[#allocation45_spill] sm:$0xff] }
 0x3a3   :  { %v2153_v13 = vrot.slane %v6806_v27, 2 }
 0x3a4   :  { %3297 = vmatpush.xpose.msk.msra.mxu1 %vm1529_vm12, %v5413_v6  ;;  %v1979_v38 = vpop.permute.xlu0 %1978  ;;  %v2148_v6 = vrot.slane %v6804_v33, 2  ;;  %v6807_v33 = vld [vmem:[#allocation50_spill] sm:$0xff] }
 0x3a5   :  { %2061 = vst.msk [vmem:[#allocation3 + $0x68] sm:$0xff] %vm449_vm3, %v1979_v38  ;;  %2212 = vrot.lane.b32.xlu0 %v5704_v2, %s3416_s29  ;;  %2210 = vrot.lane.b32.xlu2 %v5707_v63, %s3416_s29 }
 0x3a6   :  { %v5710_v0 = vsel %vm482_vm4, %v2146_v1, %v2148_v6  ;;  %v2001_v41 = vpop.permute.xlu2 %2000  ;;  %v2150_v1 = vrot.slane %v5344_v44, 2 }
 0x3a7   :  { %6805 = vst [vmem:[#allocation29_spill] sm:$0xff] %v5710_v0 }
 0x3a8   :  { %3298 = vmatpush.xpose.msk.msra.mxu1 %vm1529_vm12, %v5491_v24  ;;  %v2151_v24 = vrot.slane %v5346_v21, 2  ;;  %v1987_v38 = vpop.permute.xlu1 %1986  ;;  %2072 = vst.msk [vmem:[#allocation3 + $0xc0] sm:$0xff] %vm449_vm3, %v2001_v41  ;;  %v2158_v41 = vrot.slane %v5387_v58, 2 }
 0x3a9   :  { %2214 = vrot.lane.b32.xlu1 %v5710_v0, %s3416_s29  ;;  %2065 = vst.msk [vmem:[#allocation3 + $0x88] sm:$0xff] %vm449_vm3, %v1987_v38 }
 0x3aa   :  { %v5731_v6 = vsel %vm482_vm4, %v2151_v24, %v2153_v13  ;;  %v5734_v27 = vsel %vm482_vm4, %v2150_v1, %v2151_v24 }
 0x3ac   :  { %3299 = vmatpush.xpose.msk.msra.mxu1 %vm1529_vm12, %v5498_v35  ;;  %v1985_v3 = vpop.permute.xlu0 %1984  ;;  %v2155_v35 = vrot.slane %v5378_v53, 2 }
 0x3ad   :  { %2064 = vst.msk [vmem:[#allocation3 + $0x80] sm:$0xff] %vm449_vm3, %v1985_v3  ;;  %2218 = vrot.lane.b32.xlu0 %v5731_v6, %s3416_s29  ;;  %2216 = vrot.lane.b32.xlu2 %v5734_v27, %s3416_s29  ;;  %v6808_v3 = vld [vmem:[#allocation43_spill] sm:$0xff] }
 0x3ae   :  { %v5737_v0 = vsel %vm482_vm4, %v2155_v35, %v2156_v25  ;;  %v2007_v13 = vpop.permute.xlu2 %2006 }
 0x3af   :  { %2075 = vst.msk [vmem:[#allocation3 + $0xd8] sm:$0xff] %vm449_vm3, %v2007_v13 }
 0x3b0   :  { %3300 = vmatpush.xpose.msk.msra.mxu1 %vm1529_vm12, %v6807_v33  ;;  %v1993_v1 = vpop.permute.xlu1 %1992 }
 0x3b1   :  { %2220 = vrot.lane.b32.xlu1 %v5737_v0, %s3416_s29  ;;  %2068 = vst.msk [vmem:[#allocation3 + $0xa0] sm:$0xff] %vm449_vm3, %v1993_v1 }
 0x3b4   :  { %3301 = vmatpush.xpose.msk.msra.mxu1 %vm1529_vm12, %v5453_v17  ;;  %v1991_v24 = vpop.permute.xlu0 %1990  ;;  %v5754_v17 = vsel %vm482_vm4, %v2156_v25, %v2158_v41 }
 0x3b5   :  { %2067 = vst.msk [vmem:[#allocation3 + $0x98] sm:$0xff] %vm449_vm3, %v1991_v24  ;;  %2290 = vrot.lane.b32.xlu0 %v5020_v42, %s3417_s30  ;;  %2222 = vrot.lane.b32.xlu2 %v5754_v17, %s3416_s29 }
 0x3b6   :  { %v2013_v58 = vpop.permute.xlu2 %2012 }
 0x3b7   :  { %2078 = vst.msk [vmem:[#allocation3 + $0xf0] sm:$0xff] %vm449_vm3, %v2013_v58 }
 0x3b8   :  { %3302 = vmatpush.xpose.msk.msra.mxu1 %vm1529_vm12, %v5460_v36  ;;  %v1999_v36 = vpop.permute.xlu1 %1998 }
 0x3b9   :  { %2292 = vrot.lane.b32.xlu1 %v5022_v15, %s3417_s30  ;;  %2071 = vst.msk [vmem:[#allocation3 + $0xb8] sm:$0xff] %vm449_vm3, %v1999_v36 }
 0x3bc   :  { %3303 = vmatpush.xpose.msk.msra.mxu1 %vm1529_vm12, %v6808_v3  ;;  %v1997_v38 = vpop.permute.xlu0 %1996 }
 0x3bd   :  { %2070 = vst.msk [vmem:[#allocation3 + $0xb0] sm:$0xff] %vm449_vm3, %v1997_v38  ;;  %2296 = vrot.lane.b32.xlu0 %v5043_v29, %s3417_s30  ;;  %2294 = vrot.lane.b32.xlu2 %v5041_v9, %s3417_s30 }
 0x3be   :  { %v2163_v42 = vpop.permute.xlu2 %2162 }
 0x3bf   :  { %2257 = vst.msk [vmem:[#allocation3 + $0x8] sm:$0xff] %vm659_vm5, %v2163_v42 }
 0x3c0   :  { %3304 = vmatpush.xpose.msk.msra.mxu1 %vm1529_vm12, %v5425_v8  ;;  %v2005_v8 = vpop.permute.xlu1 %2004 }
 0x3c1   :  { %2298 = vrot.lane.b32.xlu1 %v5069_v57, %s3417_s30  ;;  %2074 = vst.msk [vmem:[#allocation3 + $0xd0] sm:$0xff] %vm449_vm3, %v2005_v8 }
 0x3c4   :  { %3305 = vmatpush.xpose.msk.msra.mxu1 %vm1529_vm12, %v5420_v37  ;;  %v2003_v15 = vpop.permute.xlu0 %2002 }
 0x3c5   :  { %2073 = vst.msk [vmem:[#allocation3 + $0xc8] sm:$0xff] %vm449_vm3, %v2003_v15  ;;  %2302 = vrot.lane.b32.xlu0 %v5073_v5, %s3417_s30  ;;  %2300 = vrot.lane.b32.xlu2 %v5067_v50, %s3417_s30 }
 0x3c6   :  { %v2169_v37 = vpop.permute.xlu2 %2168 }
 0x3c7   :  { %3306 = vmatmul.msk.f32.vlgmr.msra.gmra.mxu1 %vm1529_vm12, %v5621_v34  ;;  %2260 = vst.msk [vmem:[#allocation3 + $0x20] sm:$0xff] %vm659_vm5, %v2169_v37 }
 0x3c9   :  { %2304 = vrot.lane.b32.xlu1 %v5075_v49, %s3417_s30  ;;  %v2011_v34 = vpop.permute.xlu1 %2010 }
 0x3ca   :  { %2077 = vst.msk [vmem:[#allocation3 + $0xe8] sm:$0xff] %vm449_vm3, %v2011_v34 }
 0x3cc   :  { %v2009_v35 = vpop.permute.xlu0 %2008 }
 0x3cd   :  { %2076 = vst.msk [vmem:[#allocation3 + $0xe0] sm:$0xff] %vm449_vm3, %v2009_v35  ;;  %2308 = vrot.lane.b32.xlu0 %v5108_v62, %s3417_s30  ;;  %2306 = vrot.lane.b32.xlu2 %v5106_v20, %s3417_s30 }
 0x3ce   :  { %v2175_v25 = vpop.permute.xlu2 %2174 }
 0x3cf   :  { %2263 = vst.msk [vmem:[#allocation3 + $0x38] sm:$0xff] %vm659_vm5, %v2175_v25 }
 0x3d1   :  { %2310 = vrot.lane.b32.xlu1 %v5136_v10, %s3417_s30 }
 0x3d3   :  { %v2161_v13 = vpop.permute.xlu1 %2160 }
 0x3d4   :  { %v2015_v33 = vpop.permute.xlu0 %2014  ;;  %2256 = vst.msk [vmem:[#allocation3] sm:$0xff] %vm659_vm5, %v2161_v13 }
 0x3d5   :  { %2079 = vst.msk [vmem:[#allocation3 + $0xf8] sm:$0xff] %vm449_vm3, %v2015_v33  ;;  %2314 = vrot.lane.b32.xlu0 %v5142_v30, %s3417_s30  ;;  %2312 = vrot.lane.b32.xlu2 %v5134_v56, %s3417_s30 }
 0x3d7   :  { %v2181_v41 = vpop.permute.xlu2 %2180 }
 0x3d8   :  { %2266 = vst.msk [vmem:[#allocation3 + $0x50] sm:$0xff] %vm659_vm5, %v2181_v41 }
 0x3d9   :  { %2316 = vrot.lane.b32.xlu1 %v5144_v31, %s3417_s30 }
 0x3db   :  { %v2167_v1 = vpop.permute.xlu1 %2166 }
 0x3dc   :  { %v2165_v24 = vpop.permute.xlu0 %2164  ;;  %2259 = vst.msk [vmem:[#allocation3 + $0x18] sm:$0xff] %vm659_vm5, %v2167_v1  ;;  %v5853_v1 = vld [vmem:[#allocation2 + $0x180] sm:$0xff] }
 0x3dd   :  { %2258 = vst.msk [vmem:[#allocation3 + $0x10] sm:$0xff] %vm659_vm5, %v2165_v24  ;;  %2320 = vrot.lane.b32.xlu0 %v5179_v7, %s3417_s30  ;;  %2318 = vrot.lane.b32.xlu2 %v5177_v16, %s3417_s30 }
 0x3df   :  { %v2187_v3 = vpop.permute.xlu2 %2186 }
 0x3e0   :  { %2269 = vst.msk [vmem:[#allocation3 + $0x68] sm:$0xff] %vm659_vm5, %v2187_v3  ;;  %v5856_v3 = vld [vmem:[#allocation2 + $0x188] sm:$0xff] }
 0x3e1   :  { %2322 = vrot.lane.b32.xlu1 %v5209_v23, %s3417_s30 }
 0x3e3   :  { %v2173_v38 = vpop.permute.xlu1 %2172 }
 0x3e4   :  { %v2171_v58 = vpop.permute.xlu0 %2170  ;;  %2262 = vst.msk [vmem:[#allocation3 + $0x30] sm:$0xff] %vm659_vm5, %v2173_v38 }
 0x3e5   :  { %2261 = vst.msk [vmem:[#allocation3 + $0x28] sm:$0xff] %vm659_vm5, %v2171_v58  ;;  %2326 = vrot.lane.b32.xlu0 %v5213_v45, %s3417_s30  ;;  %2324 = vrot.lane.b32.xlu2 %v5196_v19, %s3417_s30 }
 0x3e7   :  { %v2193_v42 = vpop.permute.xlu2 %2192 }
 0x3e8   :  { %2272 = vst.msk [vmem:[#allocation3 + $0x80] sm:$0xff] %vm659_vm5, %v2193_v42 }
 0x3e9   :  { %2328 = vrot.lane.b32.xlu1 %v6794_v52, %s3417_s30 }
 0x3eb   :  { %v2179_v15 = vpop.permute.xlu1 %2178 }
 0x3ec   :  { %v2177_v36 = vpop.permute.xlu0 %2176  ;;  %2265 = vst.msk [vmem:[#allocation3 + $0x48] sm:$0xff] %vm659_vm5, %v2179_v15 }
 0x3ed   :  { %2264 = vst.msk [vmem:[#allocation3 + $0x40] sm:$0xff] %vm659_vm5, %v2177_v36  ;;  %2332 = vrot.lane.b32.xlu0 %v5260_v55, %s3417_s30  ;;  %2330 = vrot.lane.b32.xlu2 %v5252_v40, %s3417_s30 }
 0x3ef   :  { %v2199_v37 = vpop.permute.xlu2 %2198 }
 0x3f0   :  { %2275 = vst.msk [vmem:[#allocation3 + $0x98] sm:$0xff] %vm659_vm5, %v2199_v37  ;;  %v6809_v37 = vld [vmem:[#allocation31_spill] sm:$0xff] }
 0x3f1   :  { %2334 = vrot.lane.b32.xlu1 %v5299_v18, %s3417_s30  ;;  %v6828_v18 = vld [vmem:[#allocation19_spill] sm:$0xff] }
 0x3f3   :  { %v2185_v35 = vpop.permute.xlu1 %2184 }
 0x3f4   :  { %v2183_v8 = vpop.permute.xlu0 %2182  ;;  %2268 = vst.msk [vmem:[#allocation3 + $0x60] sm:$0xff] %vm659_vm5, %v2185_v35  ;;  %v6810_v35 = vld [vmem:[#allocation30_spill] sm:$0xff] }
 0x3f5   :  { %2267 = vst.msk [vmem:[#allocation3 + $0x58] sm:$0xff] %vm659_vm5, %v2183_v8  ;;  %2338 = vrot.lane.b32.xlu0 %v5303_v32, %s3417_s30  ;;  %2336 = vrot.lane.b32.xlu2 %v5285_v28, %s3417_s30  ;;  %v6837_v32 = vld [vmem:[#allocation51_spill] sm:$0xff] }
 0x3f7   :  { %v2205_v25 = vpop.permute.xlu2 %2204 }
 0x3f8   :  { %2278 = vst.msk [vmem:[#allocation3 + $0xb0] sm:$0xff] %vm659_vm5, %v2205_v25 }
 0x3f9   :  { %2340 = vrot.lane.b32.xlu1 %v5305_v60, %s3417_s30 }
 0x3fb   :  { %v2191_v33 = vpop.permute.xlu1 %2190 }
 0x3fc   :  { %v2189_v34 = vpop.permute.xlu0 %2188  ;;  %2271 = vst.msk [vmem:[#allocation3 + $0x78] sm:$0xff] %vm659_vm5, %v2191_v33 }
 0x3fd   :  { %2270 = vst.msk [vmem:[#allocation3 + $0x70] sm:$0xff] %vm659_vm5, %v2189_v34  ;;  %2344 = vrot.lane.b32.xlu0 %v5346_v21, %s3417_s30  ;;  %2342 = vrot.lane.b32.xlu2 %v5344_v44, %s3417_s30  ;;  %v6811_v34 = vld [vmem:[#allocation32_spill] sm:$0xff] }
 0x3ff   :  { %v2211_v41 = vpop.permute.xlu2 %2210 }
 0x400   :  { %2281 = vst.msk [vmem:[#allocation3 + $0xc8] sm:$0xff] %vm659_vm5, %v2211_v41  ;;  %v6812_v41 = vld [vmem:[#allocation37_spill] sm:$0xff] }
 0x401   :  { %2346 = vrot.lane.b32.xlu1 %v5378_v53, %s3417_s30 }
 0x403   :  { %v2197_v24 = vpop.permute.xlu1 %2196 }
 0x404   :  { %v2195_v13 = vpop.permute.xlu0 %2194  ;;  %2274 = vst.msk [vmem:[#allocation3 + $0x90] sm:$0xff] %vm659_vm5, %v2197_v24  ;;  %v6813_v24 = vld [vmem:[#allocation35_spill] sm:$0xff] }
 0x405   :  { %2273 = vst.msk [vmem:[#allocation3 + $0x88] sm:$0xff] %vm659_vm5, %v2195_v13  ;;  %2350 = vrot.lane.b32.xlu0 %v5853_v1, %s3417_s30  ;;  %2348 = vrot.lane.b32.xlu2 %v5385_v61, %s3417_s30 }
 0x407   :  { %v2217_v38 = vpop.permute.xlu2 %2216 }
 0x408   :  { %2284 = vst.msk [vmem:[#allocation3 + $0xe0] sm:$0xff] %vm659_vm5, %v2217_v38 }
 0x409   :  { %2352 = vrot.lane.b32.xlu1 %v5856_v3, %s3417_s30 }
 0x40b   :  { %v2203_v36 = vpop.permute.xlu1 %2202  ;;  %v1646_v42 = vpop.f32.mrf.mxu0 }
 0x40c   :  { %v2201_v58 = vpop.permute.xlu0 %2200  ;;  %2277 = vst.msk [vmem:[#allocation3 + $0xa8] sm:$0xff] %vm659_vm5, %v2203_v36  ;;  %v1647_v15 = vadd.f32 %v1646_v42, %v5547_v46 }
 0x40d   :  { %2276 = vst.msk [vmem:[#allocation3 + $0xa0] sm:$0xff] %vm659_vm5, %v2201_v58  ;;  %2426 = vrot.lane.b32.xlu0 %v6809_v37, %s3418_s10  ;;  %2424 = vrot.lane.b32.xlu2 %v6810_v35, %s3418_s10  ;;  %v6814_v58 = vld [vmem:[#allocation42_spill] sm:$0xff]  ;;  %v6817_v37 = vld [vmem:[#allocation9_spill] sm:$0xff] }
 0x40e   :  { %v1669_v8 = vmax.f32 %v1647_v15, 0.0  ;;  %v6815_v15 = vld [vmem:[#allocation46_spill] sm:$0xff] }
 0x40f   :  { %v2223_v33 = vpop.permute.xlu2 %2222 }
 0x410   :  { %1671 = vst [vmem:[#allocation4] sm:$0xff] %v1669_v8  ;;  %v6816_v8 = vld [vmem:[#allocation44_spill] sm:$0xff] }
 0x411   :  { %2428 = vrot.lane.b32.xlu1 %v6811_v34, %s3418_s10  ;;  %2287 = vst.msk [vmem:[#allocation3 + $0xf8] sm:$0xff] %vm659_vm5, %v2223_v33 }
 0x413   :  { %v2209_v13 = vpop.permute.xlu1 %2208 }
 0x414   :  { %v2207_v25 = vpop.permute.xlu0 %2206  ;;  %2280 = vst.msk [vmem:[#allocation3 + $0xc0] sm:$0xff] %vm659_vm5, %v2209_v13  ;;  %v6818_v13 = vld [vmem:[#allocation8_spill] sm:$0xff] }
 0x415   :  { %2279 = vst.msk [vmem:[#allocation3 + $0xb8] sm:$0xff] %vm659_vm5, %v2207_v25  ;;  %2432 = vrot.lane.b32.xlu0 %v6812_v41, %s3418_s10  ;;  %2430 = vrot.lane.b32.xlu2 %v6813_v24, %s3418_s10 }
 0x417   :  { %v2295_v36 = vpop.permute.xlu2 %2294 }
 0x418   :  { %2388 = vst.msk [vmem:[#allocation3 + $0x10] sm:$0xff] %vm790_vm6, %v2295_v36  ;;  %v6820_v36 = vld [vmem:[#allocation12_spill] sm:$0xff] }
 0x419   :  { %2434 = vrot.lane.b32.xlu1 %v6814_v58, %s3418_s10 }
 0x41b   :  { %v2215_v42 = vpop.permute.xlu1 %2214 }
 0x41c   :  { %v2213_v38 = vpop.permute.xlu0 %2212  ;;  %2283 = vst.msk [vmem:[#allocation3 + $0xd8] sm:$0xff] %vm659_vm5, %v2215_v42 }
 0x41d   :  { %2282 = vst.msk [vmem:[#allocation3 + $0xd0] sm:$0xff] %vm659_vm5, %v2213_v38  ;;  %2438 = vrot.lane.b32.xlu0 %v6815_v15, %s3418_s10  ;;  %2436 = vrot.lane.b32.xlu2 %v6816_v8, %s3418_s10  ;;  %v6819_v38 = vld [vmem:[#allocation7_spill] sm:$0xff]  ;;  %v6829_v8 = vld [vmem:[#allocation26_spill] sm:$0xff] }
 0x41f   :  { %v2301_v25 = vpop.permute.xlu2 %2300 }
 0x420   :  { %2391 = vst.msk [vmem:[#allocation3 + $0x28] sm:$0xff] %vm790_vm6, %v2301_v25  ;;  %v6822_v25 = vld [vmem:[#allocation10_spill] sm:$0xff] }
 0x421   :  { %2440 = vrot.lane.b32.xlu1 %v6817_v37, %s3418_s10 }
 0x423   :  { %v2221_v33 = vpop.permute.xlu1 %2220 }
 0x424   :  { %v2219_v35 = vpop.permute.xlu0 %2218  ;;  %2286 = vst.msk [vmem:[#allocation3 + $0xf0] sm:$0xff] %vm659_vm5, %v2221_v33  ;;  %v6823_v33 = vld [vmem:[#allocation15_spill] sm:$0xff] }
 0x425   :  { %2285 = vst.msk [vmem:[#allocation3 + $0xe8] sm:$0xff] %vm659_vm5, %v2219_v35  ;;  %2444 = vrot.lane.b32.xlu0 %v6818_v13, %s3418_s10  ;;  %2442 = vrot.lane.b32.xlu2 %v6819_v38, %s3418_s10  ;;  %v6821_v35 = vld [vmem:[#allocation11_spill] sm:$0xff] }
 0x427   :  { %v2307_v34 = vpop.permute.xlu2 %2306 }
 0x428   :  { %2394 = vst.msk [vmem:[#allocation3 + $0x40] sm:$0xff] %vm790_vm6, %v2307_v34  ;;  %v6825_v34 = vld [vmem:[#allocation13_spill] sm:$0xff] }
 0x429   :  { %2446 = vrot.lane.b32.xlu1 %v6820_v36, %s3418_s10 }
 0x42b   :  { %v2293_v45 = vpop.permute.xlu1 %2292 }
 0x42c   :  { %v2291_v42 = vpop.permute.xlu0 %2290  ;;  %2387 = vst.msk [vmem:[#allocation3 + $0x8] sm:$0xff] %vm790_vm6, %v2293_v45  ;;  %v6824_v45 = vld [vmem:[#allocation17_spill] sm:$0xff] }
 0x42d   :  { %2386 = vst.msk [vmem:[#allocation3] sm:$0xff] %vm790_vm6, %v2291_v42  ;;  %2450 = vrot.lane.b32.xlu0 %v6821_v35, %s3418_s10  ;;  %2448 = vrot.lane.b32.xlu2 %v6822_v25, %s3418_s10  ;;  %v6826_v42 = vld [vmem:[#allocation21_spill] sm:$0xff] }
 0x42f   :  { %v2313_v24 = vpop.permute.xlu2 %2312 }
 0x430   :  { %2397 = vst.msk [vmem:[#allocation3 + $0x58] sm:$0xff] %vm790_vm6, %v2313_v24  ;;  %v6827_v24 = vld [vmem:[#allocation25_spill] sm:$0xff] }
 0x431   :  { %2452 = vrot.lane.b32.xlu1 %v6823_v33, %s3418_s10 }
 0x433   :  { %v2299_v41 = vpop.permute.xlu1 %2298 }
 0x434   :  { %v2297_v52 = vpop.permute.xlu0 %2296  ;;  %2390 = vst.msk [vmem:[#allocation3 + $0x20] sm:$0xff] %vm790_vm6, %v2299_v41 }
 0x435   :  { %2389 = vst.msk [vmem:[#allocation3 + $0x18] sm:$0xff] %vm790_vm6, %v2297_v52  ;;  %2456 = vrot.lane.b32.xlu0 %v6824_v45, %s3418_s10  ;;  %2454 = vrot.lane.b32.xlu2 %v6825_v34, %s3418_s10 }
 0x437   :  { %v2319_v58 = vpop.permute.xlu2 %2318 }
 0x438   :  { %2400 = vst.msk [vmem:[#allocation3 + $0x70] sm:$0xff] %vm790_vm6, %v2319_v58  ;;  %v6830_v58 = vld [vmem:[#allocation36_spill] sm:$0xff] }
 0x439   :  { %2458 = vrot.lane.b32.xlu1 %v6826_v42, %s3418_s10 }
 0x43b   :  { %v2305_v55 = vpop.permute.xlu1 %2304 }
 0x43c   :  { %v2303_v40 = vpop.permute.xlu0 %2302  ;;  %2393 = vst.msk [vmem:[#allocation3 + $0x38] sm:$0xff] %vm790_vm6, %v2305_v55 }
 0x43d   :  { %2392 = vst.msk [vmem:[#allocation3 + $0x30] sm:$0xff] %vm790_vm6, %v2303_v40  ;;  %2462 = vrot.lane.b32.xlu0 %v6827_v24, %s3418_s10  ;;  %2460 = vrot.lane.b32.xlu2 %v6828_v18, %s3418_s10 }
 0x43f   :  { %v2325_v40 = vpop.permute.xlu2 %2324 }
 0x440   :  { %2403 = vst.msk [vmem:[#allocation3 + $0x88] sm:$0xff] %vm790_vm6, %v2325_v40  ;;  %v6834_v40 = vld [vmem:[#allocation39_spill] sm:$0xff] }
 0x441   :  { %2464 = vrot.lane.b32.xlu1 %v6829_v8, %s3418_s10 }
 0x443   :  { %v2311_v55 = vpop.permute.xlu1 %2310 }
 0x444   :  { %v1666_v52 = vpop.f32.mrf.mxu1  ;;  %v2309_v28 = vpop.permute.xlu0 %2308  ;;  %2396 = vst.msk [vmem:[#allocation3 + $0x50] sm:$0xff] %vm790_vm6, %v2311_v55  ;;  %v6835_v55 = vld [vmem:[#allocation48_spill] sm:$0xff] }
 0x445   :  { %v1667_v41 = vadd.f32 %v1666_v52, %v5547_v46  ;;  %2395 = vst.msk [vmem:[#allocation3 + $0x48] sm:$0xff] %vm790_vm6, %v2309_v28  ;;  %2468 = vrot.lane.b32.xlu0 %v6830_v58, %s3418_s10  ;;  %v6831_v52 = vld [vmem:[#allocation28_spill] sm:$0xff]  ;;  %v6832_v46 = vld [vmem:[#allocation38_spill] sm:$0xff]  ;;  %v2420_v58 = vrot.slane %v5856_v3, 1 }
 0x446   :  { %2466 = vrot.lane.b32.xlu2 %v6831_v52, %s3418_s10 }
 0x447   :  { %v1670_v15 = vmax.f32 %v1667_v41, 0.0  ;;  %v2331_v18 = vpop.permute.xlu2 %2330 }
 0x448   :  { %2406 = vst.msk [vmem:[#allocation3 + $0xa0] sm:$0xff] %vm790_vm6, %v2331_v18  ;;  %v6836_v18 = vld [vmem:[#allocation49_spill] sm:$0xff] }
 0x449   :  { %1672 = vst [vmem:[#allocation4 + $0x8] sm:$0xff] %v1670_v15  ;;  %2470 = vrot.lane.b32.xlu1 %v6832_v46, %s3418_s10  ;;  %v6833_v15 = vld [vmem:[#allocation47_spill] sm:$0xff] }
 0x44b   :  { %v2317_v28 = vpop.permute.xlu1 %2316 }
 0x44c   :  { %v2315_v41 = vpop.permute.xlu0 %2314  ;;  %2399 = vst.msk [vmem:[#allocation3 + $0x68] sm:$0xff] %vm790_vm6, %v2317_v28  ;;  %v2419_v28 = vrot.slane %v5853_v1, 1 }
 0x44d   :  { %2398 = vst.msk [vmem:[#allocation3 + $0x60] sm:$0xff] %vm790_vm6, %v2315_v41  ;;  %2474 = vrot.lane.b32.xlu0 %v6833_v15, %s3418_s10  ;;  %v5950_v41 = vld [vmem:[#allocation2 + $0x190] sm:$0x3] }
 0x44e   :  { %2472 = vrot.lane.b32.xlu2 %v6834_v40, %s3418_s10  ;;  %v5968_v40 = vsel %vm272_vm1, %v2419_v28, %v2420_v58 }
 0x44f   :  { %v2337_v8 = vpop.permute.xlu2 %2336 }
 0x450   :  { %2409 = vst.msk [vmem:[#allocation3 + $0xb8] sm:$0xff] %vm790_vm6, %v2337_v8 }
 0x451   :  { %2476 = vrot.lane.b32.xlu1 %v6835_v55, %s3418_s10 }
 0x453   :  { %v2323_v52 = vpop.permute.xlu1 %2322 }
 0x454   :  { %v2321_v24 = vpop.permute.xlu0 %2320  ;;  %2402 = vst.msk [vmem:[#allocation3 + $0x80] sm:$0xff] %vm790_vm6, %v2323_v52 }
 0x455   :  { %2401 = vst.msk [vmem:[#allocation3 + $0x78] sm:$0xff] %vm790_vm6, %v2321_v24  ;;  %2480 = vrot.lane.b32.xlu0 %v5411_v48, %s3418_s10  ;;  %v2422_v24 = vrot.slane %v5950_v41, 1 }
 0x456   :  { %2478 = vrot.lane.b32.xlu2 %v6836_v18, %s3418_s10 }
 0x457   :  { %v2343_v46 = vpop.permute.xlu2 %2342  ;;  %v5964_v37 = vsel %vm272_vm1, %v2420_v58, %v2422_v24  ;;  %v6839_v58 = vld [vmem:[#allocation52_spill] sm:$0xff] }
 0x458   :  { %2412 = vst.msk [vmem:[#allocation3 + $0xd0] sm:$0xff] %vm790_vm6, %v2343_v46  ;;  %v6838_v46 = vld [vmem:[#allocation53_spill] sm:$0xff] }
 0x459   :  { %2482 = vrot.lane.b32.xlu1 %v5416_v26, %s3418_s10 }
 0x45b   :  { %v2329_v8 = vpop.permute.xlu1 %2328 }
 0x45c   :  { %v2327_v52 = vpop.permute.xlu0 %2326  ;;  %2405 = vst.msk [vmem:[#allocation3 + $0x98] sm:$0xff] %vm790_vm6, %v2329_v8 }
 0x45d   :  { %2404 = vst.msk [vmem:[#allocation3 + $0x90] sm:$0xff] %vm790_vm6, %v2327_v52  ;;  %2486 = vrot.lane.b32.xlu0 %v5964_v37, %s3418_s10 }
 0x45e   :  { %2484 = vrot.lane.b32.xlu2 %v5968_v40, %s3418_s10 }
 0x45f   :  { %v2349_v15 = vpop.permute.xlu2 %2348 }
 0x460   :  { %2415 = vst.msk [vmem:[#allocation3 + $0xe8] sm:$0xff] %vm790_vm6, %v2349_v15  ;;  %v6840_v15 = vld [vmem:[#allocation56_spill] sm:$0xff] }
 0x461   :  { %2557 = vrot.lane.b32.xlu1 %v6837_v32, %s3419_s0 }
 0x463   :  { %v2335_v24 = vpop.permute.xlu1 %2334 }
 0x464   :  { %v2333_v52 = vpop.permute.xlu0 %2332  ;;  %2408 = vst.msk [vmem:[#allocation3 + $0xb0] sm:$0xff] %vm790_vm6, %v2335_v24  ;;  %v6842_v24 = vld [vmem:[#allocation57_spill] sm:$0xff] }
 0x465   :  { %2407 = vst.msk [vmem:[#allocation3 + $0xa8] sm:$0xff] %vm790_vm6, %v2333_v52  ;;  %2561 = vrot.lane.b32.xlu0 %v6838_v46, %s3419_s0  ;;  %v6841_v52 = vld [vmem:[#allocation55_spill] sm:$0xff] }
 0x466   :  { %2559 = vrot.lane.b32.xlu2 %v6839_v58, %s3419_s0 }
 0x467   :  { %v2425_v32 = vpop.permute.xlu2 %2424 }
 0x468   :  { %2520 = vst.msk [vmem:[#allocation3] sm:$0xff] %vm925_vm7, %v2425_v32  ;;  %v6844_v32 = vld [vmem:[#allocation58_spill] sm:$0xff] }
 0x469   :  { %2563 = vrot.lane.b32.xlu1 %v5487_v4, %s3419_s0 }
 0x46b   :  { %v2341_v8 = vpop.permute.xlu1 %2340 }
 0x46c   :  { %v2339_v28 = vpop.permute.xlu0 %2338  ;;  %2411 = vst.msk [vmem:[#allocation3 + $0xc8] sm:$0xff] %vm790_vm6, %v2341_v8 }
 0x46d   :  { %2410 = vst.msk [vmem:[#allocation3 + $0xc0] sm:$0xff] %vm790_vm6, %v2339_v28  ;;  %2567 = vrot.lane.b32.xlu0 %v6840_v15, %s3419_s0  ;;  %v6843_v28 = vld [vmem:[#allocation60_spill] sm:$0xff] }
 0x46e   :  { %2565 = vrot.lane.b32.xlu2 %v6841_v52, %s3419_s0 }
 0x46f   :  { %v2431_v46 = vpop.permute.xlu2 %2430 }
 0x470   :  { %2523 = vst.msk [vmem:[#allocation3 + $0x18] sm:$0xff] %vm925_vm7, %v2431_v46 }
 0x471   :  { %2569 = vrot.lane.b32.xlu1 %v6842_v24, %s3419_s0 }
 0x473   :  { %v2347_v4 = vpop.permute.xlu1 %2346 }
 0x474   :  { %v2345_v58 = vpop.permute.xlu0 %2344  ;;  %2414 = vst.msk [vmem:[#allocation3 + $0xe0] sm:$0xff] %vm790_vm6, %v2347_v4 }
 0x475   :  { %2413 = vst.msk [vmem:[#allocation3 + $0xd8] sm:$0xff] %vm790_vm6, %v2345_v58  ;;  %2573 = vrot.lane.b32.xlu0 %v6843_v28, %s3419_s0 }
 0x476   :  { %2571 = vrot.lane.b32.xlu2 %v6844_v32, %s3419_s0 }
 0x477   :  { %v2437_v52 = vpop.permute.xlu2 %2436 }
 0x478   :  { %2526 = vst.msk [vmem:[#allocation3 + $0x30] sm:$0xff] %vm925_vm7, %v2437_v52 }
 0x479   :  { %2575 = vrot.lane.b32.xlu1 %v5561_v12, %s3419_s0 }
 0x47b   :  { %v2353_v15 = vpop.permute.xlu1 %2352 }
 0x47c   :  { %v2351_v8 = vpop.permute.xlu0 %2350  ;;  %2417 = vst.msk [vmem:[#allocation3 + $0xf8] sm:$0xff] %vm790_vm6, %v2353_v15  ;;  %v6845_v15 = vld [vmem:[#allocation40_spill] sm:$0xff] }
 0x47d   :  { %2416 = vst.msk [vmem:[#allocation3 + $0xf0] sm:$0xff] %vm790_vm6, %v2351_v8  ;;  %2579 = vrot.lane.b32.xlu0 %v5588_v14, %s3419_s0 }
 0x47e   :  { %2577 = vrot.lane.b32.xlu2 %v5566_v22, %s3419_s0 }
 0x47f   :  { %v2443_v46 = vpop.permute.xlu2 %2442 }
 0x480   :  { %2529 = vst.msk [vmem:[#allocation3 + $0x48] sm:$0xff] %vm925_vm7, %v2443_v46 }
 0x481   :  { %2581 = vrot.lane.b32.xlu1 %v5592_v47, %s3419_s0 }
 0x483   :  { %v2429_v58 = vpop.permute.xlu1 %2428 }
 0x484   :  { %v2427_v4 = vpop.permute.xlu0 %2426  ;;  %2522 = vst.msk [vmem:[#allocation3 + $0x10] sm:$0xff] %vm925_vm7, %v2429_v58 }
 0x485   :  { %2521 = vst.msk [vmem:[#allocation3 + $0x8] sm:$0xff] %vm925_vm7, %v2427_v4  ;;  %2585 = vrot.lane.b32.xlu0 %v5627_v51, %s3419_s0  ;;  %v6846_v4 = vld [vmem:[#allocation61_spill] sm:$0xff] }
 0x486   :  { %2583 = vrot.lane.b32.xlu2 %v5595_v11, %s3419_s0 }
 0x487   :  { %v2449_v8 = vpop.permute.xlu2 %2448 }
 0x488   :  { %2532 = vst.msk [vmem:[#allocation3 + $0x60] sm:$0xff] %vm925_vm7, %v2449_v8 }
 0x489   :  { %2587 = vrot.lane.b32.xlu1 %v6845_v15, %s3419_s0 }
 0x48b   :  { %v2435_v24 = vpop.permute.xlu1 %2434 }
 0x48c   :  { %v2433_v52 = vpop.permute.xlu0 %2432  ;;  %2525 = vst.msk [vmem:[#allocation3 + $0x28] sm:$0xff] %vm925_vm7, %v2435_v24  ;;  %v6847_v24 = vld [vmem:[#allocation24_spill] sm:$0xff] }
 0x48d   :  { %2524 = vst.msk [vmem:[#allocation3 + $0x20] sm:$0xff] %vm925_vm7, %v2433_v52  ;;  %2591 = vrot.lane.b32.xlu0 %v5654_v39, %s3419_s0 }
 0x48e   :  { %2589 = vrot.lane.b32.xlu2 %v6846_v4, %s3419_s0 }
 0x48f   :  { %v2455_v58 = vpop.permute.xlu2 %2454 }
 0x490   :  { %2535 = vst.msk [vmem:[#allocation3 + $0x78] sm:$0xff] %vm925_vm7, %v2455_v58 }
 0x491   :  { %2593 = vrot.lane.b32.xlu1 %v5651_v43, %s3419_s0 }
 0x493   :  { %v2441_v32 = vpop.permute.xlu1 %2440 }
 0x494   :  { %v2439_v46 = vpop.permute.xlu0 %2438  ;;  %2528 = vst.msk [vmem:[#allocation3 + $0x40] sm:$0xff] %vm925_vm7, %v2441_v32  ;;  %v6848_v32 = vld [vmem:[#allocation63_spill] sm:$0xff] }
 0x495   :  { %2527 = vst.msk [vmem:[#allocation3 + $0x38] sm:$0xff] %vm925_vm7, %v2439_v46  ;;  %2597 = vrot.lane.b32.xlu0 %v5681_v54, %s3419_s0 }
 0x496   :  { %2595 = vrot.lane.b32.xlu2 %v5657_v59, %s3419_s0 }
 0x497   :  { %v2461_v8 = vpop.permute.xlu2 %2460 }
 0x498   :  { %2538 = vst.msk [vmem:[#allocation3 + $0x90] sm:$0xff] %vm925_vm7, %v2461_v8  ;;  %v2553_v8 = vrot.slane %v5856_v3, 2 }
 0x499   :  { %2599 = vrot.lane.b32.xlu1 %v6847_v24, %s3419_s0  ;;  %v2555_v24 = vrot.slane %v5950_v41, 2 }
 0x49b   :  { %v2447_v43 = vpop.permute.xlu1 %2446 }
 0x49c   :  { %v2445_v52 = vpop.permute.xlu0 %2444  ;;  %2531 = vst.msk [vmem:[#allocation3 + $0x58] sm:$0xff] %vm925_vm7, %v2447_v43  ;;  %v6849_v43 = vld [vmem:[#allocation29_spill] sm:$0xff] }
 0x49d   :  { %2530 = vst.msk [vmem:[#allocation3 + $0x50] sm:$0xff] %vm925_vm7, %v2445_v52  ;;  %2603 = vrot.lane.b32.xlu0 %v5707_v63, %s3419_s0  ;;  %v2552_v52 = vrot.slane %v5853_v1, 2 }
 0x49e   :  { %2601 = vrot.lane.b32.xlu2 %v6848_v32, %s3419_s0 }
 0x4a0   :  { %v2467_v58 = vpop.permute.xlu2 %2466 }
 0x4a1   :  { %2605 = vrot.lane.b32.xlu1 %v5704_v2, %s3419_s0  ;;  %2541 = vst.msk [vmem:[#allocation3 + $0xa8] sm:$0xff] %vm925_vm7, %v2467_v58  ;;  %v6063_v58 = vsel %vm482_vm4, %v2552_v52, %v2553_v8  ;;  %v6076_v52 = vsel %vm482_vm4, %v2553_v8, %v2555_v24  ;;  %v1791_v8 = vld [vmem:[#allocation2 + $0x1a8] sm:$0x3] }
 0x4a3   :  { %v2453_v59 = vpop.permute.xlu1 %2452 }
 0x4a4   :  { %v2451_v46 = vpop.permute.xlu0 %2450  ;;  %2534 = vst.msk [vmem:[#allocation3 + $0x70] sm:$0xff] %vm925_vm7, %v2453_v59 }
 0x4a5   :  { %2533 = vst.msk [vmem:[#allocation3 + $0x68] sm:$0xff] %vm925_vm7, %v2451_v46  ;;  %2609 = vrot.lane.b32.xlu0 %v5734_v27, %s3419_s0 }
 0x4a6   :  { %2607 = vrot.lane.b32.xlu2 %v6849_v43, %s3419_s0 }
 0x4a8   :  { %v2473_v46 = vpop.permute.xlu2 %2472 }
 0x4a9   :  { %2611 = vrot.lane.b32.xlu1 %v5731_v6, %s3419_s0  ;;  %2544 = vst.msk [vmem:[#allocation3 + $0xc0] sm:$0xff] %vm925_vm7, %v2473_v46 }
 0x4ab   :  { %v2459_v59 = vpop.permute.xlu1 %2458 }
 0x4ac   :  { %v2457_v54 = vpop.permute.xlu0 %2456  ;;  %2537 = vst.msk [vmem:[#allocation3 + $0x88] sm:$0xff] %vm925_vm7, %v2459_v59 }
 0x4ad   :  { %2536 = vst.msk [vmem:[#allocation3 + $0x80] sm:$0xff] %vm925_vm7, %v2457_v54  ;;  %2615 = vrot.lane.b32.xlu0 %v5754_v17, %s3419_s0 }
 0x4ae   :  { %2613 = vrot.lane.b32.xlu2 %v5737_v0, %s3419_s0 }
 0x4b0   :  { %v2479_v32 = vpop.permute.xlu2 %2478 }
 0x4b1   :  { %2617 = vrot.lane.b32.xlu1 %v6063_v58, %s3419_s0  ;;  %2547 = vst.msk [vmem:[#allocation3 + $0xd8] sm:$0xff] %vm925_vm7, %v2479_v32  ;;  %v1790_v32 = vld [vmem:[#allocation2 + $0x1a0] sm:$0xff] }
 0x4b3   :  { %v2465_v59 = vpop.permute.xlu1 %2464 }
 0x4b4   :  { %v2463_v54 = vpop.permute.xlu0 %2462  ;;  %2540 = vst.msk [vmem:[#allocation3 + $0xa0] sm:$0xff] %vm925_vm7, %v2465_v59 }
 0x4b5   :  { %2539 = vst.msk [vmem:[#allocation3 + $0x98] sm:$0xff] %vm925_vm7, %v2463_v54  ;;  %2687 = vrot.lane.b32.xlu0 %v5041_v9, %s3420_s14 }
 0x4b6   :  { %2619 = vrot.lane.b32.xlu2 %v6076_v52, %s3419_s0 }
 0x4b8   :  { %v2485_v46 = vpop.permute.xlu2 %2484 }
 0x4b9   :  { %2689 = vrot.lane.b32.xlu1 %v5043_v29, %s3420_s14  ;;  %2550 = vst.msk [vmem:[#allocation3 + $0xf0] sm:$0xff] %vm925_vm7, %v2485_v46 }
 0x4bb   :  { %v2471_v54 = vpop.permute.xlu1 %2470 }
 0x4bc   :  { %v2469_v41 = vpop.permute.xlu0 %2468  ;;  %2543 = vst.msk [vmem:[#allocation3 + $0xb8] sm:$0xff] %vm925_vm7, %v2471_v54 }
 0x4bd   :  { %2542 = vst.msk [vmem:[#allocation3 + $0xb0] sm:$0xff] %vm925_vm7, %v2469_v41  ;;  %2693 = vrot.lane.b32.xlu0 %v5067_v50, %s3420_s14 }
 0x4be   :  { %2691 = vrot.lane.b32.xlu2 %v5069_v57, %s3420_s14 }
 0x4c0   :  { %v2560_v29 = vpop.permute.xlu2 %2559 }
 0x4c1   :  { %2695 = vrot.lane.b32.xlu1 %v5073_v5, %s3420_s14  ;;  %2654 = vst.msk [vmem:[#allocation3 + $0x8] sm:$0xff] %vm1059_vm8, %v2560_v29 }
 0x4c3   :  { %v2477_v24 = vpop.permute.xlu1 %2476 }
 0x4c4   :  { %v2475_v9 = vpop.permute.xlu0 %2474  ;;  %2546 = vst.msk [vmem:[#allocation3 + $0xd0] sm:$0xff] %vm925_vm7, %v2477_v24  ;;  %v1789_v24 = vld [vmem:[#allocation2 + $0x198] sm:$0xff] }
 0x4c5   :  { %2545 = vst.msk [vmem:[#allocation3 + $0xc8] sm:$0xff] %vm925_vm7, %v2475_v9  ;;  %2699 = vrot.lane.b32.xlu0 %v5106_v20, %s3420_s14 }
 0x4c6   :  { %2697 = vrot.lane.b32.xlu2 %v5075_v49, %s3420_s14 }
 0x4c8   :  { %v2566_v57 = vpop.permute.xlu2 %2565 }
 0x4c9   :  { %2701 = vrot.lane.b32.xlu1 %v5108_v62, %s3420_s14  ;;  %2657 = vst.msk [vmem:[#allocation3 + $0x20] sm:$0xff] %vm1059_vm8, %v2566_v57 }
 0x4cb   :  { %v2483_v5 = vpop.permute.xlu1 %2482 }
 0x4cc   :  { %v2481_v50 = vpop.permute.xlu0 %2480  ;;  %2549 = vst.msk [vmem:[#allocation3 + $0xe8] sm:$0xff] %vm925_vm7, %v2483_v5 }
 0x4cd   :  { %2548 = vst.msk [vmem:[#allocation3 + $0xe0] sm:$0xff] %vm925_vm7, %v2481_v50  ;;  %2705 = vrot.lane.b32.xlu0 %v5134_v56, %s3420_s14  ;;  %v2816_v50 = vrot.slane %v1789_v24, 1 }
 0x4ce   :  { %2703 = vrot.lane.b32.xlu2 %v5136_v10, %s3420_s14  ;;  %v2817_v10 = vrot.slane %v1790_v32, 1 }
 0x4d0   :  { %v2572_v20 = vpop.permute.xlu2 %2571 }
 0x4d1   :  { %2707 = vrot.lane.b32.xlu1 %v5142_v30, %s3420_s14  ;;  %2660 = vst.msk [vmem:[#allocation3 + $0x38] sm:$0xff] %vm1059_vm8, %v2572_v20  ;;  %v2819_v30 = vrot.slane %v1791_v8, 1 }
 0x4d3   :  { %v2558_v62 = vpop.permute.xlu1 %2557  ;;  %v2820_v46 = vsel %vm272_vm1, %v2817_v10, %v2819_v30 }
 0x4d4   :  { %v2487_v49 = vpop.permute.xlu0 %2486  ;;  %2653 = vst.msk [vmem:[#allocation3] sm:$0xff] %vm1059_vm8, %v2558_v62 }
 0x4d5   :  { %2551 = vst.msk [vmem:[#allocation3 + $0xf8] sm:$0xff] %vm925_vm7, %v2487_v49  ;;  %2711 = vrot.lane.b32.xlu0 %v5177_v16, %s3420_s14  ;;  %v2952_v16 = vrot.slane %v1791_v8, 2  ;;  %v2818_v49 = vsel %vm272_vm1, %v2816_v50, %v2817_v10 }
 0x4d6   :  { %2709 = vrot.lane.b32.xlu2 %v5144_v31, %s3420_s14  ;;  %v2950_v31 = vrot.slane %v1790_v32, 2 }
 0x4d8   :  { %v2578_v59 = vpop.permute.xlu2 %2577  ;;  %v2953_v29 = vsel %vm482_vm4, %v2950_v31, %v2952_v16 }
 0x4d9   :  { %2717 = vrot.lane.b32.xlu1 %v5196_v19, %s3420_s14  ;;  %2663 = vst.msk [vmem:[#allocation3 + $0x50] sm:$0xff] %vm1059_vm8, %v2578_v59 }
 0x4db   :  { %v2564_v41 = vpop.permute.xlu1 %2563 }
 0x4dc   :  { %v2562_v56 = vpop.permute.xlu0 %2561  ;;  %2656 = vst.msk [vmem:[#allocation3 + $0x18] sm:$0xff] %vm1059_vm8, %v2564_v41 }
 0x4dd   :  { %2655 = vst.msk [vmem:[#allocation3 + $0x10] sm:$0xff] %vm1059_vm8, %v2562_v56  ;;  %2851 = vrot.lane.b32.xlu0 %v6826_v42, %s3421_s15 }
 0x4de   :  { %2749 = vrot.lane.b32.xlu2 %v1790_v32, %s3420_s14 }
 0x4e0   :  { %v2584_v54 = vpop.permute.xlu2 %2583 }
 0x4e1   :  { %2883 = vrot.lane.b32.xlu1 %v2820_v46, %s3421_s15  ;;  %2666 = vst.msk [vmem:[#allocation3 + $0x68] sm:$0xff] %vm1059_vm8, %v2584_v54 }
 0x4e3   :  { %v2570_v9 = vpop.permute.xlu1 %2569 }
 0x4e4   :  { %v2568_v19 = vpop.permute.xlu0 %2567  ;;  %2659 = vst.msk [vmem:[#allocation3 + $0x30] sm:$0xff] %vm1059_vm8, %v2570_v9  ;;  %v6854_v9 = vld [vmem:[#allocation27_spill] sm:$0xff] }
 0x4e5   :  { %2658 = vst.msk [vmem:[#allocation3 + $0x28] sm:$0xff] %vm1059_vm8, %v2568_v19  ;;  %3016 = vrot.lane.b32.xlu0 %v2953_v29, %s3422_s16 }
 0x4e6   :  { %2984 = vrot.lane.b32.xlu2 %v5654_v39, %s3422_s16 }
 0x4e8   :  { %v2590_v57 = vpop.permute.xlu2 %2589 }
 0x4e9   :  { %2715 = vrot.lane.b32.xlu1 %v5209_v23, %s3420_s14  ;;  %2669 = vst.msk [vmem:[#allocation3 + $0x80] sm:$0xff] %vm1059_vm8, %v2590_v57  ;;  %v2949_v23 = vrot.slane %v1789_v24, 2  ;;  %v6856_v57 = vld [vmem:[#allocation58_spill] sm:$0xff] }
 0x4eb   :  { %v2576_v5 = vpop.permute.xlu1 %2575  ;;  %v2951_v32 = vsel %vm482_vm4, %v2949_v23, %v2950_v31 }
 0x4ec   :  { %v2574_v42 = vpop.permute.xlu0 %2573  ;;  %2662 = vst.msk [vmem:[#allocation3 + $0x48] sm:$0xff] %vm1059_vm8, %v2576_v5 }
 0x4ed   :  { %2661 = vst.msk [vmem:[#allocation3 + $0x40] sm:$0xff] %vm1059_vm8, %v2574_v42  ;;  %2849 = vrot.lane.b32.xlu0 %v6824_v45, %s3421_s15 }
 0x4ee   :  { %2747 = vrot.lane.b32.xlu2 %v1789_v24, %s3420_s14 }
 0x4f0   :  { %v2596_v20 = vpop.permute.xlu2 %2595 }
 0x4f1   :  { %2881 = vrot.lane.b32.xlu1 %v2818_v49, %s3421_s15  ;;  %2672 = vst.msk [vmem:[#allocation3 + $0x98] sm:$0xff] %vm1059_vm8, %v2596_v20  ;;  %v6858_v20 = vld [vmem:[#allocation44_spill] sm:$0xff] }
 0x4f3   :  { %v2582_v62 = vpop.permute.xlu1 %2581 }
 0x4f4   :  { %v2580_v39 = vpop.permute.xlu0 %2579  ;;  %2665 = vst.msk [vmem:[#allocation3 + $0x60] sm:$0xff] %vm1059_vm8, %v2582_v62  ;;  %v6859_v62 = vld [vmem:[#allocation33_spill] sm:$0xff] }
 0x4f5   :  { %2664 = vst.msk [vmem:[#allocation3 + $0x58] sm:$0xff] %vm1059_vm8, %v2580_v39  ;;  %3014 = vrot.lane.b32.xlu0 %v2951_v32, %s3422_s16 }
 0x4f6   :  { %2982 = vrot.lane.b32.xlu2 %v6846_v4, %s3422_s16 }
 0x4f8   :  { %v2602_v8 = vpop.permute.xlu2 %2601 }
 0x4f9   :  { %2713 = vrot.lane.b32.xlu1 %v5179_v7, %s3420_s14  ;;  %2675 = vst.msk [vmem:[#allocation3 + $0xb0] sm:$0xff] %vm1059_vm8, %v2602_v8 }
 0x4fb   :  { %v2588_v56 = vpop.permute.xlu1 %2587 }
 0x4fc   :  { %v2586_v45 = vpop.permute.xlu0 %2585  ;;  %2668 = vst.msk [vmem:[#allocation3 + $0x78] sm:$0xff] %vm1059_vm8, %v2588_v56 }
 0x4fd   :  { %2667 = vst.msk [vmem:[#allocation3 + $0x70] sm:$0xff] %vm1059_vm8, %v2586_v45  ;;  %2847 = vrot.lane.b32.xlu0 %v6825_v34, %s3421_s15 }
 0x4fe   :  { %2745 = vrot.lane.b32.xlu2 %v5856_v3, %s3420_s14 }
 0x500   :  { %v2608_v7 = vpop.permute.xlu2 %2607 }
 0x501   :  { %2879 = vrot.lane.b32.xlu1 %v5964_v37, %s3421_s15  ;;  %2678 = vst.msk [vmem:[#allocation3 + $0xc8] sm:$0xff] %vm1059_vm8, %v2608_v7  ;;  %v6862_v7 = vld [vmem:[#allocation57_spill] sm:$0xff] }
 0x503   :  { %v2594_v10 = vpop.permute.xlu1 %2593 }
 0x504   :  { %v2592_v4 = vpop.permute.xlu0 %2591  ;;  %2671 = vst.msk [vmem:[#allocation3 + $0x90] sm:$0xff] %vm1059_vm8, %v2594_v10  ;;  %v6863_v10 = vld [vmem:[#allocation23_spill] sm:$0xff] }
 0x505   :  { %2670 = vst.msk [vmem:[#allocation3 + $0x88] sm:$0xff] %vm1059_vm8, %v2592_v4  ;;  %3012 = vrot.lane.b32.xlu0 %v6076_v52, %s3422_s16  ;;  %v6861_v4 = vld [vmem:[#allocation63_spill] sm:$0xff] }
 0x506   :  { %2980 = vrot.lane.b32.xlu2 %v6845_v15, %s3422_s16 }
 0x508   :  { %v2614_v37 = vpop.permute.xlu2 %2613 }
 0x509   :  { %2743 = vrot.lane.b32.xlu1 %v5853_v1, %s3420_s14  ;;  %2681 = vst.msk [vmem:[#allocation3 + $0xe0] sm:$0xff] %vm1059_vm8, %v2614_v37 }
 0x50b   :  { %v2600_v34 = vpop.permute.xlu1 %2599 }
 0x50c   :  { %v2598_v3 = vpop.permute.xlu0 %2597  ;;  %2674 = vst.msk [vmem:[#allocation3 + $0xa8] sm:$0xff] %vm1059_vm8, %v2600_v34 }
 0x50d   :  { %2673 = vst.msk [vmem:[#allocation3 + $0xa0] sm:$0xff] %vm1059_vm8, %v2598_v3  ;;  %2877 = vrot.lane.b32.xlu0 %v5968_v40, %s3421_s15 }
 0x50e   :  { %2845 = vrot.lane.b32.xlu2 %v6823_v33, %s3421_s15 }
 0x510   :  { %v2620_v1 = vpop.permute.xlu2 %2619 }
 0x511   :  { %2978 = vrot.lane.b32.xlu1 %v5627_v51, %s3422_s16  ;;  %2684 = vst.msk [vmem:[#allocation3 + $0xf8] sm:$0xff] %vm1059_vm8, %v2620_v1  ;;  %v6864_v1 = vld [vmem:[#allocation28_spill] sm:$0xff] }
 0x513   :  { %v2606_v52 = vpop.permute.xlu1 %2605 }
 0x514   :  { %v2604_v15 = vpop.permute.xlu0 %2603  ;;  %2677 = vst.msk [vmem:[#allocation3 + $0xc0] sm:$0xff] %vm1059_vm8, %v2606_v52  ;;  %v6865_v52 = vld [vmem:[#allocation42_spill] sm:$0xff] }
 0x515   :  { %2676 = vst.msk [vmem:[#allocation3 + $0xb8] sm:$0xff] %vm1059_vm8, %v2604_v15  ;;  %2741 = vrot.lane.b32.xlu0 %v5385_v61, %s3420_s14 }
 0x516   :  { %3010 = vrot.lane.b32.xlu2 %v6063_v58, %s3422_s16 }
 0x518   :  { %v2692_v51 = vpop.permute.xlu2 %2691 }
 0x519   :  { %2843 = vrot.lane.b32.xlu1 %v6821_v35, %s3421_s15  ;;  %2785 = vst.msk [vmem:[#allocation3 + $0x10] sm:$0xff] %vm1190_vm9, %v2692_v51 }
 0x51b   :  { %v2612_v40 = vpop.permute.xlu1 %2611 }
 0x51c   :  { %v2610_v33 = vpop.permute.xlu0 %2609  ;;  %2680 = vst.msk [vmem:[#allocation3 + $0xd8] sm:$0xff] %vm1059_vm8, %v2612_v40 }
 0x51d   :  { %2679 = vst.msk [vmem:[#allocation3 + $0xd0] sm:$0xff] %vm1059_vm8, %v2610_v33  ;;  %2976 = vrot.lane.b32.xlu0 %v5595_v11, %s3422_s16  ;;  %v6866_v33 = vld [vmem:[#allocation56_spill] sm:$0xff] }
 0x51e   :  { %2875 = vrot.lane.b32.xlu2 %v5416_v26, %s3421_s15 }
 0x520   :  { %v2698_v35 = vpop.permute.xlu2 %2697 }
 0x521   :  { %3008 = vrot.lane.b32.xlu1 %v5754_v17, %s3422_s16  ;;  %2788 = vst.msk [vmem:[#allocation3 + $0x28] sm:$0xff] %vm1190_vm9, %v2698_v35 }
 0x523   :  { %v2618_v58 = vpop.permute.xlu1 %2617 }
 0x524   :  { %v2616_v61 = vpop.permute.xlu0 %2615  ;;  %2683 = vst.msk [vmem:[#allocation3 + $0xf0] sm:$0xff] %vm1059_vm8, %v2618_v58 }
 0x525   :  { %2682 = vst.msk [vmem:[#allocation3 + $0xe8] sm:$0xff] %vm1059_vm8, %v2616_v61  ;;  %2841 = vrot.lane.b32.xlu0 %v6822_v25, %s3421_s15 }
 0x526   :  { %2739 = vrot.lane.b32.xlu2 %v5378_v53, %s3420_s14 }
 0x528   :  { %v2704_v11 = vpop.permute.xlu2 %2703 }
 0x529   :  { %2873 = vrot.lane.b32.xlu1 %v5411_v48, %s3421_s15  ;;  %2791 = vst.msk [vmem:[#allocation3 + $0x40] sm:$0xff] %vm1190_vm9, %v2704_v11  ;;  %v6868_v11 = vld [vmem:[#allocation24_spill] sm:$0xff] }
 0x52b   :  { %v2690_v17 = vpop.permute.xlu1 %2689 }
 0x52c   :  { %v2688_v26 = vpop.permute.xlu0 %2687  ;;  %2784 = vst.msk [vmem:[#allocation3 + $0x8] sm:$0xff] %vm1190_vm9, %v2690_v17  ;;  %v6869_v17 = vld [vmem:[#allocation37_spill] sm:$0xff] }
 0x52d   :  { %2783 = vst.msk [vmem:[#allocation3] sm:$0xff] %vm1190_vm9, %v2688_v26  ;;  %3006 = vrot.lane.b32.xlu0 %v5737_v0, %s3422_s16  ;;  %v6867_v26 = vld [vmem:[#allocation20_spill] sm:$0xff] }
 0x52e   :  { %2974 = vrot.lane.b32.xlu2 %v5592_v47, %s3422_s16 }
 0x530   :  { %v2710_v48 = vpop.permute.xlu2 %2709 }
 0x531   :  { %2737 = vrot.lane.b32.xlu1 %v5346_v21, %s3420_s14  ;;  %2794 = vst.msk [vmem:[#allocation3 + $0x58] sm:$0xff] %vm1190_vm9, %v2710_v48 }
 0x533   :  { %v2696_v25 = vpop.permute.xlu1 %2695 }
 0x534   :  { %v2694_v53 = vpop.permute.xlu0 %2693  ;;  %2787 = vst.msk [vmem:[#allocation3 + $0x20] sm:$0xff] %vm1190_vm9, %v2696_v25 }
 0x535   :  { %2786 = vst.msk [vmem:[#allocation3 + $0x18] sm:$0xff] %vm1190_vm9, %v2694_v53  ;;  %2871 = vrot.lane.b32.xlu0 %v6836_v18, %s3421_s15 }
 0x536   :  { %2839 = vrot.lane.b32.xlu2 %v6820_v36, %s3421_s15 }
 0x538   :  { %v2750_v21 = vpop.permute.xlu2 %2749 }
 0x539   :  { %2972 = vrot.lane.b32.xlu1 %v5588_v14, %s3422_s16  ;;  %2814 = vst.msk [vmem:[#allocation3 + $0xf8] sm:$0xff] %vm1190_vm9, %v2750_v21  ;;  %v6871_v21 = vld [vmem:[#allocation26_spill] sm:$0xff] }
 0x53b   :  { %v2702_v0 = vpop.permute.xlu1 %2701 }
 0x53c   :  { %v2700_v47 = vpop.permute.xlu0 %2699  ;;  %2790 = vst.msk [vmem:[#allocation3 + $0x38] sm:$0xff] %vm1190_vm9, %v2702_v0  ;;  %v6872_v0 = vld [vmem:[#allocation62_spill] sm:$0xff] }
 0x53d   :  { %2789 = vst.msk [vmem:[#allocation3 + $0x30] sm:$0xff] %vm1190_vm9, %v2700_v47  ;;  %2735 = vrot.lane.b32.xlu0 %v5344_v44, %s3420_s14  ;;  %v6870_v47 = vld [vmem:[#allocation55_spill] sm:$0xff] }
 0x53e   :  { %3004 = vrot.lane.b32.xlu2 %v5731_v6, %s3422_s16 }
 0x540   :  { %v2985_v14 = vpop.permute.xlu2 %2984 }
 0x541   :  { %2837 = vrot.lane.b32.xlu1 %v6818_v13, %s3421_s15 }
 0x543   :  { %v2708_v18 = vpop.permute.xlu1 %2707 }
 0x544   :  { %v2706_v36 = vpop.permute.xlu0 %2705  ;;  %2793 = vst.msk [vmem:[#allocation3 + $0x50] sm:$0xff] %vm1190_vm9, %v2708_v18 }
 0x545   :  { %2792 = vst.msk [vmem:[#allocation3 + $0x48] sm:$0xff] %vm1190_vm9, %v2706_v36  ;;  %2970 = vrot.lane.b32.xlu0 %v5566_v22, %s3422_s16  ;;  %v6850_v22 = vld [vmem:[#allocation47_spill] sm:$0xff] }
 0x546   :  { %2869 = vrot.lane.b32.xlu2 %v6835_v55, %s3421_s15 }
 0x548   :  { %v2748_v6 = vpop.permute.xlu2 %2747 }
 0x549   :  { %3002 = vrot.lane.b32.xlu1 %v5734_v27, %s3422_s16  ;;  %2813 = vst.msk [vmem:[#allocation3 + $0xf0] sm:$0xff] %vm1190_vm9, %v2748_v6 }
 0x54b   :  { %v2718_v13 = vpop.permute.xlu1 %2717 }
 0x54c   :  { %v2712_v44 = vpop.permute.xlu0 %2711  ;;  %2798 = vst.msk [vmem:[#allocation3 + $0x78] sm:$0xff] %vm1190_vm9, %v2718_v13  ;;  %v6873_v13 = vld [vmem:[#allocation35_spill] sm:$0xff] }
 0x54d   :  { %2795 = vst.msk [vmem:[#allocation3 + $0x60] sm:$0xff] %vm1190_vm9, %v2712_v44  ;;  %2835 = vrot.lane.b32.xlu0 %v6819_v38, %s3421_s15 }
 0x54e   :  { %2733 = vrot.lane.b32.xlu2 %v5305_v60, %s3420_s14  ;;  %v6851_v60 = vld [vmem:[#allocation34_spill] sm:$0xff] }
 0x550   :  { %v2983_v27 = vpop.permute.xlu2 %2982 }
 0x551   :  { %2867 = vrot.lane.b32.xlu1 %v6850_v22, %s3421_s15  ;;  %v6874_v22 = vld [vmem:[#allocation16_spill] sm:$0xff] }
 0x553   :  { %v2884_v30 = vpop.permute.xlu1 %2883 }
 0x554   :  { %v2852_v55 = vpop.permute.xlu0 %2851  ;;  %2948 = vst.msk [vmem:[#allocation3 + $0xf8] sm:$0xff] %vm1325_vm10, %v2884_v30 }
 0x555   :  { %2932 = vst.msk [vmem:[#allocation3 + $0x78] sm:$0xff] %vm1325_vm10, %v2852_v55  ;;  %3000 = vrot.lane.b32.xlu0 %v6849_v43, %s3422_s16  ;;  %v6852_v43 = vld [vmem:[#allocation39_spill] sm:$0xff]  ;;  %v6875_v55 = vld [vmem:[#allocation25_spill] sm:$0xff] }
 0x556   :  { %3065 = vst.msk [vmem:[#allocation3 + $0x78] sm:$0xff] %vm1459_vm11, %v2985_v14  ;;  %2968 = vrot.lane.b32.xlu2 %v5561_v12, %s3422_s16  ;;  %v6853_v12 = vld [vmem:[#allocation9_spill] sm:$0xff] }
 0x558   :  { %v2746_v59 = vpop.permute.xlu2 %2745 }
 0x559   :  { %2731 = vrot.lane.b32.xlu1 %v6851_v60, %s3420_s14  ;;  %2812 = vst.msk [vmem:[#allocation3 + $0xe8] sm:$0xff] %vm1190_vm9, %v2746_v59  ;;  %v6876_v59 = vld [vmem:[#allocation22_spill] sm:$0xff] }
 0x55b   :  { %v2716_v41 = vpop.permute.xlu1 %2715 }
 0x55c   :  { %v3017_v38 = vpop.permute.xlu0 %3016  ;;  %2797 = vst.msk [vmem:[#allocation3 + $0x70] sm:$0xff] %vm1190_vm9, %v2716_v41  ;;  %v6877_v41 = vld [vmem:[#allocation54_spill] sm:$0xff] }
 0x55d   :  { %3081 = vst.msk [vmem:[#allocation3 + $0xf8] sm:$0xff] %vm1459_vm11, %v3017_v38  ;;  %v3097_v46 = vld [vmem:[#allocation3 + $0x78] sm:$0xff]  ;;  %2865 = vrot.lane.b32.xlu0 %v6852_v43, %s3421_s15 }
 0x55e   :  { %3339 = vmatpush.xpose.msk.msra.mxu2 %vm1529_vm12, %v3097_v46  ;;  %2833 = vrot.lane.b32.xlu2 %v6853_v12, %s3421_s15  ;;  %v6878_v46 = vld [vmem:[#allocation18_spill] sm:$0xff] }
 0x560   :  { %v2981_v19 = vpop.permute.xlu2 %2980 }
 0x561   :  { %2966 = vrot.lane.b32.xlu1 %v6843_v28, %s3422_s16  ;;  %v6855_v28 = vld [vmem:[#allocation46_spill] sm:$0xff] }
 0x563   :  { %v2882_v54 = vpop.permute.xlu1 %2881 }
 0x564   :  { %v2850_v31 = vpop.permute.xlu0 %2849  ;;  %v3113_v16 = vld [vmem:[#allocation3 + $0xf8] sm:$0xff]  ;;  %2947 = vst.msk [vmem:[#allocation3 + $0xf0] sm:$0xff] %vm1325_vm10, %v2882_v54  ;;  %v6880_v54 = vld [vmem:[#allocation32_spill] sm:$0xff] }
 0x565   :  { %2931 = vst.msk [vmem:[#allocation3 + $0x70] sm:$0xff] %vm1325_vm10, %v2850_v31  ;;  %3356 = vmatpush.xpose.msk.msra.mxu3 %vm1529_vm12, %v3113_v16  ;;  %2729 = vrot.lane.b32.xlu0 %v6854_v9, %s3420_s14  ;;  %v6881_v9 = vld [vmem:[#allocation53_spill] sm:$0xff] }
 0x566   :  { %3064 = vst.msk [vmem:[#allocation3 + $0x70] sm:$0xff] %vm1459_vm11, %v2983_v27  ;;  %2998 = vrot.lane.b32.xlu2 %v5704_v2, %s3422_s16  ;;  %v6857_v2 = vld [vmem:[#allocation38_spill] sm:$0xff] }
 0x568   :  { %v2846_v24 = vpop.permute.xlu2 %2845 }
 0x569   :  { %2831 = vrot.lane.b32.xlu1 %v6855_v28, %s3421_s15  ;;  %2929 = vst.msk [vmem:[#allocation3 + $0x60] sm:$0xff] %vm1325_vm10, %v2846_v24 }
 0x56b   :  { %v2714_v42 = vpop.permute.xlu1 %2713 }
 0x56c   :  { %v3015_v29 = vpop.permute.xlu0 %3014  ;;  %2796 = vst.msk [vmem:[#allocation3 + $0x68] sm:$0xff] %vm1190_vm9, %v2714_v42 }
 0x56d   :  { %3080 = vst.msk [vmem:[#allocation3 + $0xf0] sm:$0xff] %vm1459_vm11, %v3015_v29  ;;  %v3096_v50 = vld [vmem:[#allocation3 + $0x70] sm:$0xff]  ;;  %2964 = vrot.lane.b32.xlu0 %v6856_v57, %s3422_s16  ;;  %v6882_v57 = vld [vmem:[#allocation14_spill] sm:$0xff] }
 0x56e   :  { %3340 = vmatpush.xpose.msk.msra.mxu2 %vm1529_vm12, %v3096_v50  ;;  %2863 = vrot.lane.b32.xlu2 %v6857_v2, %s3421_s15 }
 0x570   :  { %v3011_v23 = vpop.permute.xlu2 %3010 }
 0x571   :  { %2996 = vrot.lane.b32.xlu1 %v5707_v63, %s3422_s16  ;;  %v6860_v63 = vld [vmem:[#allocation36_spill] sm:$0xff] }
 0x573   :  { %v2880_v39 = vpop.permute.xlu1 %2879 }
 0x574   :  { %v2848_v5 = vpop.permute.xlu0 %2847  ;;  %v3112_v49 = vld [vmem:[#allocation3 + $0xf0] sm:$0xff]  ;;  %2946 = vst.msk [vmem:[#allocation3 + $0xe8] sm:$0xff] %vm1325_vm10, %v2880_v39 }
 0x575   :  { %2930 = vst.msk [vmem:[#allocation3 + $0x68] sm:$0xff] %vm1325_vm10, %v2848_v5  ;;  %3357 = vmatpush.xpose.msk.msra.mxu3 %vm1529_vm12, %v3112_v49  ;;  %2829 = vrot.lane.b32.xlu0 %v6858_v20, %s3421_s15 }
 0x576   :  { %3063 = vst.msk [vmem:[#allocation3 + $0x68] sm:$0xff] %vm1459_vm11, %v2981_v19  ;;  %2727 = vrot.lane.b32.xlu2 %v6859_v62, %s3420_s14  ;;  %v6879_v19 = vld [vmem:[#allocation19_spill] sm:$0xff] }
 0x578   :  { %v2876_v45 = vpop.permute.xlu2 %2875 }
 0x579   :  { %2861 = vrot.lane.b32.xlu1 %v6860_v63, %s3421_s15 }
 0x57b   :  { %v2744_v8 = vpop.permute.xlu1 %2743 }
 0x57c   :  { %v3013_v32 = vpop.permute.xlu0 %3012  ;;  %2811 = vst.msk [vmem:[#allocation3 + $0xe0] sm:$0xff] %vm1190_vm9, %v2744_v8 }
 0x57d   :  { %3079 = vst.msk [vmem:[#allocation3 + $0xe8] sm:$0xff] %vm1459_vm11, %v3013_v32  ;;  %v3095_v56 = vld [vmem:[#allocation3 + $0x68] sm:$0xff]  ;;  %2994 = vrot.lane.b32.xlu0 %v6861_v4, %s3422_s16 }
 0x57e   :  { %3341 = vmatpush.xpose.msk.msra.mxu2 %vm1529_vm12, %v3095_v56  ;;  %2962 = vrot.lane.b32.xlu2 %v6862_v7, %s3422_s16 }
 0x580   :  { %v2740_v34 = vpop.permute.xlu2 %2739 }
 0x581   :  { %2725 = vrot.lane.b32.xlu1 %v6863_v10, %s3420_s14  ;;  %2809 = vst.msk [vmem:[#allocation3 + $0xd0] sm:$0xff] %vm1190_vm9, %v2740_v34 }
 0x583   :  { %v2979_v15 = vpop.permute.xlu1 %2978 }
 0x584   :  { %v2878_v3 = vpop.permute.xlu0 %2877  ;;  %v3111_v37 = vld [vmem:[#allocation3 + $0xe8] sm:$0xff]  ;;  %3062 = vst.msk [vmem:[#allocation3 + $0x60] sm:$0xff] %vm1459_vm11, %v2979_v15 }
 0x585   :  { %2945 = vst.msk [vmem:[#allocation3 + $0xe0] sm:$0xff] %vm1325_vm10, %v2878_v3  ;;  %3358 = vmatpush.xpose.msk.msra.mxu3 %vm1529_vm12, %v3111_v37  ;;  %2859 = vrot.lane.b32.xlu0 %v6864_v1, %s3421_s15 }
 0x586   :  { %3078 = vst.msk [vmem:[#allocation3 + $0xe0] sm:$0xff] %vm1459_vm11, %v3011_v23  ;;  %2827 = vrot.lane.b32.xlu2 %v6865_v52, %s3421_s15 }
 0x588   :  { %v2975_v40 = vpop.permute.xlu2 %2974 }
 0x589   :  { %2960 = vrot.lane.b32.xlu1 %v6866_v33, %s3422_s16 }
 0x58b   :  { %v2844_v61 = vpop.permute.xlu1 %2843  ;;  %v3094_v58 = vld [vmem:[#allocation3 + $0x60] sm:$0xff] }
 0x58c   :  { %v2742_v51 = vpop.permute.xlu0 %2741  ;;  %2928 = vst.msk [vmem:[#allocation3 + $0x58] sm:$0xff] %vm1325_vm10, %v2844_v61  ;;  %3342 = vmatpush.xpose.msk.msra.mxu2 %vm1529_vm12, %v3094_v58 }
 0x58d   :  { %2810 = vst.msk [vmem:[#allocation3 + $0xd8] sm:$0xff] %vm1190_vm9, %v2742_v51  ;;  %v3110_v35 = vld [vmem:[#allocation3 + $0xe0] sm:$0xff]  ;;  %2723 = vrot.lane.b32.xlu0 %v6867_v26, %s3420_s14 }
 0x58e   :  { %2944 = vst.msk [vmem:[#allocation3 + $0xd8] sm:$0xff] %vm1325_vm10, %v2876_v45  ;;  %3359 = vmatpush.xpose.msk.msra.mxu3 %vm1529_vm12, %v3110_v35  ;;  %2992 = vrot.lane.b32.xlu2 %v6868_v11, %s3422_s16 }
 0x590   :  { %v2840_v48 = vpop.permute.xlu2 %2839 }
 0x591   :  { %2825 = vrot.lane.b32.xlu1 %v6869_v17, %s3421_s15  ;;  %2926 = vst.msk [vmem:[#allocation3 + $0x48] sm:$0xff] %vm1325_vm10, %v2840_v48 }
 0x593   :  { %v3009_v25 = vpop.permute.xlu1 %3008 }
 0x594   :  { %v2977_v53 = vpop.permute.xlu0 %2976  ;;  %3077 = vst.msk [vmem:[#allocation3 + $0xd8] sm:$0xff] %vm1459_vm11, %v3009_v25 }
 0x595   :  { %3061 = vst.msk [vmem:[#allocation3 + $0x58] sm:$0xff] %vm1459_vm11, %v2977_v53  ;;  %2958 = vrot.lane.b32.xlu0 %v6870_v47, %s3422_s16 }
 0x596   :  { %2857 = vrot.lane.b32.xlu2 %v6871_v21, %s3421_s15 }
 0x598   :  { %v3005_v18 = vpop.permute.xlu2 %3004 }
 0x599   :  { %2990 = vrot.lane.b32.xlu1 %v6872_v0, %s3422_s16 }
 0x59b   :  { %v2874_v44 = vpop.permute.xlu1 %2873  ;;  %v3109_v6 = vld [vmem:[#allocation3 + $0xd8] sm:$0xff] }
 0x59c   :  { %v2842_v36 = vpop.permute.xlu0 %2841  ;;  %v3093_v14 = vld [vmem:[#allocation3 + $0x58] sm:$0xff]  ;;  %3360 = vmatpush.xpose.msk.msra.mxu3 %vm1529_vm12, %v3109_v6  ;;  %2943 = vst.msk [vmem:[#allocation3 + $0xd0] sm:$0xff] %vm1325_vm10, %v2874_v44 }
 0x59d   :  { %2927 = vst.msk [vmem:[#allocation3 + $0x50] sm:$0xff] %vm1325_vm10, %v2842_v36  ;;  %3343 = vmatpush.xpose.msk.msra.mxu2 %vm1529_vm12, %v3093_v14  ;;  %2823 = vrot.lane.b32.xlu0 %v6873_v13, %s3421_s15 }
 0x59e   :  { %3060 = vst.msk [vmem:[#allocation3 + $0x50] sm:$0xff] %vm1459_vm11, %v2975_v40  ;;  %2721 = vrot.lane.b32.xlu2 %v6874_v22, %s3420_s14 }
 0x5a0   :  { %v2870_v30 = vpop.permute.xlu2 %2869 }
 0x5a1   :  { %2855 = vrot.lane.b32.xlu1 %v6875_v55, %s3421_s15 }
 0x5a3   :  { %v2738_v60 = vpop.permute.xlu1 %2737 }
 0x5a4   :  { %v3007_v27 = vpop.permute.xlu0 %3006  ;;  %2808 = vst.msk [vmem:[#allocation3 + $0xc8] sm:$0xff] %vm1190_vm9, %v2738_v60 }
 0x5a5   :  { %3076 = vst.msk [vmem:[#allocation3 + $0xd0] sm:$0xff] %vm1459_vm11, %v3007_v27  ;;  %v3092_v38 = vld [vmem:[#allocation3 + $0x50] sm:$0xff]  ;;  %2988 = vrot.lane.b32.xlu0 %v6876_v59, %s3422_s16 }
 0x5a6   :  { %3344 = vmatpush.xpose.msk.msra.mxu2 %vm1529_vm12, %v3092_v38  ;;  %2956 = vrot.lane.b32.xlu2 %v6877_v41, %s3422_s16 }
 0x5a8   :  { %v2734_v31 = vpop.permute.xlu2 %2733 }
 0x5a9   :  { %2719 = vrot.lane.b32.xlu1 %v6878_v46, %s3420_s14  ;;  %2806 = vst.msk [vmem:[#allocation3 + $0xb8] sm:$0xff] %vm1190_vm9, %v2734_v31 }
 0x5ab   :  { %v2973_v16 = vpop.permute.xlu1 %2972 }
 0x5ac   :  { %v2872_v43 = vpop.permute.xlu0 %2871  ;;  %v3108_v12 = vld [vmem:[#allocation3 + $0xd0] sm:$0xff]  ;;  %3059 = vst.msk [vmem:[#allocation3 + $0x48] sm:$0xff] %vm1459_vm11, %v2973_v16 }
 0x5ad   :  { %2942 = vst.msk [vmem:[#allocation3 + $0xc8] sm:$0xff] %vm1325_vm10, %v2872_v43  ;;  %3361 = vmatpush.xpose.msk.msra.mxu3 %vm1529_vm12, %v3108_v12  ;;  %2853 = vrot.lane.b32.xlu0 %v6879_v19, %s3421_s15 }
 0x5ae   :  { %3075 = vst.msk [vmem:[#allocation3 + $0xc8] sm:$0xff] %vm1459_vm11, %v3005_v18  ;;  %2821 = vrot.lane.b32.xlu2 %v6880_v54, %s3421_s15 }
 0x5b0   :  { %v2969_v29 = vpop.permute.xlu2 %2968 }
 0x5b1   :  { %2954 = vrot.lane.b32.xlu1 %v6881_v9, %s3422_s16 }
 0x5b3   :  { %v2838_v24 = vpop.permute.xlu1 %2837  ;;  %v3091_v50 = vld [vmem:[#allocation3 + $0x48] sm:$0xff] }
 0x5b4   :  { %v2736_v28 = vpop.permute.xlu0 %2735  ;;  %2925 = vst.msk [vmem:[#allocation3 + $0x40] sm:$0xff] %vm1325_vm10, %v2838_v24  ;;  %3345 = vmatpush.xpose.msk.msra.mxu2 %vm1529_vm12, %v3091_v50 }
 0x5b5   :  { %2807 = vst.msk [vmem:[#allocation3 + $0xc0] sm:$0xff] %vm1190_vm9, %v2736_v28  ;;  %v3107_v42 = vld [vmem:[#allocation3 + $0xc8] sm:$0xff]  ;;  %v3387_v28 = vld [vmem:[%s6450_s1] sm:$0xff]  ;;  %s3425_s1 = smov 256  }
 0x5b6   :  { %2941 = vst.msk [vmem:[#allocation3 + $0xc0] sm:$0xff] %vm1325_vm10, %v2870_v30  ;;  %3362 = vmatpush.xpose.msk.msra.mxu3 %vm1529_vm12, %v3107_v42  ;;  %2986 = vrot.lane.b32.xlu2 %v6882_v57, %s3422_s16  ;;  %v6883_v42 = vld [vmem:[#allocation59_spill] sm:$0xff] }
 0x5b8   :  { %v2834_v5 = vpop.permute.xlu2 %2833 }
 0x5b9   :  { %2923 = vst.msk [vmem:[#allocation3 + $0x30] sm:$0xff] %vm1325_vm10, %v2834_v5 }
 0x5bb   :  { %v3003_v49 = vpop.permute.xlu1 %3002 }
 0x5bc   :  { %v2971_v2 = vpop.permute.xlu0 %2970  ;;  %3074 = vst.msk [vmem:[#allocation3 + $0xc0] sm:$0xff] %vm1459_vm11, %v3003_v49 }
 0x5bd   :  { %3058 = vst.msk [vmem:[#allocation3 + $0x40] sm:$0xff] %vm1459_vm11, %v2971_v2 }
 0x5c0   :  { %v2999_v20 = vpop.permute.xlu2 %2998 }
 0x5c3   :  { %v2868_v62 = vpop.permute.xlu1 %2867  ;;  %v3106_v63 = vld [vmem:[#allocation3 + $0xc0] sm:$0xff] }
 0x5c4   :  { %v2836_v23 = vpop.permute.xlu0 %2835  ;;  %v3090_v39 = vld [vmem:[#allocation3 + $0x40] sm:$0xff]  ;;  %3363 = vmatpush.xpose.msk.msra.mxu3 %vm1529_vm12, %v3106_v63  ;;  %2940 = vst.msk [vmem:[#allocation3 + $0xb8] sm:$0xff] %vm1325_vm10, %v2868_v62 }
 0x5c5   :  { %2924 = vst.msk [vmem:[#allocation3 + $0x38] sm:$0xff] %vm1325_vm10, %v2836_v23  ;;  %3346 = vmatpush.xpose.msk.msra.mxu2 %vm1529_vm12, %v3090_v39 }
 0x5c6   :  { %3057 = vst.msk [vmem:[#allocation3 + $0x38] sm:$0xff] %vm1459_vm11, %v2969_v29 }
 0x5c8   :  { %v2864_v45 = vpop.permute.xlu2 %2863 }
 0x5cb   :  { %v2732_v8 = vpop.permute.xlu1 %2731 }
 0x5cc   :  { %v3001_v32 = vpop.permute.xlu0 %3000  ;;  %2805 = vst.msk [vmem:[#allocation3 + $0xb0] sm:$0xff] %vm1190_vm9, %v2732_v8 }
 0x5cd   :  { %3073 = vst.msk [vmem:[#allocation3 + $0xb8] sm:$0xff] %vm1459_vm11, %v3001_v32  ;;  %v3089_v56 = vld [vmem:[#allocation3 + $0x38] sm:$0xff] }
 0x5ce   :  { %3347 = vmatpush.xpose.msk.msra.mxu2 %vm1529_vm12, %v3089_v56 }
 0x5d0   :  { %v2728_v10 = vpop.permute.xlu2 %2727 }
 0x5d1   :  { %2803 = vst.msk [vmem:[#allocation3 + $0xa0] sm:$0xff] %vm1190_vm9, %v2728_v10 }
 0x5d3   :  { %v2967_v3 = vpop.permute.xlu1 %2966 }
 0x5d4   :  { %v2866_v4 = vpop.permute.xlu0 %2865  ;;  %v3105_v7 = vld [vmem:[#allocation3 + $0xb8] sm:$0xff]  ;;  %3056 = vst.msk [vmem:[#allocation3 + $0x30] sm:$0xff] %vm1459_vm11, %v2967_v3 }
 0x5d5   :  { %2939 = vst.msk [vmem:[#allocation3 + $0xb0] sm:$0xff] %vm1325_vm10, %v2866_v4  ;;  %3364 = vmatpush.xpose.msk.msra.mxu3 %vm1529_vm12, %v3105_v7 }
 0x5d6   :  { %3072 = vst.msk [vmem:[#allocation3 + $0xb0] sm:$0xff] %vm1459_vm11, %v2999_v20 }
 0x5d8   :  { %v2963_v34 = vpop.permute.xlu2 %2962 }
 0x5db   :  { %v2832_v15 = vpop.permute.xlu1 %2831  ;;  %v3088_v52 = vld [vmem:[#allocation3 + $0x30] sm:$0xff] }
 0x5dc   :  { %v2730_v37 = vpop.permute.xlu0 %2729  ;;  %2922 = vst.msk [vmem:[#allocation3 + $0x28] sm:$0xff] %vm1325_vm10, %v2832_v15  ;;  %3348 = vmatpush.xpose.msk.msra.mxu2 %vm1529_vm12, %v3088_v52 }
 0x5dd   :  { %2804 = vst.msk [vmem:[#allocation3 + $0xa8] sm:$0xff] %vm1190_vm9, %v2730_v37  ;;  %v3104_v1 = vld [vmem:[#allocation3 + $0xb0] sm:$0xff] }
 0x5de   :  { %2938 = vst.msk [vmem:[#allocation3 + $0xa8] sm:$0xff] %vm1325_vm10, %v2864_v45  ;;  %3365 = vmatpush.xpose.msk.msra.mxu3 %vm1529_vm12, %v3104_v1 }
 0x5e0   :  { %v2828_v51 = vpop.permute.xlu2 %2827 }
 0x5e1   :  { %2920 = vst.msk [vmem:[#allocation3 + $0x18] sm:$0xff] %vm1325_vm10, %v2828_v51 }
 0x5e3   :  { %v2997_v40 = vpop.permute.xlu1 %2996 }
 0x5e4   :  { %v2965_v33 = vpop.permute.xlu0 %2964  ;;  %3071 = vst.msk [vmem:[#allocation3 + $0xa8] sm:$0xff] %vm1459_vm11, %v2997_v40 }
 0x5e5   :  { %3055 = vst.msk [vmem:[#allocation3 + $0x28] sm:$0xff] %vm1459_vm11, %v2965_v33 }
 0x5e8   :  { %v2993_v58 = vpop.permute.xlu2 %2992 }
 0x5eb   :  { %v2862_v26 = vpop.permute.xlu1 %2861  ;;  %v3103_v11 = vld [vmem:[#allocation3 + $0xa8] sm:$0xff] }
 0x5ec   :  { %v2830_v61 = vpop.permute.xlu0 %2829  ;;  %v3087_v35 = vld [vmem:[#allocation3 + $0x28] sm:$0xff]  ;;  %3366 = vmatpush.xpose.msk.msra.mxu3 %vm1529_vm12, %v3103_v11  ;;  %2937 = vst.msk [vmem:[#allocation3 + $0xa0] sm:$0xff] %vm1325_vm10, %v2862_v26 }
 0x5ed   :  { %2921 = vst.msk [vmem:[#allocation3 + $0x20] sm:$0xff] %vm1325_vm10, %v2830_v61  ;;  %3349 = vmatpush.xpose.msk.msra.mxu2 %vm1529_vm12, %v3087_v35 }
 0x5ee   :  { %3054 = vst.msk [vmem:[#allocation3 + $0x20] sm:$0xff] %vm1459_vm11, %v2963_v34 }
 0x5f0   :  { %v2858_v53 = vpop.permute.xlu2 %2857 }
 0x5f3   :  { %v2726_v48 = vpop.permute.xlu1 %2725 }
 0x5f4   :  { %v2995_v17 = vpop.permute.xlu0 %2994  ;;  %2802 = vst.msk [vmem:[#allocation3 + $0x98] sm:$0xff] %vm1190_vm9, %v2726_v48 }
 0x5f5   :  { %3070 = vst.msk [vmem:[#allocation3 + $0xa0] sm:$0xff] %vm1459_vm11, %v2995_v17  ;;  %v3086_v25 = vld [vmem:[#allocation3 + $0x20] sm:$0xff] }
 0x5f6   :  { %3350 = vmatpush.xpose.msk.msra.mxu2 %vm1529_vm12, %v3086_v25 }
 0x5f8   :  { %v2722_v0 = vpop.permute.xlu2 %2721 }
 0x5f9   :  { %2800 = vst.msk [vmem:[#allocation3 + $0x88] sm:$0xff] %vm1190_vm9, %v2722_v0 }
 0x5fb   :  { %v2961_v36 = vpop.permute.xlu1 %2960 }
 0x5fc   :  { %v2860_v47 = vpop.permute.xlu0 %2859  ;;  %v3102_v21 = vld [vmem:[#allocation3 + $0xa0] sm:$0xff]  ;;  %3053 = vst.msk [vmem:[#allocation3 + $0x18] sm:$0xff] %vm1459_vm11, %v2961_v36 }
 0x5fd   :  { %2936 = vst.msk [vmem:[#allocation3 + $0x98] sm:$0xff] %vm1325_vm10, %v2860_v47  ;;  %3367 = vmatpush.xpose.msk.msra.mxu3 %vm1529_vm12, %v3102_v21 }
 0x5fe   :  { %3069 = vst.msk [vmem:[#allocation3 + $0x98] sm:$0xff] %vm1459_vm11, %v2993_v58 }
 0x600   :  { %v2957_v18 = vpop.permute.xlu2 %2956 }
 0x603   :  { %v2826_v44 = vpop.permute.xlu1 %2825  ;;  %v3085_v13 = vld [vmem:[#allocation3 + $0x18] sm:$0xff] }
 0x604   :  { %v2724_v14 = vpop.permute.xlu0 %2723  ;;  %2919 = vst.msk [vmem:[#allocation3 + $0x10] sm:$0xff] %vm1325_vm10, %v2826_v44  ;;  %3351 = vmatpush.xpose.msk.msra.mxu2 %vm1529_vm12, %v3085_v13 }
 0x605   :  { %2801 = vst.msk [vmem:[#allocation3 + $0x90] sm:$0xff] %vm1190_vm9, %v2724_v14  ;;  %v3101_v6 = vld [vmem:[#allocation3 + $0x98] sm:$0xff] }
 0x606   :  { %2935 = vst.msk [vmem:[#allocation3 + $0x90] sm:$0xff] %vm1325_vm10, %v2858_v53  ;;  %3368 = vmatpush.xpose.msk.msra.mxu3 %vm1529_vm12, %v3101_v6 }
 0x608   :  { %v2822_v55 = vpop.permute.xlu2 %2821 }
 0x609   :  { %2917 = vst.msk [vmem:[#allocation3] sm:$0xff] %vm1325_vm10, %v2822_v55 }
 0x60b   :  { %v2991_v27 = vpop.permute.xlu1 %2990 }
 0x60c   :  { %v2959_v22 = vpop.permute.xlu0 %2958  ;;  %3068 = vst.msk [vmem:[#allocation3 + $0x90] sm:$0xff] %vm1459_vm11, %v2991_v27 }
 0x60d   :  { %3052 = vst.msk [vmem:[#allocation3 + $0x10] sm:$0xff] %vm1459_vm11, %v2959_v22 }
 0x610   :  { %v2987_v12 = vpop.permute.xlu2 %2986 }
 0x613   :  { %v2856_v38 = vpop.permute.xlu1 %2855  ;;  %v3100_v59 = vld [vmem:[#allocation3 + $0x90] sm:$0xff] }
 0x614   :  { %v2824_v30 = vpop.permute.xlu0 %2823  ;;  %v3084_v60 = vld [vmem:[#allocation3 + $0x10] sm:$0xff]  ;;  %3369 = vmatpush.xpose.msk.msra.mxu3 %vm1529_vm12, %v3100_v59  ;;  %2934 = vst.msk [vmem:[#allocation3 + $0x88] sm:$0xff] %vm1325_vm10, %v2856_v38 }
 0x615   :  { %2918 = vst.msk [vmem:[#allocation3 + $0x8] sm:$0xff] %vm1325_vm10, %v2824_v30  ;;  %3352 = vmatpush.xpose.msk.msra.mxu2 %vm1529_vm12, %v3084_v60 }
 0x616   :  { %3051 = vst.msk [vmem:[#allocation3 + $0x8] sm:$0xff] %vm1459_vm11, %v2957_v18 }
 0x61b   :  { %v2720_v46 = vpop.permute.xlu1 %2719 }
 0x61c   :  { %v2989_v41 = vpop.permute.xlu0 %2988  ;;  %2799 = vst.msk [vmem:[#allocation3 + $0x80] sm:$0xff] %vm1190_vm9, %v2720_v46 }
 0x61d   :  { %3067 = vst.msk [vmem:[#allocation3 + $0x88] sm:$0xff] %vm1459_vm11, %v2989_v41  ;;  %v3083_v43 = vld [vmem:[#allocation3 + $0x8] sm:$0xff] }
 0x61e   :  { %3353 = vmatpush.xpose.msk.msra.mxu2 %vm1529_vm12, %v3083_v43 }
 0x623   :  { %v2955_v19 = vpop.permute.xlu1 %2954 }
 0x624   :  { %v2854_v31 = vpop.permute.xlu0 %2853  ;;  %v3099_v16 = vld [vmem:[#allocation3 + $0x88] sm:$0xff]  ;;  %3050 = vst.msk [vmem:[#allocation3] sm:$0xff] %vm1459_vm11, %v2955_v19 }
 0x625   :  { %2933 = vst.msk [vmem:[#allocation3 + $0x80] sm:$0xff] %vm1325_vm10, %v2854_v31  ;;  %3370 = vmatpush.xpose.msk.msra.mxu3 %vm1529_vm12, %v3099_v16 }
 0x626   :  { %3066 = vst.msk [vmem:[#allocation3 + $0x80] sm:$0xff] %vm1459_vm11, %v2987_v12 }
 0x62b   :  { %v3082_v9 = vld [vmem:[#allocation3] sm:$0xff] }
 0x62c   :  { %3354 = vmatpush.xpose.msk.msra.mxu2 %vm1529_vm12, %v3082_v9 }
 0x62d   :  { %v3098_v54 = vld [vmem:[#allocation3 + $0x80] sm:$0xff] }
 0x62e   :  { %3371 = vmatpush.xpose.msk.msra.mxu3 %vm1529_vm12, %v3098_v54 }
 0x62f   :  { %3355 = vmatmul.msk.f32.vlgmr.msra.gmra.mxu2 %vm1529_vm12, %v3387_v28 }
 0x631   :  { %3372 = vmatmul.msk.f32.vlgmr.msra.gmra.mxu3 %vm1529_vm12, %v3387_v28 }
 0x6b2   :  { %v3227_v24 = vpop.f32.mrf.mxu2 }
 0x6b3   :  { %v3228_v57 = vadd.f32 %v3227_v24, %v6883_v42 }
 0x6b4   :  { %v3247_v29 = vpop.f32.mrf.mxu3 }
 0x6b5   :  { %v3248_v50 = vadd.f32 %v3247_v29, %v6883_v42  ;;  %v3250_v5 = vmax.f32 %v3228_v57, 0.0 }
 0x6b7   :  { %v3251_v2 = vmax.f32 %v3248_v50, 0.0  ;;  %3253 = vst [vmem:[#allocation4 + $0x10] sm:$0xff] %v3250_v5 }
 0x6b9   :  { %3254 = vst [vmem:[#allocation4 + $0x18] sm:$0xff] %v3251_v2 }
 0x6ba   :  { %3267 = dma.vmem_to_hbm [thread:$0]  %s3260_s22, 512, %s3262_s25, [#allocation5], %s3425_s1, %s3425_s1, %s3418_s10  }
 0x6bb   :  { %3412 = dma.done.wait [#allocation5], 512  }
 0x6bc   :  { %3413 = vsyncadd [#allocation5], 4294966784 }
 0x6bd   :  { %3272 = vsyncpa [#allocation5], 1 }

</bundles_post_ra>
